<compile_context>
chip_gen: v5e
topology: v5e:2x2
jax: 0.10.0
libtpu: 0.0.40
codegen_flags: <defaults>
</compile_context>

<pallas_src>
import jax
import jax.numpy as jnp
import numpy as np
from jax.experimental import pallas as pl
from jax.experimental.pallas import tpu as pltpu

CP = 16            # channels padded to 16
G = 8              # pixels per lane group (G * CP == 128)
LANES = G * CP     # 128


def _sr_kernel(x_ref, w1_ref, a_ref, b3_ref, o_ref, y_scr):
    """One row tile: fused 1x1 conv -> 3x3 conv -> clip/round -> uint8."""
    _, th2, wb, _ = x_ref.shape            # th2 = tile_h + 2 (1-row halo each side)
    th = th2 - 2

    # ---- fused 1x1 conv (bias carried by the dummy all-ones channel of x) ---
    x = x_ref[0]                                              # (th2, wb, 128)
    y = jnp.dot(x.reshape(th2 * wb, LANES), w1_ref[...],
                preferred_element_type=jnp.float32)
    y3 = y.reshape(th2, wb, LANES)

    # ---- stage y in scratch with zeroed 8-column guards so the +/-1 pixel
    #      block shifts read zeros at the image's left/right borders ----------
    y_scr[:, 0:G, :] = jnp.zeros((th2, G, LANES), jnp.float32)
    y_scr[:, G + wb:G + wb + G, :] = jnp.zeros((th2, G, LANES), jnp.float32)
    y_scr[:, G:G + wb, :] = y3                                # aligned write
    y_l = y_scr[:, G - 1:G - 1 + wb, :]   # y_l[., j] = y[., j-1] (left neighbour block)
    y_r = y_scr[:, G + 1:G + 1 + wb, :]   # y_r[., j] = y[., j+1] (right neighbour block)

    # ---- 3x3 conv: 3 row taps x {centre, left-block, right-block} matmuls ---
    acc = jnp.broadcast_to(b3_ref[...], (th * wb, LANES))
    for ky in range(3):                   # static unroll: 9 MXU matmuls
        yc = y3[ky:ky + th].reshape(th * wb, LANES)
        yl = y_l[ky:ky + th].reshape(th * wb, LANES)
        yr = y_r[ky:ky + th].reshape(th * wb, LANES)
        acc = acc + jnp.dot(yc, a_ref[3 * ky + 0], preferred_element_type=jnp.float32)
        acc = acc + jnp.dot(yl, a_ref[3 * ky + 1], preferred_element_type=jnp.float32)
        acc = acc + jnp.dot(yr, a_ref[3 * ky + 2], preferred_element_type=jnp.float32)

    # ---- torch.round(torch.clip(out, 0, 255)).type(torch.uint8) -------------
    out = jnp.round(jnp.clip(acc, 0.0, 255.0))
    o_ref[0] = out.astype(jnp.int32).astype(jnp.uint8)


def _pack_weights(params):
    """Fold the 1x1 chain and build pixel-packed (128,128) weight matrices."""
    (w11, b11), (w12, b12), (w13, b13), (w14, b14), (w3, b3) = [
        (np.asarray(w, np.float64), np.asarray(b, np.float64)) for (w, b) in params]

    # y = x @ M_eff + b_eff   (row-vector convention), exact because the chain
    # of 1x1 convs has no nonlinearity.
    A11, A12 = w11[:, :, 0, 0].T, w12[:, :, 0, 0].T
    A13, A14 = w13[:, :, 0, 0].T, w14[:, :, 0, 0].T
    M_eff = A11 @ A12 @ A13 + A14                       # (3, 10)
    b_eff = b11 @ A12 @ A13 + b12 @ A13 + b13 + b14     # (10,)

    # Packed fused 1x1: 8-way block-diagonal (128,128); row 3 of each 16x16
    # block holds the bias, driven by the dummy ones-channel of the input.
    Mp = np.zeros((CP, CP))
    Mp[:3, :10] = M_eff
    Mp[3, :10] = b_eff
    w1_block = np.kron(np.eye(G), Mp)                   # (128, 128)

    # 3x3 conv taps -> 9 (128,128) matrices.  P[ky, kx, ci, co] = w3[co, ci, ky, kx]
    P = np.zeros((3, 3, CP, CP))
    P[:, :, :10, :12] = np.transpose(w3, (2, 3, 1, 0))
    e70 = np.zeros((G, G)); e70[G - 1, 0] = 1.0         # src group 7 -> out group 0
    e07 = np.zeros((G, G)); e07[0, G - 1] = 1.0         # src group 0 -> out group 7
    a_list = []
    for ky in range(3):
        a_c = sum(np.kron(np.eye(G, k=-(kx - 1)), P[ky, kx]) for kx in range(3))
        a_list += [a_c,
                   np.kron(e70, P[ky, 0]),              # left-neighbour pixel block
                   np.kron(e07, P[ky, 2])]              # right-neighbour pixel block
    a_stack = np.stack(a_list)                          # (9, 128, 128)

    b3p = np.zeros((CP,)); b3p[:12] = b3
    b3p = np.tile(b3p, G)[None, :]                      # (1, 128)

    return (jnp.asarray(w1_block, jnp.float32),
            jnp.asarray(a_stack, jnp.float32),
            jnp.asarray(b3p, jnp.float32))


def run_model(x_nchw, params, tile_h=16):
    n, cin, H, W = x_nchw.shape
    assert n == 1 and cin == 3
    w1_block, a_stack, b3p = _pack_weights(params)

    # ---- pack the input: lane = 16*p + c, 8 pixels per 128 lanes; channel 3
    #      is an all-ones bias channel (0 at padding -> exact zero padding) ---
    x = x_nchw.astype(jnp.float32)[0].transpose(1, 2, 0)              # (H, W, 3)
    x = jnp.concatenate(
        [x, jnp.ones((H, W, 1), jnp.float32),
         jnp.zeros((H, W, CP - 4), jnp.float32)], axis=-1)            # (H, W, 16)
    wb = ((W + G - 1) // G + 7) // 8 * 8        # pixel blocks, mult of 8 sublanes
    wp = wb * G
    x = jnp.pad(x, ((0, 0), (0, wp - W), (0, 0)))
    x = x.reshape(H, wb, LANES)                                        # (H, wb, 128)

    nt = (H + tile_h - 1) // tile_h
    hp = nt * tile_h
    x = jnp.pad(x, ((1, hp - H + 1), (0, 0), (0, 0)))                  # top/bottom halo
    idx = jnp.arange(nt)[:, None] * tile_h + jnp.arange(tile_h + 2)[None, :]
    x_tiles = x[idx]                                                   # (nt, th+2, wb, 128)

    out_packed = pl.pallas_call(
        _sr_kernel,
        out_shape=jax.ShapeDtypeStruct((nt, tile_h * wb, LANES), jnp.uint8),
        grid=(nt,),
        in_specs=[
            pl.BlockSpec((1, tile_h + 2, wb, LANES), lambda i: (i, 0, 0, 0)),
            pl.BlockSpec((LANES, LANES), lambda i: (0, 0)),
            pl.BlockSpec((9, LANES, LANES), lambda i: (0, 0, 0)),
            pl.BlockSpec((1, LANES), lambda i: (0, 0)),
        ],
        out_specs=pl.BlockSpec((1, tile_h * wb, LANES), lambda i: (i, 0, 0)),
        scratch_shapes=[pltpu.VMEM((tile_h + 2, wb + 2 * G, LANES), jnp.float32)],
        compiler_params=pltpu.CompilerParams(
            dimension_semantics=("parallel",),
            vmem_limit_bytes=48 * 1024 * 1024),
    )(x_tiles, w1_block, a_stack, b3p)

    # ---- unpack + PixelShuffle(2) + permute (pure uint8 layout glue) --------
    k = out_packed.reshape(nt * tile_h, wb, G, CP)[:H, :, :, :12]
    k = k.reshape(H, wp, 12)[:, :W, :]                                 # (H, W, 12)
    k = k.reshape(H, W, 3, 2, 2)
    # reference hardcodes .view(2160, 3840, 3); generalized to (2H, 2W, 3)
    img = jnp.transpose(k, (0, 3, 1, 4, 2)).reshape(2 * H, 2 * W, 3)
    return img


def ref_model(x_nchw, params):
    """Pure-JAX reference of the torch forward (f32, highest precision)."""
    (w11, b11), (w12, b12), (w13, b13), (w14, b14), (w3, b3) = params
    hi = jax.lax.Precision.HIGHEST

    def conv(inp, w, b, pad):
        y = jax.lax.conv_general_dilated(
            inp, w, window_strides=(1, 1), padding=pad,
            dimension_numbers=("NCHW", "OIHW", "NCHW"), precision=hi)
        return y + b.reshape(1, -1, 1, 1)

    x = x_nchw.astype(jnp.float32)
    h = conv(x, w11, b11, "VALID")
    h = conv(h, w12, b12, "VALID")
    y = conv(h, w13, b13, "VALID") + conv(x, w14, b14, "VALID")
    y = conv(y, w3, b3, [(1, 1), (1, 1)])
    n, _, H, W = y.shape                                     # channels == 12
    y = y.reshape(n, 3, 2, 2, H, W)
    y = jnp.transpose(y, (0, 1, 4, 2, 5, 3)).reshape(n, 3, 2 * H, 2 * W)
    y = jnp.round(jnp.clip(y, 0.0, 255.0)).astype(jnp.uint8)
    return jnp.transpose(y, (0, 2, 3, 1))[0]                 # (2H, 2W, 3)


def init_params(key):
    ks = jax.random.split(key, 5)

    def conv_p(k, cout, cin, kh, kw):
        k1, k2 = jax.random.split(k)
        fan_in = cin * kh * kw
        bound = 1.0 / (fan_in ** 0.5)
        w = jax.random.uniform(k1, (cout, cin, kh, kw), jnp.float32, -bound, bound)
        b = jax.random.uniform(k2, (cout,), jnp.float32, -bound, bound)
        return w, b

    return [conv_p(ks[0], 10, 3, 1, 1),
            conv_p(ks[1], 25, 10, 1, 1),
            conv_p(ks[2], 10, 25, 1, 1),
            conv_p(ks[3], 10, 3, 1, 1),
            conv_p(ks[4], 12, 10, 3, 3)]


if __name__ == "__main__":
    key = jax.random.PRNGKey(0)
    kx, kp = jax.random.split(key)
    H, W = 40, 96                      # exercises both row-tile and width padding
    x = jax.random.uniform(kx, (1, 3, H, W), jnp.float32, 0.0, 255.0)
    params = init_params(kp)

    out = jax.block_until_ready(run_model(x, params))
    assert out.shape == (2 * H, 2 * W, 3) and out.dtype == jnp.uint8

    ref = jax.block_until_ready(ref_model(x, params))
    diff = int(jnp.max(jnp.abs(out.astype(jnp.int32) - ref.astype(jnp.int32))))
    assert diff <= 2, f"mismatch vs reference: max |diff| = {diff}"
    print("KERNEL_OK")
</pallas_src>

<mosaic_0001>
module attributes {stable_mosaic.version = 11 : i64} {
  func.func @_sr_kernel(%arg0: i32, %arg1: memref<1x18x16x128xf32, #tpu.memory_space<vmem>>, %arg2: memref<128x128xf32, #tpu.memory_space<vmem>>, %arg3: memref<9x128x128xf32, #tpu.memory_space<vmem>>, %arg4: memref<1x128xf32, #tpu.memory_space<vmem>>, %arg5: memref<1x256x128xi8, #tpu.memory_space<vmem>>, %arg6: memref<18x32x128xf32, #tpu.memory_space<vmem>>) attributes {dimension_semantics = [#tpu.dimension_semantics<parallel>], iteration_bounds = array<i64: 3>, scalar_prefetch = 0 : i64, scratch_operands = 1 : i64, tpu.core_type = #tpu.core_type<tc>, window_params = [{transform_indices = @transform_0, window_bounds = array<i64: 1, 18, 16, 128>}, {pipeline_mode = #tpu.pipeline_mode<synchronous>, transform_indices = @transform_1, window_bounds = array<i64: 128, 128>}, {pipeline_mode = #tpu.pipeline_mode<synchronous>, transform_indices = @transform_2, window_bounds = array<i64: 9, 128, 128>}, {pipeline_mode = #tpu.pipeline_mode<synchronous>, transform_indices = @transform_3, window_bounds = array<i64: 1, 128>}, {transform_indices = @transform_4, window_bounds = array<i64: 1, 256, 128>}]} {
    %c0 = arith.constant 0 : index
    %c0_0 = arith.constant 0 : index
    %c0_1 = arith.constant 0 : index
    %c0_2 = arith.constant 0 : index
    %0 = vector.load %arg1[%c0, %c0_0, %c0_1, %c0_2] : memref<1x18x16x128xf32, #tpu.memory_space<vmem>>, vector<1x18x16x128xf32>
    %1 = vector.shape_cast %0 : vector<1x18x16x128xf32> to vector<18x16x128xf32>
    %2 = vector.shape_cast %1 : vector<18x16x128xf32> to vector<288x128xf32>
    %c0_3 = arith.constant 0 : index
    %c0_4 = arith.constant 0 : index
    %3 = vector.load %arg2[%c0_3, %c0_4] : memref<128x128xf32, #tpu.memory_space<vmem>>, vector<128x128xf32>
    %cst = arith.constant dense<0.000000e+00> : vector<288x128xf32>
    %4 = tpu.matmul %2, %3, %cst {dimension_numbers = #tpu.dot_dimension_numbers<[1], [0], [0], [1], [0, 0, 1, 1], [], []>} : vector<288x128xf32>, vector<128x128xf32>, vector<288x128xf32> -> vector<288x128xf32>
    %5 = vector.shape_cast %4 : vector<288x128xf32> to vector<18x16x128xf32>
    %cst_5 = arith.constant 0.000000e+00 : f32
    %6 = vector.broadcast %cst_5 : f32 to vector<18x8x128xf32>
    %c0_6 = arith.constant 0 : index
    %c0_7 = arith.constant 0 : index
    %c0_8 = arith.constant 0 : index
    %7 = vector.load %arg6[%c0_6, %c0_7, %c0_8] : memref<18x32x128xf32, #tpu.memory_space<vmem>>, vector<18x8x128xf32>
    tpu.vector_store %arg6[%c0_6, %c0_7, %c0_8], %6 {strides = array<i32>} : memref<18x32x128xf32, #tpu.memory_space<vmem>>, vector<18x8x128xf32>,
    %cst_9 = arith.constant 0.000000e+00 : f32
    %8 = vector.broadcast %cst_9 : f32 to vector<18x8x128xf32>
    %c0_10 = arith.constant 0 : index
    %c24 = arith.constant 24 : index
    %c0_11 = arith.constant 0 : index
    %9 = vector.load %arg6[%c0_10, %c24, %c0_11] : memref<18x32x128xf32, #tpu.memory_space<vmem>>, vector<18x8x128xf32>
    tpu.vector_store %arg6[%c0_10, %c24, %c0_11], %8 {strides = array<i32>} : memref<18x32x128xf32, #tpu.memory_space<vmem>>, vector<18x8x128xf32>,
    %c0_12 = arith.constant 0 : index
    %c8 = arith.constant 8 : index
    %c0_13 = arith.constant 0 : index
    %10 = vector.load %arg6[%c0_12, %c8, %c0_13] : memref<18x32x128xf32, #tpu.memory_space<vmem>>, vector<18x16x128xf32>
    tpu.vector_store %arg6[%c0_12, %c8, %c0_13], %5 {strides = array<i32>} : memref<18x32x128xf32, #tpu.memory_space<vmem>>, vector<18x16x128xf32>,
    %c0_14 = arith.constant 0 : index
    %c7 = arith.constant 7 : index
    %c0_15 = arith.constant 0 : index
    %11 = vector.load %arg6[%c0_14, %c7, %c0_15] : memref<18x32x128xf32, #tpu.memory_space<vmem>>, vector<18x16x128xf32>
    %c0_16 = arith.constant 0 : index
    %c9 = arith.constant 9 : index
    %c0_17 = arith.constant 0 : index
    %12 = vector.load %arg6[%c0_16, %c9, %c0_17] : memref<18x32x128xf32, #tpu.memory_space<vmem>>, vector<18x16x128xf32>
    %c0_18 = arith.constant 0 : index
    %c0_19 = arith.constant 0 : index
    %13 = vector.load %arg4[%c0_18, %c0_19] : memref<1x128xf32, #tpu.memory_space<vmem>>, vector<1x128xf32>
    %14 = vector.shape_cast %13 : vector<1x128xf32> to vector<1x128xf32>
    %15 = vector.broadcast %14 : vector<1x128xf32> to vector<256x128xf32>
    %16 = vector.extract_strided_slice %5 {offsets = [0, 0, 0], sizes = [16, 16, 128], strides = [1, 1, 1]} : vector<18x16x128xf32> to vector<16x16x128xf32>
    %17 = vector.shape_cast %16 : vector<16x16x128xf32> to vector<256x128xf32>
    %18 = vector.extract_strided_slice %11 {offsets = [0, 0, 0], sizes = [16, 16, 128], strides = [1, 1, 1]} : vector<18x16x128xf32> to vector<16x16x128xf32>
    %19 = vector.shape_cast %18 : vector<16x16x128xf32> to vector<256x128xf32>
    %20 = vector.extract_strided_slice %12 {offsets = [0, 0, 0], sizes = [16, 16, 128], strides = [1, 1, 1]} : vector<18x16x128xf32> to vector<16x16x128xf32>
    %21 = vector.shape_cast %20 : vector<16x16x128xf32> to vector<256x128xf32>
    %c0_20 = arith.constant 0 : index
    %c0_21 = arith.constant 0 : index
    %c0_22 = arith.constant 0 : index
    %22 = vector.load %arg3[%c0_20, %c0_21, %c0_22] : memref<9x128x128xf32, #tpu.memory_space<vmem>>, vector<1x128x128xf32>
    %23 = vector.shape_cast %22 : vector<1x128x128xf32> to vector<128x128xf32>
    %cst_23 = arith.constant dense<0.000000e+00> : vector<256x128xf32>
    %24 = tpu.matmul %17, %23, %cst_23 {dimension_numbers = #tpu.dot_dimension_numbers<[1], [0], [0], [1], [0, 0, 1, 1], [], []>} : vector<256x128xf32>, vector<128x128xf32>, vector<256x128xf32> -> vector<256x128xf32>
    %25 = arith.addf %15, %24 : vector<256x128xf32>
    %c1 = arith.constant 1 : index
    %c0_24 = arith.constant 0 : index
    %c0_25 = arith.constant 0 : index
    %26 = vector.load %arg3[%c1, %c0_24, %c0_25] : memref<9x128x128xf32, #tpu.memory_space<vmem>>, vector<1x128x128xf32>
    %27 = vector.shape_cast %26 : vector<1x128x128xf32> to vector<128x128xf32>
    %cst_26 = arith.constant dense<0.000000e+00> : vector<256x128xf32>
    %28 = tpu.matmul %19, %27, %cst_26 {dimension_numbers = #tpu.dot_dimension_numbers<[1], [0], [0], [1], [0, 0, 1, 1], [], []>} : vector<256x128xf32>, vector<128x128xf32>, vector<256x128xf32> -> vector<256x128xf32>
    %29 = arith.addf %25, %28 : vector<256x128xf32>
    %c2 = arith.constant 2 : index
    %c0_27 = arith.constant 0 : index
    %c0_28 = arith.constant 0 : index
    %30 = vector.load %arg3[%c2, %c0_27, %c0_28] : memref<9x128x128xf32, #tpu.memory_space<vmem>>, vector<1x128x128xf32>
    %31 = vector.shape_cast %30 : vector<1x128x128xf32> to vector<128x128xf32>
    %cst_29 = arith.constant dense<0.000000e+00> : vector<256x128xf32>
    %32 = tpu.matmul %21, %31, %cst_29 {dimension_numbers = #tpu.dot_dimension_numbers<[1], [0], [0], [1], [0, 0, 1, 1], [], []>} : vector<256x128xf32>, vector<128x128xf32>, vector<256x128xf32> -> vector<256x128xf32>
    %33 = arith.addf %29, %32 : vector<256x128xf32>
    %34 = vector.extract_strided_slice %5 {offsets = [1, 0, 0], sizes = [16, 16, 128], strides = [1, 1, 1]} : vector<18x16x128xf32> to vector<16x16x128xf32>
    %35 = vector.shape_cast %34 : vector<16x16x128xf32> to vector<256x128xf32>
    %36 = vector.extract_strided_slice %11 {offsets = [1, 0, 0], sizes = [16, 16, 128], strides = [1, 1, 1]} : vector<18x16x128xf32> to vector<16x16x128xf32>
    %37 = vector.shape_cast %36 : vector<16x16x128xf32> to vector<256x128xf32>
    %38 = vector.extract_strided_slice %12 {offsets = [1, 0, 0], sizes = [16, 16, 128], strides = [1, 1, 1]} : vector<18x16x128xf32> to vector<16x16x128xf32>
    %39 = vector.shape_cast %38 : vector<16x16x128xf32> to vector<256x128xf32>
    %c3 = arith.constant 3 : index
    %c0_30 = arith.constant 0 : index
    %c0_31 = arith.constant 0 : index
    %40 = vector.load %arg3[%c3, %c0_30, %c0_31] : memref<9x128x128xf32, #tpu.memory_space<vmem>>, vector<1x128x128xf32>
    %41 = vector.shape_cast %40 : vector<1x128x128xf32> to vector<128x128xf32>
    %cst_32 = arith.constant dense<0.000000e+00> : vector<256x128xf32>
    %42 = tpu.matmul %35, %41, %cst_32 {dimension_numbers = #tpu.dot_dimension_numbers<[1], [0], [0], [1], [0, 0, 1, 1], [], []>} : vector<256x128xf32>, vector<128x128xf32>, vector<256x128xf32> -> vector<256x128xf32>
    %43 = arith.addf %33, %42 : vector<256x128xf32>
    %c4 = arith.constant 4 : index
    %c0_33 = arith.constant 0 : index
    %c0_34 = arith.constant 0 : index
    %44 = vector.load %arg3[%c4, %c0_33, %c0_34] : memref<9x128x128xf32, #tpu.memory_space<vmem>>, vector<1x128x128xf32>
    %45 = vector.shape_cast %44 : vector<1x128x128xf32> to vector<128x128xf32>
    %cst_35 = arith.constant dense<0.000000e+00> : vector<256x128xf32>
    %46 = tpu.matmul %37, %45, %cst_35 {dimension_numbers = #tpu.dot_dimension_numbers<[1], [0], [0], [1], [0, 0, 1, 1], [], []>} : vector<256x128xf32>, vector<128x128xf32>, vector<256x128xf32> -> vector<256x128xf32>
    %47 = arith.addf %43, %46 : vector<256x128xf32>
    %c5 = arith.constant 5 : index
    %c0_36 = arith.constant 0 : index
    %c0_37 = arith.constant 0 : index
    %48 = vector.load %arg3[%c5, %c0_36, %c0_37] : memref<9x128x128xf32, #tpu.memory_space<vmem>>, vector<1x128x128xf32>
    %49 = vector.shape_cast %48 : vector<1x128x128xf32> to vector<128x128xf32>
    %cst_38 = arith.constant dense<0.000000e+00> : vector<256x128xf32>
    %50 = tpu.matmul %39, %49, %cst_38 {dimension_numbers = #tpu.dot_dimension_numbers<[1], [0], [0], [1], [0, 0, 1, 1], [], []>} : vector<256x128xf32>, vector<128x128xf32>, vector<256x128xf32> -> vector<256x128xf32>
    %51 = arith.addf %47, %50 : vector<256x128xf32>
    %52 = vector.extract_strided_slice %5 {offsets = [2, 0, 0], sizes = [16, 16, 128], strides = [1, 1, 1]} : vector<18x16x128xf32> to vector<16x16x128xf32>
    %53 = vector.shape_cast %52 : vector<16x16x128xf32> to vector<256x128xf32>
    %54 = vector.extract_strided_slice %11 {offsets = [2, 0, 0], sizes = [16, 16, 128], strides = [1, 1, 1]} : vector<18x16x128xf32> to vector<16x16x128xf32>
    %55 = vector.shape_cast %54 : vector<16x16x128xf32> to vector<256x128xf32>
    %56 = vector.extract_strided_slice %12 {offsets = [2, 0, 0], sizes = [16, 16, 128], strides = [1, 1, 1]} : vector<18x16x128xf32> to vector<16x16x128xf32>
    %57 = vector.shape_cast %56 : vector<16x16x128xf32> to vector<256x128xf32>
    %c6 = arith.constant 6 : index
    %c0_39 = arith.constant 0 : index
    %c0_40 = arith.constant 0 : index
    %58 = vector.load %arg3[%c6, %c0_39, %c0_40] : memref<9x128x128xf32, #tpu.memory_space<vmem>>, vector<1x128x128xf32>
    %59 = vector.shape_cast %58 : vector<1x128x128xf32> to vector<128x128xf32>
    %cst_41 = arith.constant dense<0.000000e+00> : vector<256x128xf32>
    %60 = tpu.matmul %53, %59, %cst_41 {dimension_numbers = #tpu.dot_dimension_numbers<[1], [0], [0], [1], [0, 0, 1, 1], [], []>} : vector<256x128xf32>, vector<128x128xf32>, vector<256x128xf32> -> vector<256x128xf32>
    %61 = arith.addf %51, %60 : vector<256x128xf32>
    %c7_42 = arith.constant 7 : index
    %c0_43 = arith.constant 0 : index
    %c0_44 = arith.constant 0 : index
    %62 = vector.load %arg3[%c7_42, %c0_43, %c0_44] : memref<9x128x128xf32, #tpu.memory_space<vmem>>, vector<1x128x128xf32>
    %63 = vector.shape_cast %62 : vector<1x128x128xf32> to vector<128x128xf32>
    %cst_45 = arith.constant dense<0.000000e+00> : vector<256x128xf32>
    %64 = tpu.matmul %55, %63, %cst_45 {dimension_numbers = #tpu.dot_dimension_numbers<[1], [0], [0], [1], [0, 0, 1, 1], [], []>} : vector<256x128xf32>, vector<128x128xf32>, vector<256x128xf32> -> vector<256x128xf32>
    %65 = arith.addf %61, %64 : vector<256x128xf32>
    %c8_46 = arith.constant 8 : index
    %c0_47 = arith.constant 0 : index
    %c0_48 = arith.constant 0 : index
    %66 = vector.load %arg3[%c8_46, %c0_47, %c0_48] : memref<9x128x128xf32, #tpu.memory_space<vmem>>, vector<1x128x128xf32>
    %67 = vector.shape_cast %66 : vector<1x128x128xf32> to vector<128x128xf32>
    %cst_49 = arith.constant dense<0.000000e+00> : vector<256x128xf32>
    %68 = tpu.matmul %57, %67, %cst_49 {dimension_numbers = #tpu.dot_dimension_numbers<[1], [0], [0], [1], [0, 0, 1, 1], [], []>} : vector<256x128xf32>, vector<128x128xf32>, vector<256x128xf32> -> vector<256x128xf32>
    %69 = arith.addf %65, %68 : vector<256x128xf32>
    %cst_50 = arith.constant 0.000000e+00 : f32
    %cst_51 = arith.constant 2.550000e+02 : f32
    %70 = vector.broadcast %cst_50 : f32 to vector<256x128xf32>
    %71 = arith.maximumf %70, %69 : vector<256x128xf32>
    %72 = vector.broadcast %cst_51 : f32 to vector<256x128xf32>
    %73 = arith.minimumf %72, %71 : vector<256x128xf32>
    %74 = math.roundeven %73 : vector<256x128xf32>
    %75 = arith.fptosi %74 : vector<256x128xf32> to vector<256x128xi32>
    %76 = arith.trunci %75 : vector<256x128xi32> to vector<256x128xi8>
    %c0_52 = arith.constant 0 : index
    %c0_53 = arith.constant 0 : index
    %c0_54 = arith.constant 0 : index
    %77 = vector.load %arg5[%c0_52, %c0_53, %c0_54] : memref<1x256x128xi8, #tpu.memory_space<vmem>>, vector<1x256x128xi8>
    %78 = vector.shape_cast %77 : vector<1x256x128xi8> to vector<256x128xi8>
    %79 = vector.shape_cast %76 : vector<256x128xi8> to vector<1x256x128xi8>
    tpu.vector_store %arg5[%c0_52, %c0_53, %c0_54], %79 {strides = array<i32>} : memref<1x256x128xi8, #tpu.memory_space<vmem>>, vector<1x256x128xi8>,
    return
  }
  func.func @transform_0(%arg0: i32) -> (i32, i32, i32, i32) {
    %c0_i32 = arith.constant 0 : i32
    %c0_i32_0 = arith.constant 0 : i32
    %c0_i32_1 = arith.constant 0 : i32
    %c0_i32_2 = arith.constant 0 : i32
    return %arg0, %c0_i32, %c0_i32_0, %c0_i32_1 : i32, i32, i32, i32
  }
  func.func @transform_1(%arg0: i32) -> (i32, i32) {
    %c0_i32 = arith.constant 0 : i32
    %c0_i32_0 = arith.constant 0 : i32
    %c0_i32_1 = arith.constant 0 : i32
    return %c0_i32, %c0_i32_0 : i32, i32
  }
  func.func @transform_2(%arg0: i32) -> (i32, i32, i32) {
    %c0_i32 = arith.constant 0 : i32
    %c0_i32_0 = arith.constant 0 : i32
    %c0_i32_1 = arith.constant 0 : i32
    %c0_i32_2 = arith.constant 0 : i32
    return %c0_i32, %c0_i32_0, %c0_i32_1 : i32, i32, i32
  }
  func.func @transform_3(%arg0: i32) -> (i32, i32) {
    %c0_i32 = arith.constant 0 : i32
    %c0_i32_0 = arith.constant 0 : i32
    %c0_i32_1 = arith.constant 0 : i32
    return %c0_i32, %c0_i32_0 : i32, i32
  }
  func.func @transform_4(%arg0: i32) -> (i32, i32, i32) {
    %c0_i32 = arith.constant 0 : i32
    %c0_i32_0 = arith.constant 0 : i32
    %c0_i32_1 = arith.constant 0 : i32
    return %arg0, %c0_i32, %c0_i32_0 : i32, i32, i32
  }
}

</mosaic_0001>

<bundles_post_ra>
// kernel: tpu_custom_call.1
= control target key start
LH: loop header
LB: loop body
LE: loop exit
PB: predicated region body
PF: predicated region fallthrough
CT: control target
= control target key end

     0   :  { %9 = vsyncpa [#allocation4], 0  ;;  %s3909_s0 = inlined_call_operand.hbm [shape: f32[3,18,16,128], index: 0, kind: input, shape index: {}]   ;;  %s3910_s1 = inlined_call_operand.hbm [shape: f32[128,128], index: 1, kind: input, shape index: {}]   ;;  %s3911_s2 = inlined_call_operand.hbm [shape: f32[9,128,128], index: 2, kind: input, shape index: {}]   ;;  %s3912_s3 = inlined_call_operand.vmem [shape: f32[1,128], index: 3, kind: input, shape index: {}]   ;;  %s3913_s4 = inlined_call_operand.hbm [shape: u8[3,256,128], index: 4, kind: output, shape index: {}]  }
   0x1   :  { %11 = vsyncpa [#allocation4 + $0x1], 0 }
   0x2   :  { %12 = vsyncpa [#allocation7], 0 }
   0x3   :  { %13 = vsyncpa [#allocation5], 0 }
   0x4   :  { %15 = vsyncpa [#allocation5 + $0x1], 0  ;;  %s2718_s15 = smov 0   ;;  %s2720_s16 = smov 0  }
   0x5   :  { %s2722_s17 = smov 0   ;;  %s2724_s18 = smov 0  }
   0x6 LB: > { %s2739_s19 = sadd.s32 4294967295, %s2684_s18   ;;  %s2269_s20 = sadd.s32 4294967294, %s2684_s18   ;;  %s2684_s18 = sphi %s2724_s18, %s4161_s18   ;;  %s2680_s17 = sphi %s2722_s17, %s4160_s17   ;;  %s2676_s16 = sphi %s2720_s16, %s4159_s16   ;;  %s2672_s15 = sphi %s2718_s15, %s4158_s15  }
   0x7   : > { %p41_p0 = scmp.ne.s32.totalorder %s2676_s16, %s2672_s15  ;;  %p42_p1 = scmp.eq.s32.totalorder %s2739_s19, 0 }
   0x8   : > { %p128_p2 = scmp.eq.s32.totalorder %s2739_s19, 2  ;;  %p134_p3 = scmp.eq.s32.totalorder %s2269_s20, 2 }
   0x9   : > { %p2748_p4 = por %p42_p1, %p41_p0  ;;  %p2270_p5 = scmp.ge.s32.totalorder %s2684_s18, 1 }
   0xa   : > { %p2753_p6 = por %p134_p3, %p41_p0  ;;  %p141_p7 = scmp.lt.s32.totalorder %s2684_s18, 4 }
   0xb   : > { %s152_s25 = sshll.u32 %s3910_s1, 4  ;;  %s2686_s27 = smov [#allocation6]   ;;  %s153_s25 = int_to_ptr.hbm [resolvable:$true] %s152_s25 }
   0xc   : > { %p2761_p8 = pnand %p2270_p5, %p141_p7  ;;  %s154_s28 = sshll.u32 %s2686_s27, 4  ;;  %s155_s28 = int_to_ptr.vmem [resolvable:$true] %s154_s28 }
   0xd   : > { %s166_s5 = sshll.u32 %s3911_s2, 4  ;;  %s3914_s6 = smov 128   ;;  %s167_s5 = int_to_ptr.hbm [resolvable:$true] %s166_s5 }
   0xe   : > { %p2444_p9 = pneg %p2761_p8  ;;  %s3915_s7 = smov 8  }
   0xf   : > { %s2689_s8 = smov [#allocation8]   ;;  %s2779_s10 = sadd.s32 1, %s2684_s18  }
  0x10   : > { %p2445_p10 = pnand %p2444_p9, %p42_p1  ;;  %s168_s9 = sshll.u32 %s2689_s8, 4  ;;  %s169_s9 = int_to_ptr.vmem [resolvable:$true] %s168_s9 }
  0x11   : > { %s28_s11 = sadd.s32 1, %s2680_s17  ;;  %s25_s12 = ssub.s32 %s2684_s18, %s2779_s10 }
  0x12   : > { %2447 = dma.hbm_to_vmem [thread:$0]  (!%p2445_p10), %s153_s25, 2048, %s155_s28, [#allocation7], %s3914_s6, %s3914_s6, %s3915_s7  }
  0x13   : > { %2450 = dma.hbm_to_vmem [thread:$0]  (!%p2445_p10), %s167_s5, 18432, %s169_s9, [#allocation7], %s3914_s6, %s3914_s6, %s3915_s7  }
  0x14   : > { %p35_p11 = scmp.ne.s32.totalorder %s2680_s17, %s2676_s16  ;;  %p26_p12 = scmp.eq.s32.totalorder %s25_s12, 0 }
  0x15   : > { %p36_p13 = scmp.eq.s32.totalorder %s2684_s18, 0  ;;  %p2461_p3 = scmp.lt.s32.totalorder %s2684_s18, 3 }
  0x16   : > { %p2789_p0 = por %p128_p2, %p35_p11  ;;  %s185_s20 = sand.u32 1, %s2680_s17  }
  0x17   : > { %s2795_s14 = scalar_select %p26_p12, %s2680_s17, %s28_s11  }
  0x18   : > { %p37_p5 = por %p36_p13, %p35_p11  ;;  %s2333_s23 = smul.u32 288, %s185_s20 }
  0x19   : > { %s2334_s24 = smul.u32 288, %s2684_s18  ;;  %s186_s9 = scalar_lea.sflag [#allocation4], %s185_s20 }
  0x1a   : > { %p2799_p7 = pnand %p2461_p3, %p37_p5  ;;  %s189_s30 = scalar_lea.vmem [#allocation3], %s2333_s23 }
  0x1b   : > { %s194_s29 = scalar_lea.hbm %s3909_s0, %s2334_s24  ;;  %s197_s5 = sshll.u32 %s189_s30, 4  ;;  %s198_s5 = int_to_ptr.vmem [resolvable:$true] %s197_s5 }
  0x1c   : > { %s195_s8 = sshll.u32 %s194_s29, 4  ;;  %p2588_p9 = pneg %p2799_p7  ;;  %s196_s8 = int_to_ptr.hbm [resolvable:$true] %s195_s8 }
  0x1d   : > { %s2584_s11 = sshra.s32 %s196_s8, 4  ;;  %s2591_s27 = scalar_lea.hbm %s3909_s0, 864  ;;  %s2585_s11 = int_to_ptr.hbm [resolvable:$true] %s2584_s11 }
  0x1e   : > { %s2586_s12 = scalar_lea.hbm %s2585_s11, 288  ;;  %p2592_p12 = scmp.lt.s32.totalorder %s2585_s11, %s3909_s0 }
  0x1f   : > { %p2587_p2 = scmp.ne.s32.totalorder %s2585_s11, %s2586_s12  ;;  %p2593_p13 = scmp.lt.s32.totalorder %s2591_s27, %s2586_s12 }
  0x21   : > { %p2589_p10 = pnand %p2588_p9, %p2587_p2  ;;  %p2594_p3 = por %p2593_p13, %p2592_p12 }
  0x23   : > { %p2590_p11 = pneg %p2589_p10 }
  0x25   : > { %p2595_p5 = pnand %p2594_p3, %p2590_p11 }
  0x27   : > { %2598 = shalt.err (!%p2595_p5)
}
  0x28   : > { %s3978_s20 = smov 8   ;;  %s3979_s23 = smov 128  }
  0x29   : > { %2454 = dma.hbm_to_vmem [thread:$0]  (!%p2799_p7), %s196_s8, 4608, %s198_s5, %s186_s9, %s3979_s23, %s3979_s23, %s3978_s20  }
  0x2a   : > { %209 = sbr.rel (%p2761_p8) target bundleno = 1140 (0x474), region = 36 }
  0x2f   : > { %s2822_s6 = sand.u32 1, %s2676_s16  }
  0x30   : > { %s2335_s7 = smul.u32 288, %s2822_s6  ;;  %s212_s29 = scalar_lea.sflag [#allocation4], %s2822_s6 }
  0x32   : > { %s2826_s30 = scalar_lea.vmem [#allocation3], %s2335_s7 }
  0x33   : > { %2659 = dma.done.wait (%p2748_p4), %s212_s29, 4608  }
  0x34   : > { %2661 = vsyncadd (%p2748_p4), %s212_s29, 4294962688 }
  0x35   : > { %2663 = dma.done.wait (%p42_p1), [#allocation7], 20480  }
  0x36   : > { %2665 = vsyncadd (%p42_p1), [#allocation7], 4294946816  ;;  %v302_v0 = vld [vmem:[#allocation6 + $0x78] sm:$0xff]  ;;  %v301_v1 = vld [vmem:[#allocation6 + $0x70] sm:$0xff]  ;;  %v2690_v45 = vmov 0.0   ;;  %s2278_s25 = sshll.u32 %s2822_s6, 6 }
  0x37   : > { %303 = vmatpush.msra.mxu0 %v302_v0  ;;  %v300_v2 = vld [vmem:[#allocation6 + $0x68] sm:$0xff]  ;;  %v299_v3 = vld [vmem:[#allocation6 + $0x60] sm:$0xff]  ;;  %v298_v4 = vld [vmem:[#allocation6 + $0x58] sm:$0xff]  ;;  %436 = vst [vmem:[#allocation2 + $0x100] sm:$0xff] %v2690_v45  ;;  %s3800_s5 = scalar_lea.vmem [#allocation9], %s2278_s25  ;;  %s2284_s8 = sshll.u32 %s2739_s19, 6 }
  0x38   : > { %v297_v5 = vld [vmem:[#allocation6 + $0x50] sm:$0xff]  ;;  %v296_v6 = vld [vmem:[#allocation6 + $0x48] sm:$0xff]  ;;  %v295_v7 = vld [vmem:[#allocation6 + $0x40] sm:$0xff]  ;;  %428 = vst [vmem:[#allocation2] sm:$0xff] %v2690_v45  ;;  %s2173_s12 = scalar_lea.hbm %s3913_s4, %s2284_s8  ;;  %s2174_s27 = sshll.u32 %s3800_s5, 4  ;;  %s2175_s27 = int_to_ptr.vmem [resolvable:$true] %s2174_s27 }
  0x39   : > { %304 = vmatpush.msra.mxu0 %v301_v1  ;;  %v294_v8 = vld [vmem:[#allocation6 + $0x38] sm:$0xff]  ;;  %v293_v9 = vld [vmem:[#allocation6 + $0x30] sm:$0xff]  ;;  %v292_v10 = vld [vmem:[#allocation6 + $0x28] sm:$0xff]  ;;  %429 = vst [vmem:[#allocation2 + $0x20] sm:$0xff] %v2690_v45  ;;  %s2176_s28 = sshll.u32 %s2173_s12, 4  ;;  %s2162_s24 = scalar_lea.sflag [#allocation5], %s2822_s6  ;;  %s2177_s28 = int_to_ptr.hbm [resolvable:$true] %s2176_s28 }
  0x3a   : > { %v291_v11 = vld [vmem:[#allocation6 + $0x20] sm:$0xff]  ;;  %v290_v12 = vld [vmem:[#allocation6 + $0x18] sm:$0xff]  ;;  %v289_v13 = vld [vmem:[#allocation6 + $0x10] sm:$0xff]  ;;  %430 = vst [vmem:[#allocation2 + $0x40] sm:$0xff] %v2690_v45  ;;  %s2628_s20 = sshra.s32 %s2177_s28, 4  ;;  %s2634_s29 = scalar_lea.hbm %s3913_s4, 192  ;;  %s2629_s20 = int_to_ptr.hbm [resolvable:$true] %s2628_s20 }
  0x3b   : > { %305 = vmatpush.msra.mxu0 %v300_v2  ;;  %v288_v14 = vld [vmem:[#allocation6 + $0x8] sm:$0xff]  ;;  %v287_v15 = vld [vmem:[#allocation6] sm:$0xff]  ;;  %v253_v18 = vld [vmem:[%s2826_s30 + $0x10] sm:$0xff]  ;;  %431 = vst [vmem:[#allocation2 + $0x60] sm:$0xff] %v2690_v45  ;;  %s2630_s19 = scalar_lea.hbm %s2629_s20, 64  ;;  %p2635_p7 = scmp.lt.s32.totalorder %s2629_s20, %s3913_s4 }
  0x3c   : > { %v251_v16 = vld [vmem:[%s2826_s30] sm:$0xff]  ;;  %v252_v17 = vld [vmem:[%s2826_s30 + $0x8] sm:$0xff]  ;;  %v254_v19 = vld [vmem:[%s2826_s30 + $0x18] sm:$0xff]  ;;  %432 = vst [vmem:[#allocation2 + $0x80] sm:$0xff] %v2690_v45  ;;  %p2631_p1 = scmp.ne.s32.totalorder %s2629_s20, %s2630_s19  ;;  %p2636_p2 = scmp.lt.s32.totalorder %s2634_s29, %s2630_s19 }
  0x3d   : > { %306 = vmatpush.msra.mxu0 %v299_v3  ;;  %v255_v20 = vld [vmem:[%s2826_s30 + $0x20] sm:$0xff]  ;;  %v256_v21 = vld [vmem:[%s2826_s30 + $0x28] sm:$0xff]  ;;  %v257_v22 = vld [vmem:[%s2826_s30 + $0x30] sm:$0xff]  ;;  %433 = vst [vmem:[#allocation2 + $0xa0] sm:$0xff] %v2690_v45 }
  0x3e   : > { %v258_v23 = vld [vmem:[%s2826_s30 + $0x38] sm:$0xff]  ;;  %v259_v25 = vld [vmem:[%s2826_s30 + $0x40] sm:$0xff]  ;;  %v590_v26 = vld [vmem:[#allocation8 + $0x70] sm:$0xff]  ;;  %434 = vst [vmem:[#allocation2 + $0xc0] sm:$0xff] %v2690_v45  ;;  %p2632_p4 = pnand %p2631_p1, %p2789_p0  ;;  %p2637_p9 = por %p2636_p2, %p2635_p7 }
  0x3f   : > { %307 = vmatpush.msra.mxu0 %v298_v4  ;;  %v591_v24 = vld [vmem:[#allocation8 + $0x78] sm:$0xff]  ;;  %v589_v27 = vld [vmem:[#allocation8 + $0x68] sm:$0xff]  ;;  %v588_v28 = vld [vmem:[#allocation8 + $0x60] sm:$0xff]  ;;  %435 = vst [vmem:[#allocation2 + $0xe0] sm:$0xff] %v2690_v45 }
  0x40   : > { %592 = vmatpush.msra.mxu1 %v591_v24  ;;  %2285 = vmatpush.msra.mxu3 %v591_v24  ;;  %v587_v29 = vld [vmem:[#allocation8 + $0x58] sm:$0xff]  ;;  %v260_v30 = vld [vmem:[%s2826_s30 + $0x48] sm:$0xff]  ;;  %v586_v31 = vld [vmem:[#allocation8 + $0x50] sm:$0xff]  ;;  %437 = vst [vmem:[#allocation2 + $0x120] sm:$0xff] %v2690_v45  ;;  %p2633_p8 = pneg %p2632_p4 }
  0x41   : > { %308 = vmatpush.msra.mxu0 %v297_v5  ;;  %v585_v32 = vld [vmem:[#allocation8 + $0x48] sm:$0xff]  ;;  %v584_v33 = vld [vmem:[#allocation8 + $0x40] sm:$0xff]  ;;  %v583_v34 = vld [vmem:[#allocation8 + $0x38] sm:$0xff]  ;;  %438 = vst [vmem:[#allocation2 + $0x140] sm:$0xff] %v2690_v45 }
  0x42   : > { %593 = vmatpush.msra.mxu1 %v590_v26  ;;  %2286 = vmatpush.msra.mxu3 %v590_v26  ;;  %v261_v35 = vld [vmem:[%s2826_s30 + $0x50] sm:$0xff]  ;;  %v581_v37 = vld [vmem:[#allocation8 + $0x28] sm:$0xff]  ;;  %v580_v38 = vld [vmem:[#allocation8 + $0x20] sm:$0xff]  ;;  %439 = vst [vmem:[#allocation2 + $0x160] sm:$0xff] %v2690_v45  ;;  %p2638_p10 = pnand %p2637_p9, %p2633_p8 }
  0x43   : > { %309 = vmatpush.msra.mxu0 %v296_v6  ;;  %v582_v36 = vld [vmem:[#allocation8 + $0x30] sm:$0xff]  ;;  %v579_v39 = vld [vmem:[#allocation8 + $0x18] sm:$0xff]  ;;  %v577_v42 = vld [vmem:[#allocation8 + $0x8] sm:$0xff]  ;;  %440 = vst [vmem:[#allocation2 + $0x180] sm:$0xff] %v2690_v45 }
  0x44   : > { %594 = vmatpush.msra.mxu1 %v589_v27  ;;  %2287 = vmatpush.msra.mxu3 %v589_v27  ;;  %v262_v40 = vld [vmem:[%s2826_s30 + $0x58] sm:$0xff]  ;;  %v578_v41 = vld [vmem:[#allocation8 + $0x10] sm:$0xff]  ;;  %v576_v43 = vld [vmem:[#allocation8] sm:$0xff]  ;;  %441 = vst [vmem:[#allocation2 + $0x1a0] sm:$0xff] %v2690_v45 }
  0x45   : > { %310 = vmatpush.msra.mxu0 %v295_v7  ;;  %v263_v44 = vld [vmem:[%s2826_s30 + $0x60] sm:$0xff]  ;;  %v264_v46 = vld [vmem:[%s2826_s30 + $0x68] sm:$0xff]  ;;  %442 = vst [vmem:[#allocation2 + $0x1c0] sm:$0xff] %v2690_v45  ;;  %v265_v47 = vld [vmem:[%s2826_s30 + $0x70] sm:$0xff] }
  0x46   : > { %595 = vmatpush.msra.mxu1 %v588_v28  ;;  %2288 = vmatpush.msra.mxu3 %v588_v28  ;;  %443 = vst [vmem:[#allocation2 + $0x1e0] sm:$0xff] %v2690_v45  ;;  %v266_v48 = vld [vmem:[%s2826_s30 + $0x78] sm:$0xff]  ;;  %v267_v50 = vld [vmem:[%s2826_s30 + $0x80] sm:$0xff]  ;;  %v268_v52 = vld [vmem:[%s2826_s30 + $0x88] sm:$0xff] }
  0x47   : > { %311 = vmatpush.msra.mxu0 %v294_v8  ;;  %444 = vst [vmem:[#allocation2 + $0x200] sm:$0xff] %v2690_v45  ;;  %v269_v54 = vld [vmem:[%s2826_s30 + $0x90] sm:$0xff]  ;;  %v270_v56 = vld [vmem:[%s2826_s30 + $0x98] sm:$0xff]  ;;  %v271_v58 = vld [vmem:[%s2826_s30 + $0xa0] sm:$0xff] }
  0x48   : > { %596 = vmatpush.msra.mxu1 %v587_v29  ;;  %2289 = vmatpush.msra.mxu3 %v587_v29  ;;  %445 = vst [vmem:[#allocation2 + $0x220] sm:$0xff] %v2690_v45  ;;  %v272_v60 = vld [vmem:[%s2826_s30 + $0xa8] sm:$0xff]  ;;  %v273_v62 = vld [vmem:[%s2826_s30 + $0xb0] sm:$0xff]  ;;  %v274_v0 = vld [vmem:[%s2826_s30 + $0xb8] sm:$0xff] }
  0x49   : > { %312 = vmatpush.msra.mxu0 %v293_v9  ;;  %446 = vst [vmem:[#allocation2 + $0x18] sm:$0xff] %v2690_v45  ;;  %v275_v2 = vld [vmem:[%s2826_s30 + $0xc0] sm:$0xff]  ;;  %v753_v3 = vld [vmem:[#allocation8 + $0xf8] sm:$0xff]  ;;  %v752_v4 = vld [vmem:[#allocation8 + $0xf0] sm:$0xff] }
  0x4a   : > { %597 = vmatpush.msra.mxu1 %v586_v31  ;;  %2290 = vmatpush.msra.mxu3 %v586_v31  ;;  %447 = vst [vmem:[#allocation2 + $0x38] sm:$0xff] %v2690_v45  ;;  %v751_v5 = vld [vmem:[#allocation8 + $0xe8] sm:$0xff]  ;;  %v750_v6 = vld [vmem:[#allocation8 + $0xe0] sm:$0xff]  ;;  %v749_v9 = vld [vmem:[#allocation8 + $0xd8] sm:$0xff] }
  0x4b   : > { %313 = vmatpush.msra.mxu0 %v292_v10  ;;  %448 = vst [vmem:[#allocation2 + $0x58] sm:$0xff] %v2690_v45  ;;  %2301 = vmatpush.msra.mxu2 %v753_v3  ;;  %v276_v8 = vld [vmem:[%s2826_s30 + $0xc8] sm:$0xff]  ;;  %v1077_v10 = vld [vmem:[#allocation8 + $0x1f8] sm:$0xff]  ;;  %v1070_v26 = vld [vmem:[#allocation8 + $0x1c0] sm:$0xff] }
  0x4c   : > { %598 = vmatpush.msra.mxu1 %v585_v32  ;;  %2291 = vmatpush.msra.mxu3 %v585_v32  ;;  %449 = vst [vmem:[#allocation2 + $0x78] sm:$0xff] %v2690_v45  ;;  %v1071_v24 = vld [vmem:[#allocation8 + $0x1c8] sm:$0xff]  ;;  %v278_v28 = vld [vmem:[%s2826_s30 + $0xd8] sm:$0xff]  ;;  %v740_v31 = vld [vmem:[#allocation8 + $0x90] sm:$0xff] }
  0x4d   : > { %314 = vmatpush.msra.mxu0 %v291_v11  ;;  %450 = vst [vmem:[#allocation2 + $0x98] sm:$0xff] %v2690_v45  ;;  %2302 = vmatpush.msra.mxu2 %v752_v4  ;;  %v748_v11 = vld [vmem:[#allocation8 + $0xd0] sm:$0xff]  ;;  %v741_v29 = vld [vmem:[#allocation8 + $0x98] sm:$0xff] }
  0x4e   : > { %599 = vmatpush.msra.mxu1 %v584_v33  ;;  %2292 = vmatpush.msra.mxu3 %v584_v33  ;;  %451 = vst [vmem:[#allocation2 + $0xb8] sm:$0xff] %v2690_v45  ;;  %v1068_v32 = vld [vmem:[#allocation8 + $0x1b0] sm:$0xff]  ;;  %v739_v33 = vld [vmem:[#allocation8 + $0x88] sm:$0xff] }
  0x4f   : > { %315 = vmatpush.msra.mxu0 %v290_v12  ;;  %452 = vst [vmem:[#allocation2 + $0xd8] sm:$0xff] %v2690_v45  ;;  %2303 = vmatpush.msra.mxu2 %v751_v5  ;;  %v1076_v12 = vld [vmem:[#allocation8 + $0x1f0] sm:$0xff] }
  0x50   : > { %600 = vmatpush.msra.mxu1 %v583_v34  ;;  %2293 = vmatpush.msra.mxu3 %v583_v34  ;;  %453 = vst [vmem:[#allocation2 + $0xf8] sm:$0xff] %v2690_v45  ;;  %v1067_v34 = vld [vmem:[#allocation8 + $0x1a8] sm:$0xff] }
  0x51   : > { %316 = vmatpush.msra.mxu0 %v289_v13  ;;  %454 = vst [vmem:[#allocation2 + $0x118] sm:$0xff] %v2690_v45  ;;  %2304 = vmatpush.msra.mxu2 %v750_v6  ;;  %v747_v13 = vld [vmem:[#allocation8 + $0xc8] sm:$0xff] }
  0x52   : > { %601 = vmatpush.msra.mxu1 %v582_v36  ;;  %2294 = vmatpush.msra.mxu3 %v582_v36  ;;  %455 = vst [vmem:[#allocation2 + $0x138] sm:$0xff] %v2690_v45  ;;  %v1066_v36 = vld [vmem:[#allocation8 + $0x1a0] sm:$0xff] }
  0x53   : > { %317 = vmatpush.msra.mxu0 %v288_v14  ;;  %456 = vst [vmem:[#allocation2 + $0x158] sm:$0xff] %v2690_v45  ;;  %2305 = vmatpush.msra.mxu2 %v749_v9  ;;  %v1075_v14 = vld [vmem:[#allocation8 + $0x1e8] sm:$0xff] }
  0x54   : > { %602 = vmatpush.msra.mxu1 %v581_v37  ;;  %2295 = vmatpush.msra.mxu3 %v581_v37  ;;  %457 = vst [vmem:[#allocation2 + $0x178] sm:$0xff] %v2690_v45 }
  0x55   : > { %318 = vmatpush.msra.mxu0 %v287_v15  ;;  %458 = vst [vmem:[#allocation2 + $0x198] sm:$0xff] %v2690_v45  ;;  %2306 = vmatpush.msra.mxu2 %v748_v11  ;;  %v746_v15 = vld [vmem:[#allocation8 + $0xc0] sm:$0xff] }
  0x56   : > { %319 = vmatmul.f32.vlgmr.msra.gmra.mxu0 %v251_v16  ;;  %603 = vmatpush.msra.mxu1 %v580_v38  ;;  %459 = vst [vmem:[#allocation2 + $0x1b8] sm:$0xff] %v2690_v45  ;;  %v1074_v16 = vld [vmem:[#allocation8 + $0x1e0] sm:$0xff] }
  0x57   : > { %2296 = vmatpush.msra.mxu3 %v580_v38  ;;  %460 = vst [vmem:[#allocation2 + $0x1d8] sm:$0xff] %v2690_v45  ;;  %754 = vmatpush.msrb.mxu0 %v753_v3  ;;  %v279_v38 = vld [vmem:[%s2826_s30 + $0xe0] sm:$0xff] }
  0x58   : > { %604 = vmatpush.msra.mxu1 %v579_v39  ;;  %461 = vst [vmem:[#allocation2 + $0x1f8] sm:$0xff] %v2690_v45  ;;  %2307 = vmatpush.msra.mxu2 %v747_v13 }
  0x59   : > { %2297 = vmatpush.msra.mxu3 %v579_v39  ;;  %462 = vst [vmem:[#allocation2 + $0x218] sm:$0xff] %v2690_v45  ;;  %755 = vmatpush.msrb.mxu0 %v752_v4  ;;  %v1065_v39 = vld [vmem:[#allocation8 + $0x198] sm:$0xff] }
  0x5a   : > { %605 = vmatpush.msra.mxu1 %v578_v41  ;;  %463 = vst [vmem:[#allocation2 + $0x238] sm:$0xff] %v2690_v45  ;;  %2308 = vmatpush.msra.mxu2 %v746_v15  ;;  %v915_v45 = vld [vmem:[#allocation8 + $0x178] sm:$0xff] }
  0x5b   : > { %2298 = vmatpush.msra.mxu3 %v578_v41  ;;  %756 = vmatpush.msrb.mxu0 %v751_v5  ;;  %v1063_v41 = vld [vmem:[#allocation8 + $0x188] sm:$0xff]  ;;  %v911_v4 = vld [vmem:[#allocation8 + $0x158] sm:$0xff]  ;;  %v1236_v5 = vld [vmem:[#allocation8 + $0x260] sm:$0xff] }
  0x5c   : > { %606 = vmatpush.msra.mxu1 %v577_v42 }
  0x5d   : > { %2299 = vmatpush.msra.mxu3 %v577_v42  ;;  %757 = vmatpush.msrb.mxu0 %v750_v6  ;;  %v1062_v42 = vld [vmem:[#allocation8 + $0x180] sm:$0xff] }
  0x5e   : > { %322 = vmatmul.f32.gmra.mxu0 %v252_v17  ;;  %607 = vmatpush.msra.mxu1 %v576_v43 }
  0x5f   : > { %2300 = vmatpush.msra.mxu3 %v576_v43  ;;  %758 = vmatpush.msrb.mxu0 %v749_v9  ;;  %v284_v9 = vld [vmem:[%s2826_s30 + $0x108] sm:$0xff] }
  0x60   : > { %1078 = vmatpush.msrb.mxu1 %v1077_v10 }
  0x61   : > { %759 = vmatpush.msrb.mxu0 %v748_v11  ;;  %916 = vmatpush.msrb.mxu3 %v915_v45  ;;  %v910_v11 = vld [vmem:[#allocation8 + $0x150] sm:$0xff] }
  0x62   : > { %1079 = vmatpush.msrb.mxu1 %v1076_v12  ;;  %v1235_v12 = vld [vmem:[#allocation8 + $0x258] sm:$0xff] }
  0x63   : > { %760 = vmatpush.msrb.mxu0 %v747_v13 }
  0x64   : > { %1080 = vmatpush.msrb.mxu1 %v1075_v14 }
  0x65   : > { %761 = vmatpush.msrb.mxu0 %v746_v15  ;;  %v285_v15 = vld [vmem:[%s2826_s30 + $0x110] sm:$0xff] }
  0x66   : > { %325 = vmatmul.f32.gmra.mxu0 %v253_v18  ;;  %v277_v18 = vld [vmem:[%s2826_s30 + $0xd0] sm:$0xff]  ;;  %1081 = vmatpush.msrb.mxu1 %v1074_v16  ;;  %v909_v16 = vld [vmem:[#allocation8 + $0x148] sm:$0xff] }
  0x6e   : > { %328 = vmatmul.f32.gmra.mxu0 %v254_v19  ;;  %v745_v19 = vld [vmem:[#allocation8 + $0xb8] sm:$0xff] }
  0x6f   : > { %2309 = vmatpush.msra.mxu2 %v745_v19  ;;  %762 = vmatpush.msrb.mxu0 %v745_v19 }
  0x76   : > { %331 = vmatmul.f32.gmra.mxu0 %v255_v20  ;;  %v1073_v20 = vld [vmem:[#allocation8 + $0x1d8] sm:$0xff] }
  0x77   : > { %1082 = vmatpush.msrb.mxu1 %v1073_v20  ;;  %v286_v20 = vld [vmem:[%s2826_s30 + $0x118] sm:$0xff] }
  0x7e   : > { %334 = vmatmul.f32.gmra.mxu0 %v256_v21  ;;  %v744_v21 = vld [vmem:[#allocation8 + $0xb0] sm:$0xff] }
  0x7f   : > { %2310 = vmatpush.msra.mxu2 %v744_v21  ;;  %763 = vmatpush.msrb.mxu0 %v744_v21  ;;  %v1234_v21 = vld [vmem:[#allocation8 + $0x250] sm:$0xff] }
  0x86   : > { %337 = vmatmul.f32.gmra.mxu0 %v257_v22  ;;  %v1072_v22 = vld [vmem:[#allocation8 + $0x1d0] sm:$0xff] }
  0x87   : > { %1083 = vmatpush.msrb.mxu1 %v1072_v22  ;;  %v908_v22 = vld [vmem:[#allocation8 + $0x140] sm:$0xff] }
  0x89   : > { %1084 = vmatpush.msrb.mxu1 %v1071_v24 }
  0x8b   : > { %1085 = vmatpush.msrb.mxu1 %v1070_v26 }
  0x8e   : > { %340 = vmatmul.f32.gmra.mxu0 %v258_v23  ;;  %v743_v23 = vld [vmem:[#allocation8 + $0xa8] sm:$0xff] }
  0x8f   : > { %2311 = vmatpush.msra.mxu2 %v743_v23  ;;  %764 = vmatpush.msrb.mxu0 %v743_v23 }
  0x96   : > { %343 = vmatmul.f32.gmra.mxu0 %v259_v25  ;;  %v742_v25 = vld [vmem:[#allocation8 + $0xa0] sm:$0xff] }
  0x97   : > { %2312 = vmatpush.msra.mxu2 %v742_v25  ;;  %765 = vmatpush.msrb.mxu0 %v742_v25  ;;  %v1233_v25 = vld [vmem:[#allocation8 + $0x248] sm:$0xff] }
  0x99   : > { %2313 = vmatpush.msra.mxu2 %v741_v29  ;;  %766 = vmatpush.msrb.mxu0 %v741_v29 }
  0x9b   : > { %2314 = vmatpush.msra.mxu2 %v740_v31  ;;  %767 = vmatpush.msrb.mxu0 %v740_v31 }
  0x9d   : > { %2315 = vmatpush.msra.mxu2 %v739_v33  ;;  %768 = vmatpush.msrb.mxu0 %v739_v33  ;;  %v1232_v33 = vld [vmem:[#allocation8 + $0x240] sm:$0xff] }
  0x9e   : > { %346 = vmatmul.f32.gmra.mxu0 %v260_v30  ;;  %v1069_v30 = vld [vmem:[#allocation8 + $0x1b8] sm:$0xff] }
  0x9f   : > { %1086 = vmatpush.msrb.mxu1 %v1069_v30 }
  0xa1   : > { %1087 = vmatpush.msrb.mxu1 %v1068_v32 }
  0xa3   : > { %1088 = vmatpush.msrb.mxu1 %v1067_v34  ;;  %v906_v34 = vld [vmem:[#allocation8 + $0x130] sm:$0xff] }
  0xa5   : > { %1089 = vmatpush.msrb.mxu1 %v1066_v36 }
  0xa6   : > { %349 = vmatmul.f32.gmra.mxu0 %v261_v35  ;;  %v738_v35 = vld [vmem:[#allocation8 + $0x80] sm:$0xff] }
  0xa7   : > { %2316 = vmatpush.msra.mxu2 %v738_v35  ;;  %1090 = vmatpush.msrb.mxu1 %v1065_v39 }
  0xa8   : > { %769 = vmatpush.msrb.mxu0 %v738_v35 }
  0xae   : > { %352 = vmatmul.f32.gmra.mxu0 %v262_v40  ;;  %v1064_v40 = vld [vmem:[#allocation8 + $0x190] sm:$0xff] }
  0xaf   : > { %1091 = vmatpush.msrb.mxu1 %v1064_v40  ;;  %v1231_v40 = vld [vmem:[#allocation8 + $0x238] sm:$0xff] }
  0xb1   : > { %1092 = vmatpush.msrb.mxu1 %v1063_v41  ;;  %v905_v41 = vld [vmem:[#allocation8 + $0x128] sm:$0xff] }
  0xb3   : > { %1093 = vmatpush.msrb.mxu1 %v1062_v42 }
  0xb6   : > { %355 = vmatmul.f32.gmra.mxu0 %v263_v44  ;;  %v280_v44 = vld [vmem:[%s2826_s30 + $0xe8] sm:$0xff] }
  0xbe   : > { %358 = vmatmul.f32.gmra.mxu0 %v264_v46  ;;  %v1239_v46 = vld [vmem:[#allocation8 + $0x278] sm:$0xff] }
  0xbf   : > { %1240 = vmatpush.msrb.mxu2 %v1239_v46 }
  0xc6   : > { %361 = vmatmul.f32.gmra.mxu0 %v265_v47 }
  0xce   : > { %364 = vmatmul.f32.gmra.mxu0 %v266_v48  ;;  %v281_v48 = vld [vmem:[%s2826_s30 + $0xf0] sm:$0xff] }
  0xd3   : > { %v320_v49 = vpop.f32.mrf.mxu0 }
  0xd4   : > { %464 = vst [vmem:[#allocation2 + $0x8] sm:$0xff] %v320_v49  ;;  %608 = vmatmul.f32.vlgmr.msra.gmra.mxu1 %v320_v49  ;;  %v914_v49 = vld [vmem:[#allocation8 + $0x170] sm:$0xff] }
  0xd5   : > { %917 = vmatpush.msrb.mxu3 %v914_v49  ;;  %v904_v49 = vld [vmem:[#allocation8 + $0x120] sm:$0xff] }
  0xd6   : > { %367 = vmatmul.f32.gmra.mxu0 %v267_v50  ;;  %v1238_v50 = vld [vmem:[#allocation8 + $0x270] sm:$0xff] }
  0xd7   : > { %1241 = vmatpush.msrb.mxu2 %v1238_v50 }
  0xdb   : > { %v323_v51 = vpop.f32.mrf.mxu0  ;;  %v500_v26 = vld [vmem:[#allocation2 + $0x7] sm:$0xff] }
  0xdc   : > { %465 = vst [vmem:[#allocation2 + $0x10] sm:$0xff] %v323_v51  ;;  %611 = vmatmul.f32.gmra.mxu1 %v323_v51 }
  0xde   : > { %370 = vmatmul.f32.gmra.mxu0 %v268_v52  ;;  %v282_v52 = vld [vmem:[%s2826_s30 + $0xf8] sm:$0xff] }
  0xe3   : > { %v2854_v53 = vpop.f32.mrf.mxu0  ;;  %v501_v32 = vld [vmem:[#allocation2 + $0xf] sm:$0xff] }
  0xe4   : > { %466 = vst [vmem:[#allocation2 + $0x28] sm:$0xff] %v2854_v53  ;;  %614 = vmatmul.f32.gmra.mxu1 %v2854_v53 }
  0xe6   : > { %373 = vmatmul.f32.gmra.mxu0 %v269_v54  ;;  %v913_v54 = vld [vmem:[#allocation8 + $0x168] sm:$0xff] }
  0xe7   : > { %918 = vmatpush.msrb.mxu3 %v913_v54 }
  0xeb   : > { %v2859_v55 = vpop.f32.mrf.mxu0  ;;  %v2997_v39 = vld [vmem:[#allocation2 + $0x27] sm:$0xff] }
  0xec   : > { %467 = vst [vmem:[#allocation2 + $0x30] sm:$0xff] %v2859_v55  ;;  %617 = vmatmul.f32.gmra.mxu1 %v2859_v55 }
  0xee   : > { %376 = vmatmul.f32.gmra.mxu0 %v270_v56 }
  0xf3   : > { %v2864_v57 = vpop.f32.mrf.mxu0  ;;  %v3010_v46 = vld [vmem:[#allocation2 + $0x2f] sm:$0xff] }
  0xf4   : > { %468 = vst [vmem:[#allocation2 + $0x48] sm:$0xff] %v2864_v57  ;;  %620 = vmatmul.f32.gmra.mxu1 %v2864_v57 }
  0xf6   : > { %379 = vmatmul.f32.gmra.mxu0 %v271_v58  ;;  %v1237_v58 = vld [vmem:[#allocation8 + $0x268] sm:$0xff] }
  0xf7   : > { %1242 = vmatpush.msrb.mxu2 %v1237_v58 }
  0xf9   : > { %1243 = vmatpush.msrb.mxu2 %v1236_v5 }
  0xfb   : > { %v2869_v59 = vpop.f32.mrf.mxu0  ;;  %1244 = vmatpush.msrb.mxu2 %v1235_v12  ;;  %v3023_v58 = vld [vmem:[#allocation2 + $0x47] sm:$0xff]  ;;  %v902_v12 = vld [vmem:[#allocation8 + $0x110] sm:$0xff] }
  0xfc   : > { %469 = vst [vmem:[#allocation2 + $0x50] sm:$0xff] %v2869_v59  ;;  %623 = vmatmul.f32.gmra.mxu1 %v2869_v59 }
  0xfd   : > { %1245 = vmatpush.msrb.mxu2 %v1234_v21 }
  0xfe   : > { %382 = vmatmul.f32.gmra.mxu0 %v272_v60 }
  0xff   : > { %1246 = vmatpush.msrb.mxu2 %v1233_v25  ;;  %v901_v25 = vld [vmem:[#allocation8 + $0x108] sm:$0xff] }
 0x101   : > { %1247 = vmatpush.msrb.mxu2 %v1232_v33 }
 0x103   : > { %v2874_v61 = vpop.f32.mrf.mxu0  ;;  %1248 = vmatpush.msrb.mxu2 %v1231_v40  ;;  %v900_v40 = vld [vmem:[#allocation8 + $0x100] sm:$0xff] }
 0x104   : > { %470 = vst [vmem:[#allocation2 + $0x68] sm:$0xff] %v2874_v61  ;;  %626 = vmatmul.f32.gmra.mxu1 %v2874_v61 }
 0x106   : > { %385 = vmatmul.f32.gmra.mxu0 %v273_v62 }
 0x10b   : > { %v2879_v63 = vpop.f32.mrf.mxu0 }
 0x10c   : > { %471 = vst [vmem:[#allocation2 + $0x70] sm:$0xff] %v2879_v63  ;;  %629 = vmatmul.f32.gmra.mxu1 %v2879_v63 }
 0x10e   : > { %388 = vmatmul.f32.gmra.mxu0 %v274_v0  ;;  %v283_v0 = vld [vmem:[%s2826_s30 + $0x100] sm:$0xff] }
 0x113   : > { %v2884_v1 = vpop.f32.mrf.mxu0 }
 0x114   : > { %472 = vst [vmem:[#allocation2 + $0x88] sm:$0xff] %v2884_v1  ;;  %632 = vmatmul.f32.gmra.mxu1 %v2884_v1 }
 0x116   : > { %391 = vmatmul.f32.gmra.mxu0 %v275_v2  ;;  %v912_v2 = vld [vmem:[#allocation8 + $0x160] sm:$0xff] }
 0x117   : > { %919 = vmatpush.msrb.mxu3 %v912_v2  ;;  %v903_v2 = vld [vmem:[#allocation8 + $0x118] sm:$0xff] }
 0x119   : > { %920 = vmatpush.msrb.mxu3 %v911_v4 }
 0x11b   : > { %v2889_v7 = vpop.f32.mrf.mxu0  ;;  %921 = vmatpush.msrb.mxu3 %v910_v11  ;;  %v3036_v11 = vld [vmem:[#allocation2 + $0x4f] sm:$0xff] }
 0x11c   : > { %473 = vst [vmem:[#allocation2 + $0x90] sm:$0xff] %v2889_v7  ;;  %635 = vmatmul.f32.gmra.mxu1 %v2889_v7 }
 0x11d   : > { %922 = vmatpush.msrb.mxu3 %v909_v16 }
 0x11e   : > { %394 = vmatmul.f32.gmra.mxu0 %v276_v8 }
 0x11f   : > { %923 = vmatpush.msrb.mxu3 %v908_v22  ;;  %v3049_v22 = vld [vmem:[#allocation2 + $0x67] sm:$0xff] }
 0x123   : > { %v2894_v17 = vpop.f32.mrf.mxu0 }
 0x124   : > { %474 = vst [vmem:[#allocation2 + $0xa8] sm:$0xff] %v2894_v17  ;;  %638 = vmatmul.f32.gmra.mxu1 %v2894_v17 }
 0x126   : > { %397 = vmatmul.f32.gmra.mxu0 %v277_v18 }
 0x12b   : > { %v2899_v27 = vpop.f32.mrf.mxu0 }
 0x12c   : > { %475 = vst [vmem:[#allocation2 + $0xb0] sm:$0xff] %v2899_v27  ;;  %641 = vmatmul.f32.gmra.mxu1 %v2899_v27 }
 0x12e   : > { %400 = vmatmul.f32.gmra.mxu0 %v278_v28  ;;  %v907_v28 = vld [vmem:[#allocation8 + $0x138] sm:$0xff] }
 0x12f   : > { %924 = vmatpush.msrb.mxu3 %v907_v28 }
 0x131   : > { %925 = vmatpush.msrb.mxu3 %v906_v34  ;;  %v3062_v34 = vld [vmem:[#allocation2 + $0x6f] sm:$0xff] }
 0x133   : > { %v2904_v37 = vpop.f32.mrf.mxu0  ;;  %926 = vmatpush.msrb.mxu3 %v905_v41  ;;  %v1226_v41 = vld [vmem:[#allocation8 + $0x210] sm:$0xff] }
 0x134   : > { %476 = vst [vmem:[#allocation2 + $0xc8] sm:$0xff] %v2904_v37  ;;  %644 = vmatmul.f32.gmra.mxu1 %v2904_v37 }
 0x135   : > { %927 = vmatpush.msrb.mxu3 %v904_v49 }
 0x136   : > { %403 = vmatmul.f32.gmra.mxu0 %v279_v38 }
 0x137   : > { %928 = vmatpush.msrb.mxu3 %v903_v2 }
 0x139   : > { %929 = vmatpush.msrb.mxu3 %v902_v12 }
 0x13b   : > { %v2909_v43 = vpop.f32.mrf.mxu0  ;;  %930 = vmatpush.msrb.mxu3 %v901_v25  ;;  %v3083_v25 = vld [vmem:[#allocation2 + $0x87] sm:$0xff] }
 0x13c   : > { %477 = vst [vmem:[#allocation2 + $0xd0] sm:$0xff] %v2909_v43  ;;  %647 = vmatmul.f32.gmra.mxu1 %v2909_v43 }
 0x13d   : > { %931 = vmatpush.msrb.mxu3 %v900_v40  ;;  %v3086_v40 = vld [vmem:[#allocation8 + $0x360] sm:$0xff] }
 0x13e   : > { %406 = vmatmul.f32.gmra.mxu0 %v280_v44  ;;  %4002 = vst [vmem:[#allocation35_spill] sm:$0xff] %v3086_v40 }
 0x143   : > { %v2914_v47 = vpop.f32.mrf.mxu0 }
 0x144   : > { %478 = vst [vmem:[#allocation2 + $0xe8] sm:$0xff] %v2914_v47  ;;  %650 = vmatmul.f32.gmra.mxu1 %v2914_v47 }
 0x146   : > { %409 = vmatmul.f32.gmra.mxu0 %v281_v48  ;;  %v1230_v48 = vld [vmem:[#allocation8 + $0x230] sm:$0xff] }
 0x147   : > { %1249 = vmatpush.msrb.mxu2 %v1230_v48  ;;  %v3065_v48 = vld [vmem:[#allocation8 + $0x378] sm:$0xff] }
 0x148   : > { %3996 = vst [vmem:[#allocation29_spill] sm:$0xff] %v3065_v48  ;;  %1564 = vmatpush.msra.mxu0 %v3065_v48 }
 0x14b   : > { %v2919_v51 = vpop.f32.mrf.mxu0 }
 0x14c   : > { %479 = vst [vmem:[#allocation2 + $0xf0] sm:$0xff] %v2919_v51  ;;  %653 = vmatmul.f32.gmra.mxu1 %v2919_v51 }
 0x14e   : > { %412 = vmatmul.f32.gmra.mxu0 %v282_v52 }
 0x151   : > { %v2924_v56 = vpop.f32.mrf.mxu1 }
 0x153   : > { %v2926_v60 = vpop.f32.mrf.mxu0  ;;  %v2928_v62 = vld [vmem:[#allocation2 + $0xef] sm:$0xff] }
 0x154   : > { %480 = vst [vmem:[#allocation2 + $0x108] sm:$0xff] %v2926_v60  ;;  %656 = vmatmul.f32.gmra.mxu1 %v2926_v60  ;;  %815 = vmatmul.f32.vlgmr.msra.gmra.mxu2 %v2928_v62 }
 0x156   : > { %415 = vmatmul.f32.gmra.mxu0 %v283_v0  ;;  %v1229_v0 = vld [vmem:[#allocation8 + $0x228] sm:$0xff] }
 0x157   : > { %1250 = vmatpush.msrb.mxu2 %v1229_v0  ;;  %v3070_v0 = vld [vmem:[#allocation8 + $0x370] sm:$0xff] }
 0x158   : > { %3998 = vst [vmem:[#allocation31_spill] sm:$0xff] %v3070_v0  ;;  %1565 = vmatpush.msra.mxu0 %v3070_v0  ;;  %v3095_v0 = vld [vmem:[#allocation8 + $0x350] sm:$0xff] }
 0x159   : > { %v2934_v3 = vpop.f32.mrf.mxu1  ;;  %4005 = vst [vmem:[#allocation38_spill] sm:$0xff] %v3095_v0 }
 0x15b   : > { %v2936_v6 = vpop.f32.mrf.mxu0  ;;  %v2938_v8 = vld [vmem:[#allocation2 + $0x107] sm:$0xff] }
 0x15c   : > { %481 = vst [vmem:[#allocation2 + $0x110] sm:$0xff] %v2936_v6  ;;  %659 = vmatmul.f32.vlgmr.msra.gmra.mxu3 %v2936_v6  ;;  %818 = vmatmul.f32.gmra.mxu2 %v2938_v8 }
 0x15d   : > { %1094 = vmatmul.f32.vlgmr.msrb.gmra.mxu1 %v2854_v53 }
 0x15e   : > { %418 = vmatmul.f32.gmra.mxu0 %v284_v9 }
 0x161   : > { %v2945_v10 = vpop.f32.mrf.mxu1 }
 0x163   : > { %v2947_v13 = vpop.f32.mrf.mxu0  ;;  %v2949_v14 = vld [vmem:[#allocation2 + $0x10f] sm:$0xff] }
 0x164   : > { %482 = vst [vmem:[#allocation2 + $0x128] sm:$0xff] %v2947_v13  ;;  %662 = vmatmul.f32.gmra.mxu3 %v2947_v13  ;;  %821 = vmatmul.f32.gmra.mxu2 %v2949_v14 }
 0x165   : > { %1097 = vmatmul.f32.gmra.mxu1 %v2859_v55 }
 0x166   : > { %421 = vmatmul.f32.gmra.mxu0 %v285_v15  ;;  %v1228_v15 = vld [vmem:[#allocation8 + $0x220] sm:$0xff] }
 0x167   : > { %1251 = vmatpush.msrb.mxu2 %v1228_v15  ;;  %v3077_v15 = vld [vmem:[#allocation8 + $0x368] sm:$0xff] }
 0x168   : > { %4001 = vst [vmem:[#allocation34_spill] sm:$0xff] %v3077_v15  ;;  %1566 = vmatpush.msra.mxu0 %v3077_v15 }
 0x169   : > { %v2956_v53 = vpop.f32.mrf.mxu1 }
 0x16a   : > { %1567 = vmatpush.msra.mxu0 %v3086_v40  ;;  %v3119_v40 = vld [vmem:[#allocation8 + $0x330] sm:$0xff] }
 0x16b   : > { %v2958_v18 = vpop.f32.mrf.mxu0  ;;  %v2960_v19 = vld [vmem:[#allocation2 + $0x127] sm:$0xff]  ;;  %4012 = vst [vmem:[#allocation45_spill] sm:$0xff] %v3119_v40 }
 0x16c   : > { %483 = vst [vmem:[#allocation2 + $0x130] sm:$0xff] %v2958_v18  ;;  %665 = vmatmul.f32.gmra.mxu3 %v2958_v18  ;;  %824 = vmatmul.f32.gmra.mxu2 %v2960_v19 }
 0x16d   : > { %1100 = vmatmul.f32.gmra.mxu1 %v2864_v57 }
 0x16e   : > { %424 = vmatmul.f32.gmra.mxu0 %v286_v20 }
 0x171   : > { %v2967_v55 = vpop.f32.mrf.mxu1 }
 0x172   : > { %3980 = vst [vmem:[#allocation13_spill] sm:$0xff] %v2967_v55 }
 0x173   : > { %v2969_v23 = vpop.f32.mrf.mxu0  ;;  %v2971_v24 = vld [vmem:[#allocation2 + $0x12f] sm:$0xff] }
 0x174   : > { %484 = vst [vmem:[#allocation2 + $0x148] sm:$0xff] %v2969_v23  ;;  %668 = vmatmul.f32.gmra.mxu3 %v2969_v23  ;;  %827 = vmatmul.f32.gmra.mxu2 %v2971_v24 }
 0x175   : > { %1103 = vmatmul.f32.gmra.mxu1 %v2869_v59 }
 0x176   : > { %770 = vmatmul.f32.vlgmr.msrb.gmra.mxu0 %v500_v26  ;;  %v1227_v26 = vld [vmem:[#allocation8 + $0x218] sm:$0xff] }
 0x177   : > { %1252 = vmatpush.msrb.mxu2 %v1227_v26  ;;  %v1401_v26 = vld [vmem:[#allocation8 + $0x2f8] sm:$0xff] }
 0x178   : > { %1402 = vmatpush.msra.mxu3 %v1401_v26  ;;  %v3105_v26 = vld [vmem:[#allocation8 + $0x348] sm:$0xff] }
 0x179   : > { %v2977_v29 = vpop.f32.mrf.mxu1  ;;  %1253 = vmatpush.msrb.mxu2 %v1226_v41  ;;  %v3090_v41 = vld [vmem:[#allocation8 + $0x358] sm:$0xff]  ;;  %4008 = vst [vmem:[#allocation41_spill] sm:$0xff] %v3105_v26 }
 0x17a   : > { %3981 = vst [vmem:[#allocation14_spill] sm:$0xff] %v2977_v29  ;;  %1568 = vmatpush.msra.mxu0 %v3090_v41 }
 0x17b   : > { %v2979_v30 = vpop.f32.mrf.mxu0  ;;  %v2981_v31 = vld [vmem:[#allocation2 + $0x147] sm:$0xff]  ;;  %4003 = vst [vmem:[#allocation36_spill] sm:$0xff] %v3090_v41 }
 0x17c   : > { %485 = vst [vmem:[#allocation2 + $0x150] sm:$0xff] %v2979_v30  ;;  %671 = vmatmul.f32.gmra.mxu3 %v2979_v30  ;;  %830 = vmatmul.f32.gmra.mxu2 %v2981_v31 }
 0x17d   : > { %1106 = vmatmul.f32.gmra.mxu1 %v2874_v61  ;;  %1569 = vmatpush.msra.mxu0 %v3095_v0  ;;  %v3114_v0 = vld [vmem:[#allocation8 + $0x338] sm:$0xff] }
 0x17e   : > { %773 = vmatmul.f32.gmra.mxu0 %v501_v32  ;;  %4010 = vst [vmem:[#allocation43_spill] sm:$0xff] %v3114_v0 }
 0x17f   : > { %1570 = vmatpush.msra.mxu0 %v3105_v26  ;;  %v3136_v26 = vld [vmem:[#allocation8 + $0x320] sm:$0xff] }
 0x180   : > { %4015 = vst [vmem:[#allocation48_spill] sm:$0xff] %v3136_v26 }
 0x181   : > { %v2987_v35 = vpop.f32.mrf.mxu1 }
 0x182   : > { %3982 = vst [vmem:[#allocation15_spill] sm:$0xff] %v2987_v35 }
 0x183   : > { %v2989_v36 = vpop.f32.mrf.mxu0  ;;  %v2991_v38 = vld [vmem:[#allocation2 + $0x14f] sm:$0xff] }
 0x184   : > { %3983 = vst [vmem:[#allocation16_spill] sm:$0xff] %v2991_v38  ;;  %674 = vmatmul.f32.gmra.mxu3 %v2989_v36  ;;  %833 = vmatmul.f32.gmra.mxu2 %v2991_v38  ;;  %v1885_v38 = vld [vmem:[#allocation8 + $0x468] sm:$0xff] }
 0x185   : > { %486 = vst [vmem:[#allocation2 + $0x168] sm:$0xff] %v2989_v36  ;;  %1109 = vmatmul.f32.gmra.mxu1 %v2879_v63 }
 0x186   : > { %776 = vmatmul.f32.gmra.mxu0 %v2997_v39 }
 0x189   : > { %v3000_v42 = vpop.f32.mrf.mxu1 }
 0x18a   : > { %3984 = vst [vmem:[#allocation17_spill] sm:$0xff] %v3000_v42 }
 0x18b   : > { %v3002_v44 = vpop.f32.mrf.mxu0 }
 0x18c   : > { %v3004_v45 = vld [vmem:[#allocation2 + $0x167] sm:$0xff]  ;;  %487 = vst [vmem:[#allocation2 + $0x170] sm:$0xff] %v3002_v44  ;;  %677 = vmatmul.f32.gmra.mxu3 %v3002_v44 }
 0x18d   : > { %3985 = vst [vmem:[#allocation18_spill] sm:$0xff] %v3004_v45  ;;  %836 = vmatmul.f32.gmra.mxu2 %v3004_v45  ;;  %1112 = vmatmul.f32.gmra.mxu1 %v2884_v1 }
 0x18e   : > { %779 = vmatmul.f32.gmra.mxu0 %v3010_v46 }
 0x191   : > { %v3013_v50 = vpop.f32.mrf.mxu1 }
 0x192   : > { %3986 = vst [vmem:[#allocation19_spill] sm:$0xff] %v3013_v50 }
 0x193   : > { %v3015_v52 = vpop.f32.mrf.mxu0  ;;  %v3017_v54 = vld [vmem:[#allocation2 + $0x16f] sm:$0xff] }
 0x194   : > { %3987 = vst [vmem:[#allocation20_spill] sm:$0xff] %v3017_v54  ;;  %680 = vmatmul.f32.gmra.mxu3 %v3015_v52 }
 0x195   : > { %488 = vst [vmem:[#allocation2 + $0x188] sm:$0xff] %v3015_v52  ;;  %839 = vmatmul.f32.gmra.mxu2 %v3017_v54  ;;  %1115 = vmatmul.f32.gmra.mxu1 %v2889_v7  ;;  %v3193_v54 = vld [vmem:[#allocation2 + $0x29] sm:$0xff] }
 0x196   : > { %782 = vmatmul.f32.gmra.mxu0 %v3023_v58  ;;  %4026 = vst [vmem:[#allocation59_spill] sm:$0xff] %v3193_v54 }
 0x199   : > { %v3026_v4 = vpop.f32.mrf.mxu1 }
 0x19a   : > { %3988 = vst [vmem:[#allocation21_spill] sm:$0xff] %v3026_v4  ;;  %v1887_v4 = vld [vmem:[#allocation8 + $0x478] sm:$0xff] }
 0x19b   : > { %v3028_v5 = vpop.f32.mrf.mxu0 }
 0x19c   : > { %v3030_v9 = vld [vmem:[#allocation2 + $0x187] sm:$0xff]  ;;  %489 = vst [vmem:[#allocation2 + $0x190] sm:$0xff] %v3028_v5  ;;  %683 = vmatmul.f32.gmra.mxu3 %v3028_v5 }
 0x19d   : > { %3989 = vst [vmem:[#allocation22_spill] sm:$0xff] %v3030_v9  ;;  %842 = vmatmul.f32.gmra.mxu2 %v3030_v9  ;;  %1118 = vmatmul.f32.gmra.mxu1 %v2894_v17  ;;  %v537_v9 = vld [vmem:[#allocation2 + $0x11] sm:$0xff] }
 0x19e   : > { %785 = vmatmul.f32.gmra.mxu0 %v3036_v11 }
 0x1a1   : > { %v3039_v16 = vpop.f32.mrf.mxu1 }
 0x1a2   : > { %3990 = vst [vmem:[#allocation23_spill] sm:$0xff] %v3039_v16  ;;  %v1224_v16 = vld [vmem:[#allocation8 + $0x200] sm:$0xff] }
 0x1a3   : > { %v3041_v20 = vpop.f32.mrf.mxu0  ;;  %v3043_v21 = vld [vmem:[#allocation2 + $0x18f] sm:$0xff] }
 0x1a4   : > { %3991 = vst [vmem:[#allocation24_spill] sm:$0xff] %v3041_v20  ;;  %686 = vmatmul.f32.gmra.mxu3 %v3041_v20 }
 0x1a5   : > { %3992 = vst [vmem:[#allocation25_spill] sm:$0xff] %v3043_v21  ;;  %845 = vmatmul.f32.gmra.mxu2 %v3043_v21  ;;  %1121 = vmatmul.f32.gmra.mxu1 %v2899_v27  ;;  %v536_v21 = vld [vmem:[#allocation2 + $0x9] sm:$0xff] }
 0x1a6   : > { %490 = vst [vmem:[#allocation2 + $0x1a8] sm:$0xff] %v3041_v20  ;;  %788 = vmatmul.f32.gmra.mxu0 %v3049_v22 }
 0x1a9   : > { %v3052_v28 = vpop.f32.mrf.mxu1 }
 0x1aa   : > { %3993 = vst [vmem:[#allocation26_spill] sm:$0xff] %v3052_v28 }
 0x1ab   : > { %v3054_v32 = vpop.f32.mrf.mxu0 }
 0x1ac   : > { %3994 = vst [vmem:[#allocation27_spill] sm:$0xff] %v3054_v32  ;;  %689 = vmatmul.f32.gmra.mxu3 %v3054_v32 }
 0x1ad   : > { %v3056_v33 = vld [vmem:[#allocation2 + $0x1a7] sm:$0xff]  ;;  %491 = vst [vmem:[#allocation2 + $0x1b0] sm:$0xff] %v3054_v32  ;;  %1124 = vmatmul.f32.gmra.mxu1 %v2904_v37 }
 0x1ae   : > { %3995 = vst [vmem:[#allocation28_spill] sm:$0xff] %v3056_v33  ;;  %848 = vmatmul.f32.gmra.mxu2 %v3056_v33  ;;  %791 = vmatmul.f32.gmra.mxu0 %v3062_v34  ;;  %v3144_v33 = vld [vmem:[#allocation8 + $0x310] sm:$0xff] }
 0x1af   : > { %4018 = vst [vmem:[#allocation51_spill] sm:$0xff] %v3144_v33 }
 0x1b1   : > { %v3068_v49 = vpop.f32.mrf.mxu1 }
 0x1b2   : > { %3997 = vst [vmem:[#allocation30_spill] sm:$0xff] %v3068_v49  ;;  %v1225_v49 = vld [vmem:[#allocation8 + $0x208] sm:$0xff] }
 0x1b3   : > { %v3073_v2 = vpop.f32.mrf.mxu0  ;;  %1254 = vmatpush.msrb.mxu2 %v1225_v49  ;;  %v3108_v49 = vld [vmem:[#allocation2 + $0x8f] sm:$0xff] }
 0x1b4   : > { %3999 = vst [vmem:[#allocation32_spill] sm:$0xff] %v3073_v2  ;;  %v3075_v12 = vld [vmem:[#allocation2 + $0x1af] sm:$0xff]  ;;  %692 = vmatmul.f32.gmra.mxu3 %v3073_v2 }
 0x1b5   : > { %4000 = vst [vmem:[#allocation33_spill] sm:$0xff] %v3075_v12  ;;  %1127 = vmatmul.f32.gmra.mxu1 %v2909_v43  ;;  %1255 = vmatpush.msrb.mxu2 %v1224_v16  ;;  %v3129_v16 = vld [vmem:[#allocation8 + $0x328] sm:$0xff] }
 0x1b6   : > { %492 = vst [vmem:[#allocation2 + $0x1c8] sm:$0xff] %v3073_v2  ;;  %851 = vmatmul.f32.gmra.mxu2 %v3075_v12  ;;  %794 = vmatmul.f32.gmra.mxu0 %v3083_v25 }
 0x1b7   : > { %4014 = vst [vmem:[#allocation47_spill] sm:$0xff] %v3129_v16  ;;  %1888 = vmatpush.msra.mxu2 %v1887_v4  ;;  %v1725_v4 = vld [vmem:[#allocation8 + $0x3f8] sm:$0xff] }
 0x1b8   : > { %1726 = vmatpush.msra.mxu1 %v1725_v4  ;;  %v3174_v4 = vld [vmem:[#allocation2 + $0xc7] sm:$0xff] }
 0x1b9   : > { %v3092_v28 = vpop.f32.mrf.mxu1 }
 0x1ba   : > { %4004 = vst [vmem:[#allocation37_spill] sm:$0xff] %v3092_v28  ;;  %v3111_v28 = vld [vmem:[#allocation8 + $0x340] sm:$0xff] }
 0x1bb   : > { %v3097_v48 = vpop.f32.mrf.mxu0  ;;  %4009 = vst [vmem:[#allocation42_spill] sm:$0xff] %v3111_v28  ;;  %1571 = vmatpush.msra.mxu0 %v3111_v28  ;;  %v1400_v28 = vld [vmem:[#allocation8 + $0x2f0] sm:$0xff] }
 0x1bc   : > { %4006 = vst [vmem:[#allocation39_spill] sm:$0xff] %v3097_v48  ;;  %695 = vmatmul.f32.gmra.mxu3 %v3097_v48 }
 0x1bd   : > { %v3099_v15 = vld [vmem:[#allocation2 + $0x1c7] sm:$0xff]  ;;  %493 = vst [vmem:[#allocation2 + $0x1d0] sm:$0xff] %v3097_v48  ;;  %1130 = vmatmul.f32.gmra.mxu1 %v2914_v47  ;;  %1572 = vmatpush.msra.mxu0 %v3114_v0  ;;  %v3139_v0 = vld [vmem:[#allocation8 + $0x318] sm:$0xff] }
 0x1be   : > { %4007 = vst [vmem:[#allocation40_spill] sm:$0xff] %v3099_v15  ;;  %854 = vmatmul.f32.gmra.mxu2 %v3099_v15  ;;  %797 = vmatmul.f32.gmra.mxu0 %v3108_v49 }
 0x1bf   : > { %1573 = vmatpush.msra.mxu0 %v3119_v40  ;;  %1403 = vmatpush.msra.mxu3 %v1400_v28  ;;  %4016 = vst [vmem:[#allocation49_spill] sm:$0xff] %v3139_v0  ;;  %v3154_v28 = vld [vmem:[#allocation8 + $0x308] sm:$0xff] }
 0x1c0   : > { %4020 = vst [vmem:[#allocation53_spill] sm:$0xff] %v3154_v28 }
 0x1c1   : > { %v3116_v41 = vpop.f32.mrf.mxu1  ;;  %1574 = vmatpush.msra.mxu0 %v3129_v16 }
 0x1c2   : > { %4011 = vst [vmem:[#allocation44_spill] sm:$0xff] %v3116_v41  ;;  %v3132_v41 = vld [vmem:[#allocation2 + $0xa7] sm:$0xff] }
 0x1c3   : > { %v3121_v15 = vpop.f32.mrf.mxu0  ;;  %1575 = vmatpush.msra.mxu0 %v3136_v26  ;;  %v3161_v26 = vld [vmem:[#allocation8 + $0x300] sm:$0xff] }
 0x1c4   : > { %v3123_v12 = vld [vmem:[#allocation2 + $0x1cf] sm:$0xff]  ;;  %494 = vst [vmem:[#allocation2 + $0x1e8] sm:$0xff] %v3121_v15  ;;  %698 = vmatmul.f32.gmra.mxu3 %v3121_v15 }
 0x1c5   : > { %4013 = vst [vmem:[#allocation46_spill] sm:$0xff] %v3123_v12  ;;  %1133 = vmatmul.f32.gmra.mxu1 %v2919_v51  ;;  %1576 = vmatpush.msra.mxu0 %v3139_v0 }
 0x1c6   : > { %857 = vmatmul.f32.gmra.mxu2 %v3123_v12  ;;  %800 = vmatmul.f32.gmra.mxu0 %v3132_v41  ;;  %4021 = vst [vmem:[#allocation54_spill] sm:$0xff] %v3161_v26 }
 0x1c7   : > { %1577 = vmatpush.msra.mxu0 %v3144_v33  ;;  %v1399_v33 = vld [vmem:[#allocation8 + $0x2e8] sm:$0xff] }
 0x1c8   : > { %1404 = vmatpush.msra.mxu3 %v1399_v33 }
 0x1c9   : > { %v3141_v12 = vpop.f32.mrf.mxu1  ;;  %1578 = vmatpush.msra.mxu0 %v3154_v28 }
 0x1ca   : > { %4017 = vst [vmem:[#allocation50_spill] sm:$0xff] %v3141_v12  ;;  %v3157_v12 = vld [vmem:[#allocation2 + $0xaf] sm:$0xff] }
 0x1cb   : > { %v3146_v50 = vpop.f32.mrf.mxu0  ;;  %v3148_v40 = vld [vmem:[#allocation2 + $0x1e7] sm:$0xff]  ;;  %1579 = vmatpush.msra.mxu0 %v3161_v26  ;;  %v1886_v26 = vld [vmem:[#allocation8 + $0x470] sm:$0xff] }
 0x1cc   : > { %4019 = vst [vmem:[#allocation52_spill] sm:$0xff] %v3148_v40  ;;  %701 = vmatmul.f32.gmra.mxu3 %v3146_v50  ;;  %1889 = vmatpush.msra.mxu2 %v1886_v26 }
 0x1cd   : > { %495 = vst [vmem:[#allocation2 + $0x1f0] sm:$0xff] %v3146_v50  ;;  %1136 = vmatmul.f32.gmra.mxu1 %v2926_v60 }
 0x1ce   : > { %860 = vmatmul.f32.gmra.mxu2 %v3148_v40  ;;  %803 = vmatmul.f32.gmra.mxu0 %v3157_v12 }
 0x1cf   : > { %1890 = vmatpush.msra.mxu2 %v1885_v38 }
 0x1d1   : > { %v3164_v0 = vpop.f32.mrf.mxu1 }
 0x1d2   : > { %4022 = vst [vmem:[#allocation55_spill] sm:$0xff] %v3164_v0 }
 0x1d3   : > { %v3167_v40 = vpop.f32.mrf.mxu0 }
 0x1d4   : > { %v3169_v16 = vld [vmem:[#allocation2 + $0x1ef] sm:$0xff]  ;;  %496 = vst [vmem:[#allocation2 + $0x208] sm:$0xff] %v3167_v40  ;;  %932 = vmatmul.f32.vlgmr.msrb.gmra.mxu3 %v536_v21 }
 0x1d5   : > { %4023 = vst [vmem:[#allocation56_spill] sm:$0xff] %v3169_v16  ;;  %1139 = vmatmul.f32.gmra.mxu1 %v2936_v6  ;;  %v3186_v21 = vld [vmem:[#allocation2 + $0xcf] sm:$0xff] }
 0x1d6   : > { %863 = vmatmul.f32.gmra.mxu2 %v3169_v16  ;;  %806 = vmatmul.f32.gmra.mxu0 %v3174_v4  ;;  %v1724_v16 = vld [vmem:[#allocation8 + $0x3f0] sm:$0xff] }
 0x1d7   : > { %v3177_v0 = vpop.f32.mrf.mxu2  ;;  %1727 = vmatpush.msra.mxu1 %v1724_v16  ;;  %v1398_v16 = vld [vmem:[#allocation8 + $0x2e0] sm:$0xff] }
 0x1d8   : > { %4024 = vst [vmem:[#allocation57_spill] sm:$0xff] %v3177_v0  ;;  %1405 = vmatpush.msra.mxu3 %v1398_v16 }
 0x1da   : > { %v3179_v28 = vpop.f32.mrf.mxu1 }
 0x1db   : > { %v3181_v42 = vpop.f32.mrf.mxu0 }
 0x1dc   : > { %497 = vst [vmem:[#allocation2 + $0x210] sm:$0xff] %v3181_v42  ;;  %935 = vmatmul.f32.gmra.mxu3 %v537_v9  ;;  %v3203_v9 = vld [vmem:[#allocation2 + $0xe7] sm:$0xff] }
 0x1dd   : > { %1142 = vmatmul.f32.gmra.mxu1 %v2947_v13 }
 0x1de   : > { %1256 = vmatmul.f32.vlgmr.msrb.gmra.mxu2 %v2997_v39  ;;  %809 = vmatmul.f32.gmra.mxu0 %v3186_v21  ;;  %v3198_v39 = vld [vmem:[%s3912_s3] ss:$0 sm:$0xff] }
 0x1df   : > { %v660_v33 = vpop.f32.mrf.mxu3  ;;  %v3189_v26 = vpop.f32.mrf.mxu2 }
 0x1e0   : > { %4025 = vst [vmem:[#allocation58_spill] sm:$0xff] %v3189_v26  ;;  %v722_v26 = vadd.f32 %v3198_v39, %v660_v33  ;;  %v1723_v33 = vld [vmem:[#allocation8 + $0x3e8] sm:$0xff] }
 0x1e1   : > { %1728 = vmatpush.msra.mxu1 %v1723_v33 }
 0x1e2   : > { %v3191_v0 = vpop.f32.mrf.mxu1 }
 0x1e3   : > { %v422_v35 = vpop.f32.mrf.mxu0 }
 0x1e4   : > { %498 = vst [vmem:[#allocation2 + $0x228] sm:$0xff] %v422_v35  ;;  %938 = vmatmul.f32.gmra.mxu3 %v3193_v54 }
 0x1e5   : > { %1145 = vmatmul.f32.gmra.mxu1 %v2958_v18 }
 0x1e6   : > { %1259 = vmatmul.f32.gmra.mxu2 %v3010_v46  ;;  %812 = vmatmul.f32.gmra.mxu0 %v3203_v9  ;;  %v3211_v46 = vld [vmem:[#allocation2 + $0x31] sm:$0xff] }
 0x1e7   : > { %v663_v29 = vpop.f32.mrf.mxu3  ;;  %v822_v45 = vpop.f32.mrf.mxu2  ;;  %4029 = vst [vmem:[#allocation62_spill] sm:$0xff] %v3211_v46 }
 0x1e8   : > { %v3207_v55 = vadd.f32 %v822_v45, %v722_v26  ;;  %v723_v16 = vadd.f32 %v3198_v39, %v663_v29 }
 0x1ea   : > { %4027 = vst [vmem:[#allocation60_spill] sm:$0xff] %v3207_v55  ;;  %v3209_v35 = vpop.f32.mrf.mxu1 }
 0x1eb   : > { %4028 = vst [vmem:[#allocation61_spill] sm:$0xff] %v3209_v35  ;;  %v425_v54 = vpop.f32.mrf.mxu0  ;;  %v3222_v35 = vld [vmem:[#allocation2 + $0x49] sm:$0xff] }
 0x1ec   : > { %499 = vst [vmem:[#allocation2 + $0x230] sm:$0xff] %v425_v54  ;;  %941 = vmatmul.f32.gmra.mxu3 %v3211_v46  ;;  %v1397_v54 = vld [vmem:[#allocation8 + $0x2d8] sm:$0xff] }
 0x1ed   : > { %1148 = vmatmul.f32.gmra.mxu1 %v2969_v23  ;;  %4031 = vst [vmem:[#allocation64_spill] sm:$0xff] %v3222_v35  ;;  %1406 = vmatpush.msra.mxu3 %v1397_v54  ;;  %v3233_v46 = vld [vmem:[#allocation2 + $0x51] sm:$0xff] }
 0x1ee   : > { %1262 = vmatmul.f32.gmra.mxu2 %v3023_v58  ;;  %1580 = vmatmul.f32.vlgmr.msra.gmra.mxu0 %v2864_v57  ;;  %4033 = vst [vmem:[#allocation66_spill] sm:$0xff] %v3233_v46 }
 0x1ef   : > { %v666_v45 = vpop.f32.mrf.mxu3  ;;  %v825_v38 = vpop.f32.mrf.mxu2 }
 0x1f0   : > { %v3218_v26 = vadd.f32 %v825_v38, %v723_v16  ;;  %v724_v29 = vadd.f32 %v3198_v39, %v666_v45  ;;  %v1884_v38 = vld [vmem:[#allocation8 + $0x460] sm:$0xff] }
 0x1f1   : > { %1891 = vmatpush.msra.mxu2 %v1884_v38  ;;  %v1722_v45 = vld [vmem:[#allocation8 + $0x3e0] sm:$0xff] }
 0x1f2   : > { %4030 = vst [vmem:[#allocation63_spill] sm:$0xff] %v3218_v26  ;;  %v3220_v55 = vpop.f32.mrf.mxu1  ;;  %1729 = vmatpush.msra.mxu1 %v1722_v45 }
 0x1f4   : > { %944 = vmatmul.f32.gmra.mxu3 %v3222_v35  ;;  %v3255_v35 = vld [vmem:[#allocation2 + $0x71] sm:$0xff] }
 0x1f5   : > { %1151 = vmatmul.f32.gmra.mxu1 %v2979_v30  ;;  %4037 = vst [vmem:[#allocation70_spill] sm:$0xff] %v3255_v35 }
 0x1f6   : > { %1265 = vmatmul.f32.gmra.mxu2 %v3036_v11  ;;  %1583 = vmatmul.f32.gmra.mxu0 %v2869_v59 }
 0x1f7   : > { %v669_v57 = vpop.f32.mrf.mxu3  ;;  %v828_v33 = vpop.f32.mrf.mxu2 }
 0x1f8   : > { %v3229_v16 = vadd.f32 %v828_v33, %v724_v29  ;;  %v725_v59 = vadd.f32 %v3198_v39, %v669_v57 }
 0x1fa   : > { %4032 = vst [vmem:[#allocation65_spill] sm:$0xff] %v3229_v16  ;;  %v3231_v26 = vpop.f32.mrf.mxu1  ;;  %v3244_v16 = vld [vmem:[#allocation2 + $0x69] sm:$0xff] }
 0x1fb   : > { %4035 = vst [vmem:[#allocation68_spill] sm:$0xff] %v3244_v16 }
 0x1fc   : > { %947 = vmatmul.f32.gmra.mxu3 %v3233_v46  ;;  %v1396_v46 = vld [vmem:[#allocation8 + $0x2d0] sm:$0xff] }
 0x1fd   : > { %1154 = vmatmul.f32.gmra.mxu1 %v2989_v36  ;;  %1407 = vmatpush.msra.mxu3 %v1396_v46 }
 0x1fe   : > { %1268 = vmatmul.f32.gmra.mxu2 %v3049_v22  ;;  %1586 = vmatmul.f32.gmra.mxu0 %v2874_v61 }
 0x1ff   : > { %v672_v54 = vpop.f32.mrf.mxu3  ;;  %v831_v29 = vpop.f32.mrf.mxu2 }
 0x200   : > { %v3240_v33 = vadd.f32 %v831_v29, %v725_v59  ;;  %v726_v57 = vadd.f32 %v3198_v39, %v672_v54  ;;  %v1883_v29 = vld [vmem:[#allocation8 + $0x458] sm:$0xff] }
 0x201   : > { %1892 = vmatpush.msra.mxu2 %v1883_v29  ;;  %v1721_v54 = vld [vmem:[#allocation8 + $0x3d8] sm:$0xff]  ;;  %v3266_v29 = vld [vmem:[#allocation2 + $0x89] sm:$0xff] }
 0x202   : > { %4034 = vst [vmem:[#allocation67_spill] sm:$0xff] %v3240_v33  ;;  %v3242_v38 = vpop.f32.mrf.mxu1  ;;  %1730 = vmatpush.msra.mxu1 %v1721_v54 }
 0x203   : > { %4039 = vst [vmem:[#allocation72_spill] sm:$0xff] %v3266_v29 }
 0x204   : > { %950 = vmatmul.f32.gmra.mxu3 %v3244_v16  ;;  %v3260_v16 = vpop.f32.mrf.mxu0 }
 0x205   : > { %1157 = vmatmul.f32.gmra.mxu1 %v3002_v44 }
 0x206   : > { %1271 = vmatmul.f32.gmra.mxu2 %v3062_v34  ;;  %1589 = vmatmul.f32.gmra.mxu0 %v2879_v63 }
 0x207   : > { %v675_v61 = vpop.f32.mrf.mxu3  ;;  %v834_v45 = vpop.f32.mrf.mxu2 }
 0x208   : > { %v3251_v59 = vadd.f32 %v834_v45, %v726_v57  ;;  %v727_v63 = vadd.f32 %v3198_v39, %v675_v61 }
 0x20a   : > { %4036 = vst [vmem:[#allocation69_spill] sm:$0xff] %v3251_v59  ;;  %v3253_v33 = vpop.f32.mrf.mxu1 }
 0x20c   : > { %953 = vmatmul.f32.gmra.mxu3 %v3255_v35  ;;  %v1395_v35 = vld [vmem:[#allocation8 + $0x2c8] sm:$0xff] }
 0x20d   : > { %1160 = vmatmul.f32.gmra.mxu1 %v3015_v52  ;;  %1408 = vmatpush.msra.mxu3 %v1395_v35 }
 0x20e   : > { %1274 = vmatmul.f32.gmra.mxu2 %v3083_v25  ;;  %1592 = vmatmul.f32.gmra.mxu0 %v2884_v1 }
 0x20f   : > { %v678_v46 = vpop.f32.mrf.mxu3 }
 0x210   : > { %v837_v57 = vpop.f32.mrf.mxu2  ;;  %v728_v61 = vadd.f32 %v3198_v39, %v678_v46  ;;  %v1720_v46 = vld [vmem:[#allocation8 + $0x3d0] sm:$0xff] }
 0x211   : > { %v3264_v45 = vadd.f32 %v837_v57, %v727_v63  ;;  %v3275_v63 = vpop.f32.mrf.mxu0  ;;  %1731 = vmatpush.msra.mxu1 %v1720_v46 }
 0x212   : > { %v3268_v59 = vpop.f32.mrf.mxu1 }
 0x213   : > { %4038 = vst [vmem:[#allocation71_spill] sm:$0xff] %v3264_v45  ;;  %v1882_v45 = vld [vmem:[#allocation8 + $0x450] sm:$0xff] }
 0x214   : > { %4040 = vst [vmem:[#allocation73_spill] sm:$0xff] %v3268_v59  ;;  %956 = vmatmul.f32.gmra.mxu3 %v3266_v29  ;;  %1893 = vmatpush.msra.mxu2 %v1882_v45  ;;  %v3279_v59 = vld [vmem:[#allocation2 + $0x91] sm:$0xff]  ;;  %v3292_v29 = vld [vmem:[#allocation2 + $0xa9] sm:$0xff] }
 0x215   : > { %1163 = vmatmul.f32.gmra.mxu1 %v3028_v5  ;;  %4042 = vst [vmem:[#allocation75_spill] sm:$0xff] %v3279_v59 }
 0x216   : > { %1277 = vmatmul.f32.gmra.mxu2 %v3108_v49  ;;  %1595 = vmatmul.f32.gmra.mxu0 %v2889_v7  ;;  %4045 = vst [vmem:[#allocation78_spill] sm:$0xff] %v3292_v29 }
 0x217   : > { %v681_v1 = vpop.f32.mrf.mxu3 }
 0x218   : > { %v840_v54 = vpop.f32.mrf.mxu2  ;;  %v729_v7 = vadd.f32 %v3198_v39, %v681_v1  ;;  %v1394_v1 = vld [vmem:[#allocation8 + $0x2c0] sm:$0xff] }
 0x219   : > { %v3277_v57 = vadd.f32 %v840_v54, %v728_v61  ;;  %v3290_v45 = vpop.f32.mrf.mxu0  ;;  %1409 = vmatpush.msra.mxu3 %v1394_v1 }
 0x21a   : > { %v3285_v35 = vpop.f32.mrf.mxu1 }
 0x21b   : > { %4041 = vst [vmem:[#allocation74_spill] sm:$0xff] %v3277_v57 }
 0x21c   : > { %959 = vmatmul.f32.gmra.mxu3 %v3279_v59  ;;  %4043 = vst [vmem:[#allocation76_spill] sm:$0xff] %v3285_v35  ;;  %v1719_v35 = vld [vmem:[#allocation8 + $0x3c8] sm:$0xff] }
 0x21d   : > { %1166 = vmatmul.f32.gmra.mxu1 %v3041_v20  ;;  %v1718_v20 = vld [vmem:[#allocation8 + $0x3c0] sm:$0xff] }
 0x21e   : > { %1280 = vmatmul.f32.gmra.mxu2 %v3132_v41  ;;  %1598 = vmatmul.f32.gmra.mxu0 %v2894_v17 }
 0x21f   : > { %v684_v61 = vpop.f32.mrf.mxu3  ;;  %1732 = vmatpush.msra.mxu1 %v1719_v35  ;;  %v1716_v35 = vld [vmem:[#allocation8 + $0x3b0] sm:$0xff] }
 0x220   : > { %v843_v54 = vpop.f32.mrf.mxu2  ;;  %v730_v59 = vadd.f32 %v3198_v39, %v684_v61 }
 0x221   : > { %v3288_v57 = vadd.f32 %v843_v54, %v729_v7  ;;  %1733 = vmatpush.msra.mxu1 %v1718_v20  ;;  %v1393_v20 = vld [vmem:[#allocation8 + $0x2b8] sm:$0xff] }
 0x222   : > { %v3299_v7 = vpop.f32.mrf.mxu1  ;;  %1410 = vmatpush.msra.mxu3 %v1393_v20 }
 0x223   : > { %4044 = vst [vmem:[#allocation77_spill] sm:$0xff] %v3288_v57  ;;  %v1881_v57 = vld [vmem:[#allocation8 + $0x448] sm:$0xff] }
 0x224   : > { %962 = vmatmul.f32.gmra.mxu3 %v3292_v29  ;;  %1894 = vmatpush.msra.mxu2 %v1881_v57  ;;  %v3303_v29 = vld [vmem:[#allocation2 + $0xb1] sm:$0xff] }
 0x225   : > { %1169 = vmatmul.f32.gmra.mxu1 %v3054_v32  ;;  %4047 = vst [vmem:[#allocation80_spill] sm:$0xff] %v3303_v29  ;;  %v3305_v32 = vpop.f32.mrf.mxu0 }
 0x226   : > { %1283 = vmatmul.f32.gmra.mxu2 %v3157_v12  ;;  %1601 = vmatmul.f32.gmra.mxu0 %v2899_v27  ;;  %v1717_v27 = vld [vmem:[#allocation8 + $0x3b8] sm:$0xff] }
 0x227   : > { %v687_v17 = vpop.f32.mrf.mxu3  ;;  %1734 = vmatpush.msra.mxu1 %v1717_v27 }
 0x228   : > { %v846_v46 = vpop.f32.mrf.mxu2  ;;  %v731_v61 = vadd.f32 %v3198_v39, %v687_v17 }
 0x229   : > { %v3301_v54 = vadd.f32 %v846_v46, %v730_v59  ;;  %1735 = vmatpush.msra.mxu1 %v1716_v35  ;;  %v1713_v35 = vld [vmem:[#allocation8 + $0x398] sm:$0xff] }
 0x22a   : > { %v3314_v46 = vpop.f32.mrf.mxu1 }
 0x22b   : > { %4046 = vst [vmem:[#allocation79_spill] sm:$0xff] %v3301_v54  ;;  %v3316_v54 = vld [vmem:[#allocation2 + $0xc9] sm:$0xff] }
 0x22c   : > { %965 = vmatmul.f32.gmra.mxu3 %v3303_v29  ;;  %4049 = vst [vmem:[#allocation82_spill] sm:$0xff] %v3314_v46  ;;  %v1715_v29 = vld [vmem:[#allocation8 + $0x3a8] sm:$0xff]  ;;  %v1712_v46 = vld [vmem:[#allocation8 + $0x390] sm:$0xff] }
 0x22d   : > { %1172 = vmatmul.f32.gmra.mxu1 %v3073_v2  ;;  %4050 = vst [vmem:[#allocation83_spill] sm:$0xff] %v3316_v54  ;;  %v3321_v17 = vpop.f32.mrf.mxu0 }
 0x22e   : > { %1286 = vmatmul.f32.gmra.mxu2 %v3174_v4  ;;  %1604 = vmatmul.f32.gmra.mxu0 %v2904_v37  ;;  %v1714_v37 = vld [vmem:[#allocation8 + $0x3a0] sm:$0xff] }
 0x22f   : > { %v690_v59 = vpop.f32.mrf.mxu3  ;;  %1736 = vmatpush.msra.mxu1 %v1715_v29 }
 0x231   : > { %v849_v57 = vpop.f32.mrf.mxu2  ;;  %1737 = vmatpush.msra.mxu1 %v1714_v37  ;;  %v1710_v37 = vld [vmem:[#allocation8 + $0x380] sm:$0xff] }
 0x232   : > { %v3312_v1 = vadd.f32 %v849_v57, %v731_v61  ;;  %v732_v61 = vadd.f32 %v3198_v39, %v690_v59  ;;  %v3329_v2 = vpop.f32.mrf.mxu1 }
 0x233   : > { %1738 = vmatpush.msra.mxu1 %v1713_v35  ;;  %v1392_v35 = vld [vmem:[#allocation8 + $0x2b0] sm:$0xff] }
 0x234   : > { %4048 = vst [vmem:[#allocation81_spill] sm:$0xff] %v3312_v1  ;;  %968 = vmatmul.f32.gmra.mxu3 %v3316_v54  ;;  %v1880_v54 = vld [vmem:[#allocation8 + $0x440] sm:$0xff] }
 0x235   : > { %1175 = vmatmul.f32.gmra.mxu1 %v3097_v48  ;;  %1895 = vmatpush.msra.mxu2 %v1880_v54  ;;  %v3327_v48 = vld [vmem:[#allocation2 + $0xd1] sm:$0xff]  ;;  %v3336_v20 = vpop.f32.mrf.mxu0 }
 0x236   : > { %1289 = vmatmul.f32.gmra.mxu2 %v3186_v21  ;;  %1607 = vmatmul.f32.gmra.mxu0 %v2909_v43  ;;  %v1711_v43 = vld [vmem:[#allocation8 + $0x388] sm:$0xff] }
 0x237   : > { %v693_v27 = vpop.f32.mrf.mxu3  ;;  %1739 = vmatpush.msra.mxu1 %v1712_v46  ;;  %1411 = vmatpush.msra.mxu3 %v1392_v35 }
 0x238   : > { %v733_v29 = vadd.f32 %v3198_v39, %v693_v27 }
 0x239   : > { %v852_v57 = vpop.f32.mrf.mxu2  ;;  %1740 = vmatpush.msra.mxu1 %v1711_v43 }
 0x23a   : > { %v3325_v1 = vadd.f32 %v852_v57, %v732_v61  ;;  %v3340_v57 = vld [vmem:[#allocation2 + $0xe9] sm:$0xff] }
 0x23b   : > { %1741 = vmatpush.msra.mxu1 %v1710_v37 }
 0x23c   : > { %4051 = vst [vmem:[#allocation84_spill] sm:$0xff] %v3325_v1  ;;  %971 = vmatmul.f32.gmra.mxu3 %v3327_v48  ;;  %v3380_v1 = vld [vmem:[#allocation2 + $0x111] sm:$0xff] }
 0x23d   : > { %1178 = vmatmul.f32.gmra.mxu1 %v3121_v15  ;;  %v3351_v37 = vpop.f32.mrf.mxu0 }
 0x23e   : > { %1292 = vmatmul.f32.gmra.mxu2 %v3203_v9  ;;  %1610 = vmatmul.f32.gmra.mxu0 %v2914_v47  ;;  %v3345_v47 = vpop.f32.mrf.mxu1 }
 0x23f   : > { %v696_v59 = vpop.f32.mrf.mxu3 }
 0x240   : > { %v734_v46 = vadd.f32 %v3198_v39, %v696_v59 }
 0x241   : > { %v855_v54 = vpop.f32.mrf.mxu2 }
 0x242   : > { %v3338_v61 = vadd.f32 %v855_v54, %v733_v29  ;;  %v1879_v54 = vld [vmem:[#allocation8 + $0x438] sm:$0xff] }
 0x243   : > { %1896 = vmatpush.msra.mxu2 %v1879_v54 }
 0x244   : > { %4052 = vst [vmem:[#allocation85_spill] sm:$0xff] %v3338_v61  ;;  %974 = vmatmul.f32.gmra.mxu3 %v3340_v57  ;;  %v3353_v61 = vld [vmem:[#allocation2 + $0xf1] sm:$0xff] }
 0x245   : > { %1181 = vmatmul.f32.gmra.mxu1 %v3146_v50  ;;  %4054 = vst [vmem:[#allocation87_spill] sm:$0xff] %v3353_v61  ;;  %v3366_v54 = vpop.f32.mrf.mxu0 }
 0x246   : > { %1295 = vmatmul.f32.gmra.mxu2 %v2928_v62  ;;  %1613 = vmatmul.f32.gmra.mxu0 %v2919_v51  ;;  %v3360_v35 = vpop.f32.mrf.mxu1 }
 0x247   : > { %v699_v27 = vpop.f32.mrf.mxu3 }
 0x248   : > { %v735_v62 = vadd.f32 %v3198_v39, %v699_v27 }
 0x249   : > { %v858_v29 = vpop.f32.mrf.mxu2 }
 0x24a   : > { %v3349_v43 = vadd.f32 %v858_v29, %v734_v46  ;;  %v3364_v29 = vld [vmem:[#allocation2 + $0x109] sm:$0xff] }
 0x24b   : > { %4056 = vst [vmem:[#allocation89_spill] sm:$0xff] %v3364_v29 }
 0x24c   : > { %4053 = vst [vmem:[#allocation86_spill] sm:$0xff] %v3349_v43  ;;  %977 = vmatmul.f32.gmra.mxu3 %v3353_v61 }
 0x24d   : > { %1184 = vmatmul.f32.gmra.mxu1 %v3167_v40 }
 0x24e   : > { %1298 = vmatmul.f32.gmra.mxu2 %v2938_v8  ;;  %1616 = vmatmul.f32.gmra.mxu0 %v2926_v60  ;;  %v1391_v8 = vld [vmem:[#allocation8 + $0x2a8] sm:$0xff]  ;;  %v705_v60 = vadd.f32 %v3198_v39, %v2924_v56  ;;  %v706_v56 = vadd.f32 %v3198_v39, %v2934_v3  ;;  %v1390_v3 = vld [vmem:[#allocation8 + $0x2a0] sm:$0xff] }
 0x24f   : > { %v702_v51 = vpop.f32.mrf.mxu3  ;;  %1412 = vmatpush.msra.mxu3 %v1391_v8 }
 0x250   : > { %v736_v27 = vadd.f32 %v3198_v39, %v702_v51 }
 0x251   : > { %v861_v59 = vpop.f32.mrf.mxu2  ;;  %1413 = vmatpush.msra.mxu3 %v1390_v3  ;;  %v3426_v3 = vld [vmem:[#allocation2 + $0x149] sm:$0xff] }
 0x252   : > { %v3362_v46 = vadd.f32 %v861_v59, %v735_v62 }
 0x254   : > { %4055 = vst [vmem:[#allocation88_spill] sm:$0xff] %v3362_v46  ;;  %980 = vmatmul.f32.gmra.mxu3 %v3364_v29  ;;  %v867_v46 = vadd.f32 %v3260_v16, %v705_v60  ;;  %v1878_v29 = vld [vmem:[#allocation8 + $0x430] sm:$0xff] }
 0x255   : > { %1187 = vmatmul.f32.gmra.mxu1 %v3181_v42  ;;  %1897 = vmatpush.msra.mxu2 %v1878_v29 }
 0x256   : > { %1301 = vmatmul.f32.gmra.mxu2 %v2949_v14  ;;  %1619 = vmatmul.f32.gmra.mxu0 %v2936_v6  ;;  %v3378_v14 = vpop.f32.mrf.mxu1  ;;  %v3387_v6 = vpop.f32.mrf.mxu0 }
 0x257   : > { %v933_v59 = vpop.f32.mrf.mxu3 }
 0x258   : > { %v1029_v61 = vadd.f32 %v933_v59, %v867_v46  ;;  %v868_v46 = vadd.f32 %v3275_v63, %v706_v56 }
 0x259   : > { %v864_v62 = vpop.f32.mrf.mxu2 }
 0x25a   : > { %v3376_v43 = vadd.f32 %v864_v62, %v736_v27  ;;  %v1191_v16 = vadd.f32 %v3179_v28, %v1029_v61  ;;  %v3394_v27 = vld [vmem:[#allocation2 + $0x129] sm:$0xff] }
 0x25c   : > { %983 = vmatmul.f32.gmra.mxu3 %v3380_v1 }
 0x25d   : > { %1742 = vmatmul.f32.vlgmr.msra.gmra.mxu1 %v3023_v58 }
 0x25e   : > { %1304 = vmatmul.f32.gmra.mxu2 %v2960_v19  ;;  %1622 = vmatmul.f32.gmra.mxu0 %v2947_v13  ;;  %v3396_v19 = vpop.f32.mrf.mxu1  ;;  %v707_v13 = vadd.f32 %v3198_v39, %v2945_v10  ;;  %v3406_v62 = vpop.f32.mrf.mxu0  ;;  %v708_v10 = vadd.f32 %v3198_v39, %v2956_v53  ;;  %v4058_v53 = vld [vmem:[#allocation16_spill] sm:$0xff] }
 0x25f   : > { %v936_v51 = vpop.f32.mrf.mxu3 }
 0x260   : > { %v1030_v60 = vadd.f32 %v936_v51, %v868_v46  ;;  %v869_v61 = vadd.f32 %v3290_v45, %v707_v13 }
 0x261   : > { %v1257_v29 = vpop.f32.mrf.mxu2 }
 0x262   : > { %v3392_v8 = vadd.f32 %v1257_v29, %v1191_v16  ;;  %v1192_v58 = vadd.f32 %v3191_v0, %v1030_v60  ;;  %v4057_v0 = vld [vmem:[#allocation61_spill] sm:$0xff]  ;;  %v870_v29 = vadd.f32 %v3305_v32, %v708_v10 }
 0x264   : > { %986 = vmatmul.f32.gmra.mxu3 %v3394_v27 }
 0x265   : > { %1745 = vmatmul.f32.gmra.mxu1 %v3036_v11  ;;  %v3410_v11 = vld [vmem:[#allocation2 + $0x131] sm:$0xff] }
 0x266   : > { %1307 = vmatmul.f32.gmra.mxu2 %v2971_v24  ;;  %1625 = vmatmul.f32.gmra.mxu0 %v2958_v18  ;;  %v1877_v24 = vld [vmem:[#allocation8 + $0x428] sm:$0xff]  ;;  %v3417_v18 = vpop.f32.mrf.mxu1  ;;  %v3424_v60 = vpop.f32.mrf.mxu0 }
 0x267   : > { %v939_v28 = vpop.f32.mrf.mxu3  ;;  %1898 = vmatpush.msra.mxu2 %v1877_v24 }
 0x268   : > { %v1031_v56 = vadd.f32 %v939_v28, %v869_v61 }
 0x269   : > { %v1260_v63 = vpop.f32.mrf.mxu2 }
 0x26a   : > { %v3408_v59 = vadd.f32 %v1260_v63, %v1192_v58  ;;  %v1193_v45 = vadd.f32 %v4057_v0, %v1031_v56  ;;  %v1876_v56 = vld [vmem:[#allocation8 + $0x420] sm:$0xff] }
 0x26b   : > { %1899 = vmatpush.msra.mxu2 %v1876_v56 }
 0x26c   : > { %989 = vmatmul.f32.gmra.mxu3 %v3410_v11 }
 0x26d   : > { %1748 = vmatmul.f32.gmra.mxu1 %v3049_v22  ;;  %v1389_v22 = vld [vmem:[#allocation8 + $0x298] sm:$0xff] }
 0x26e   : > { %1310 = vmatmul.f32.gmra.mxu2 %v2981_v31  ;;  %1628 = vmatmul.f32.gmra.mxu0 %v2969_v23  ;;  %v4059_v23 = vld [vmem:[#allocation13_spill] sm:$0xff]  ;;  %v3436_v61 = vpop.f32.mrf.mxu1  ;;  %v3442_v0 = vpop.f32.mrf.mxu0 }
 0x26f   : > { %v942_v16 = vpop.f32.mrf.mxu3  ;;  %1414 = vmatpush.msra.mxu3 %v1389_v22  ;;  %v709_v13 = vadd.f32 %v3198_v39, %v4059_v23  ;;  %v3456_v23 = vld [vmem:[#allocation2 + $0x169] sm:$0xff] }
 0x270   : > { %v1032_v31 = vadd.f32 %v942_v16, %v870_v29 }
 0x271   : > { %v1263_v51 = vpop.f32.mrf.mxu2  ;;  %v871_v63 = vadd.f32 %v3321_v17, %v709_v13  ;;  %v1388_v13 = vld [vmem:[#allocation8 + $0x290] sm:$0xff] }
 0x272   : > { %v3422_v46 = vadd.f32 %v1263_v51, %v1193_v45  ;;  %v1194_v32 = vadd.f32 %v3220_v55, %v1032_v31  ;;  %v4061_v55 = vld [vmem:[#allocation14_spill] sm:$0xff]  ;;  %1415 = vmatpush.msra.mxu3 %v1388_v13 }
 0x273   : > { %v710_v17 = vadd.f32 %v3198_v39, %v4061_v55  ;;  %v3486_v13 = vld [vmem:[#allocation2 + $0x189] sm:$0xff] }
 0x274   : > { %992 = vmatmul.f32.gmra.mxu3 %v3426_v3 }
 0x275   : > { %1751 = vmatmul.f32.gmra.mxu1 %v3062_v34  ;;  %v3440_v34 = vld [vmem:[#allocation2 + $0x151] sm:$0xff]  ;;  %v872_v29 = vadd.f32 %v3336_v20, %v710_v17  ;;  %v4064_v17 = vld [vmem:[#allocation22_spill] sm:$0xff] }
 0x276   : > { %1313 = vmatmul.f32.gmra.mxu2 %v4058_v53  ;;  %1631 = vmatmul.f32.gmra.mxu0 %v2979_v30  ;;  %v4060_v30 = vld [vmem:[#allocation18_spill] sm:$0xff]  ;;  %v3454_v53 = vpop.f32.mrf.mxu1 }
 0x277   : > { %v945_v58 = vpop.f32.mrf.mxu3 }
 0x278   : > { %v1033_v10 = vadd.f32 %v945_v58, %v871_v63 }
 0x279   : > { %v1266_v28 = vpop.f32.mrf.mxu2 }
 0x27a   : > { %v3438_v24 = vadd.f32 %v1266_v28, %v1194_v32  ;;  %v1195_v45 = vadd.f32 %v3231_v26, %v1033_v10  ;;  %v3463_v32 = vpop.f32.mrf.mxu0  ;;  %v1875_v10 = vld [vmem:[#allocation8 + $0x418] sm:$0xff] }
 0x27b   : > { %1900 = vmatpush.msra.mxu2 %v1875_v10 }
 0x27c   : > { %995 = vmatmul.f32.gmra.mxu3 %v3440_v34 }
 0x27d   : > { %1754 = vmatmul.f32.gmra.mxu1 %v3083_v25  ;;  %v4062_v25 = vld [vmem:[#allocation20_spill] sm:$0xff] }
 0x27e   : > { %1316 = vmatmul.f32.gmra.mxu2 %v4060_v30  ;;  %1634 = vmatmul.f32.gmra.mxu0 %v2989_v36  ;;  %v4063_v36 = vld [vmem:[#allocation15_spill] sm:$0xff]  ;;  %v3472_v55 = vpop.f32.mrf.mxu1 }
 0x27f   : > { %v948_v16 = vpop.f32.mrf.mxu3  ;;  %v711_v26 = vadd.f32 %v3198_v39, %v4063_v36  ;;  %v1387_v36 = vld [vmem:[#allocation8 + $0x288] sm:$0xff] }
 0x280   : > { %v1034_v22 = vadd.f32 %v948_v16, %v872_v29  ;;  %1416 = vmatpush.msra.mxu3 %v1387_v36 }
 0x281   : > { %v1269_v51 = vpop.f32.mrf.mxu2  ;;  %v873_v63 = vadd.f32 %v3351_v37, %v711_v26 }
 0x282   : > { %v3452_v31 = vadd.f32 %v1269_v51, %v1195_v45  ;;  %v1196_v20 = vadd.f32 %v3242_v38, %v1034_v22  ;;  %v3482_v29 = vpop.f32.mrf.mxu0 }
 0x284   : > { %998 = vmatmul.f32.gmra.mxu3 %v3456_v23 }
 0x285   : > { %1757 = vmatmul.f32.gmra.mxu1 %v3108_v49  ;;  %v3470_v49 = vld [vmem:[#allocation2 + $0x171] sm:$0xff] }
 0x286   : > { %1319 = vmatmul.f32.gmra.mxu2 %v4062_v25  ;;  %1637 = vmatmul.f32.gmra.mxu0 %v3002_v44  ;;  %v4065_v44 = vld [vmem:[#allocation17_spill] sm:$0xff]  ;;  %v3493_v26 = vpop.f32.mrf.mxu1 }
 0x287   : > { %v951_v58 = vpop.f32.mrf.mxu3  ;;  %v712_v38 = vadd.f32 %v3198_v39, %v4065_v44  ;;  %v3502_v44 = vld [vmem:[#allocation2 + $0x191] sm:$0xff] }
 0x288   : > { %v1035_v30 = vadd.f32 %v951_v58, %v873_v63 }
 0x289   : > { %v1272_v28 = vpop.f32.mrf.mxu2  ;;  %v874_v51 = vadd.f32 %v3366_v54, %v712_v38  ;;  %v4068_v54 = vld [vmem:[#allocation73_spill] sm:$0xff]  ;;  %v4069_v38 = vld [vmem:[#allocation28_spill] sm:$0xff] }
 0x28a   : > { %v3468_v56 = vadd.f32 %v1272_v28, %v1196_v20  ;;  %v1197_v37 = vadd.f32 %v3253_v33, %v1035_v30  ;;  %v1874_v30 = vld [vmem:[#allocation8 + $0x410] sm:$0xff] }
 0x28b   : > { %1901 = vmatpush.msra.mxu2 %v1874_v30 }
 0x28c   : > { %1001 = vmatmul.f32.gmra.mxu3 %v3470_v49 }
 0x28d   : > { %1760 = vmatmul.f32.gmra.mxu1 %v3132_v41  ;;  %v4066_v41 = vld [vmem:[#allocation25_spill] sm:$0xff] }
 0x28e   : > { %1322 = vmatmul.f32.gmra.mxu2 %v4064_v17  ;;  %1640 = vmatmul.f32.gmra.mxu0 %v3015_v52  ;;  %v4067_v52 = vld [vmem:[#allocation19_spill] sm:$0xff]  ;;  %v3500_v17 = vpop.f32.mrf.mxu0  ;;  %v3512_v36 = vpop.f32.mrf.mxu1 }
 0x28f   : > { %v954_v45 = vpop.f32.mrf.mxu3  ;;  %v713_v33 = vadd.f32 %v3198_v39, %v4067_v52 }
 0x290   : > { %v1036_v25 = vadd.f32 %v954_v45, %v874_v51  ;;  %v4071_v45 = vld [vmem:[#allocation24_spill] sm:$0xff] }
 0x291   : > { %v1275_v16 = vpop.f32.mrf.mxu2  ;;  %v875_v63 = vadd.f32 %v3387_v6, %v713_v33  ;;  %v4072_v6 = vld [vmem:[#allocation76_spill] sm:$0xff] }
 0x292   : > { %v3484_v22 = vadd.f32 %v1275_v16, %v1197_v37  ;;  %v1198_v20 = vadd.f32 %v4068_v54, %v1036_v25  ;;  %v3516_v54 = vld [vmem:[#allocation2 + $0x1a9] sm:$0xff] }
 0x294   : > { %1004 = vmatmul.f32.gmra.mxu3 %v3486_v13 }
 0x295   : > { %1763 = vmatmul.f32.gmra.mxu1 %v3157_v12 }
 0x296   : > { %1325 = vmatmul.f32.gmra.mxu2 %v4066_v41  ;;  %1643 = vmatmul.f32.gmra.mxu0 %v3028_v5  ;;  %v4070_v5 = vld [vmem:[#allocation21_spill] sm:$0xff] }
 0x297   : > { %v957_v58 = vpop.f32.mrf.mxu3  ;;  %v714_v37 = vadd.f32 %v3198_v39, %v4070_v5 }
 0x298   : > { %v1037_v12 = vadd.f32 %v957_v58, %v875_v63  ;;  %v1386_v58 = vld [vmem:[#allocation8 + $0x280] sm:$0xff]  ;;  %v4075_v63 = vld [vmem:[#allocation27_spill] sm:$0xff] }
 0x299   : > { %v1278_v28 = vpop.f32.mrf.mxu2  ;;  %v876_v41 = vadd.f32 %v3406_v62, %v714_v37  ;;  %1417 = vmatpush.msra.mxu3 %v1386_v58 }
 0x29a   : > { %v3498_v10 = vadd.f32 %v1278_v28, %v1198_v20  ;;  %v1199_v16 = vadd.f32 %v4072_v6, %v1037_v12  ;;  %v3518_v20 = vpop.f32.mrf.mxu0  ;;  %v4074_v28 = vld [vmem:[#allocation23_spill] sm:$0xff]  ;;  %v4076_v12 = vld [vmem:[#allocation29_spill] sm:$0xff]  ;;  %v1873_v6 = vld [vmem:[#allocation8 + $0x408] sm:$0xff] }
 0x29b   : > { %v715_v62 = vadd.f32 %v3198_v39, %v4074_v28  ;;  %2317 = vmatpush.msrb.mxu3 %v4076_v12  ;;  %1902 = vmatpush.msra.mxu2 %v1873_v6  ;;  %v4082_v28 = vld [vmem:[#allocation32_spill] sm:$0xff] }
 0x29c   : > { %1007 = vmatmul.f32.gmra.mxu3 %v3502_v44 }
 0x29d   : > { %1766 = vmatmul.f32.gmra.mxu1 %v3174_v4  ;;  %v4073_v4 = vld [vmem:[#allocation33_spill] sm:$0xff]  ;;  %v877_v37 = vadd.f32 %v3424_v60, %v715_v62  ;;  %v4080_v60 = vld [vmem:[#allocation35_spill] sm:$0xff]  ;;  %v4083_v62 = vld [vmem:[#allocation82_spill] sm:$0xff] }
 0x29e   : > { %1328 = vmatmul.f32.gmra.mxu2 %v4069_v38  ;;  %1646 = vmatmul.f32.gmra.mxu0 %v4071_v45 }
 0x29f   : > { %v960_v51 = vpop.f32.mrf.mxu3 }
 0x2a0   : > { %v1038_v33 = vadd.f32 %v960_v51, %v876_v41  ;;  %v3535_v41 = vld [vmem:[#allocation2 + $0x1b1] sm:$0xff] }
 0x2a1   : > { %v1281_v25 = vpop.f32.mrf.mxu2 }
 0x2a2   : > { %v3514_v52 = vadd.f32 %v1281_v25, %v1199_v16  ;;  %v1200_v30 = vadd.f32 %v3299_v7, %v1038_v33  ;;  %v4077_v16 = vld [vmem:[#allocation31_spill] sm:$0xff]  ;;  %v4078_v25 = vld [vmem:[#allocation34_spill] sm:$0xff]  ;;  %v4079_v7 = vld [vmem:[#allocation40_spill] sm:$0xff]  ;;  %v3543_v58 = vpop.f32.mrf.mxu0 }
 0x2a3   : > { %2318 = vmatpush.msrb.mxu3 %v4077_v16  ;;  %v4081_v33 = vld [vmem:[#allocation26_spill] sm:$0xff] }
 0x2a4   : > { %1010 = vmatmul.f32.gmra.mxu3 %v3516_v54  ;;  %v3552_v16 = vld [vmem:[#allocation2 + $0x1c9] sm:$0xff] }
 0x2a5   : > { %1769 = vmatmul.f32.gmra.mxu1 %v3186_v21  ;;  %v3532_v21 = vpop.f32.mrf.mxu1  ;;  %2319 = vmatpush.msrb.mxu3 %v4078_v25  ;;  %v4086_v25 = vld [vmem:[#allocation41_spill] sm:$0xff] }
 0x2a6   : > { %1331 = vmatmul.f32.gmra.mxu2 %v4073_v4  ;;  %1649 = vmatmul.f32.gmra.mxu0 %v4075_v63  ;;  %v716_v4 = vadd.f32 %v3198_v39, %v4081_v33  ;;  %v4088_v33 = vld [vmem:[#allocation42_spill] sm:$0xff] }
 0x2a7   : > { %v963_v38 = vpop.f32.mrf.mxu3  ;;  %2320 = vmatpush.msrb.mxu3 %v4080_v60  ;;  %v2505_v60 = vld [vmem:[#allocation2 + $0xef] sm:$0xff] }
 0x2a8   : > { %v1039_v51 = vadd.f32 %v963_v38, %v877_v37  ;;  %v4084_v38 = vld [vmem:[#allocation36_spill] sm:$0xff] }
 0x2a9   : > { %v1284_v5 = vpop.f32.mrf.mxu2  ;;  %2321 = vmatpush.msrb.mxu3 %v4084_v38 }
 0x2aa   : > { %v3529_v45 = vadd.f32 %v1284_v5, %v1200_v30  ;;  %v1201_v63 = vadd.f32 %v4083_v62, %v1039_v51  ;;  %v878_v5 = vadd.f32 %v3442_v0, %v716_v4  ;;  %v4087_v51 = vld [vmem:[#allocation46_spill] sm:$0xff] }
 0x2ab   : > { %v4089_v0 = vld [vmem:[#allocation30_spill] sm:$0xff] }
 0x2ac   : > { %1013 = vmatmul.f32.gmra.mxu3 %v3535_v41  ;;  %v717_v4 = vadd.f32 %v3198_v39, %v4089_v0  ;;  %v4093_v0 = vld [vmem:[#allocation47_spill] sm:$0xff] }
 0x2ad   : > { %1772 = vmatmul.f32.gmra.mxu1 %v3203_v9  ;;  %v4085_v9 = vld [vmem:[#allocation38_spill] sm:$0xff] }
 0x2ae   : > { %1334 = vmatmul.f32.gmra.mxu2 %v4079_v7  ;;  %1652 = vmatmul.f32.gmra.mxu0 %v4082_v28  ;;  %v3555_v7 = vpop.f32.mrf.mxu1  ;;  %v4090_v28 = vld [vmem:[#allocation39_spill] sm:$0xff]  ;;  %v879_v38 = vadd.f32 %v3463_v32, %v717_v4  ;;  %v4095_v32 = vld [vmem:[#allocation48_spill] sm:$0xff]  ;;  %v4096_v4 = vld [vmem:[#allocation37_spill] sm:$0xff] }
 0x2af   : > { %v966_v30 = vpop.f32.mrf.mxu3  ;;  %2322 = vmatpush.msrb.mxu3 %v4085_v9 }
 0x2b0   : > { %v1040_v6 = vadd.f32 %v966_v30, %v878_v5  ;;  %v3566_v5 = vpop.f32.mrf.mxu0 }
 0x2b1   : > { %v1287_v12 = vpop.f32.mrf.mxu2  ;;  %2323 = vmatpush.msrb.mxu3 %v4086_v25  ;;  %v1872_v25 = vld [vmem:[#allocation8 + $0x400] sm:$0xff] }
 0x2b2   : > { %v3549_v37 = vadd.f32 %v1287_v12, %v1201_v63  ;;  %v1202_v62 = vadd.f32 %v3329_v2, %v1040_v6  ;;  %v4091_v12 = vld [vmem:[#allocation43_spill] sm:$0xff]  ;;  %1903 = vmatpush.msra.mxu2 %v1872_v25  ;;  %v4094_v2 = vld [vmem:[#allocation52_spill] sm:$0xff]  ;;  %v2506_v6 = vld [vmem:[#allocation2 + $0x107] sm:$0xff] }
 0x2b3   : > { %2324 = vmatpush.msrb.mxu3 %v4088_v33  ;;  %v3571_v33 = vld [vmem:[#allocation2 + $0x1d1] sm:$0xff] }
 0x2b4   : > { %1016 = vmatmul.f32.gmra.mxu3 %v3552_v16 }
 0x2b5   : > { %1775 = vmatmul.f32.gmra.mxu1 %v2505_v60  ;;  %2325 = vmatpush.msrb.mxu3 %v4091_v12 }
 0x2b6   : > { %1337 = vmatmul.f32.gmra.mxu2 %v4087_v51  ;;  %1655 = vmatmul.f32.gmra.mxu0 %v4090_v28  ;;  %v4092_v51 = vld [vmem:[#allocation45_spill] sm:$0xff]  ;;  %v718_v28 = vadd.f32 %v3198_v39, %v4096_v4 }
 0x2b7   : > { %v969_v63 = vpop.f32.mrf.mxu3  ;;  %2326 = vmatpush.msrb.mxu3 %v4092_v51  ;;  %v4100_v4 = vld [vmem:[#allocation53_spill] sm:$0xff] }
 0x2b8   : > { %v1041_v60 = vadd.f32 %v969_v63, %v879_v38  ;;  %v4097_v38 = vld [vmem:[#allocation49_spill] sm:$0xff]  ;;  %v880_v25 = vadd.f32 %v3482_v29, %v718_v28  ;;  %v4103_v29 = vld [vmem:[#allocation44_spill] sm:$0xff] }
 0x2b9   : > { %v1290_v30 = vpop.f32.mrf.mxu2  ;;  %2327 = vmatpush.msrb.mxu3 %v4093_v0  ;;  %v4099_v0 = vld [vmem:[#allocation51_spill] sm:$0xff]  ;;  %v719_v28 = vadd.f32 %v3198_v39, %v4103_v29 }
 0x2ba   : > { %v3568_v9 = vadd.f32 %v1290_v30, %v1202_v62  ;;  %v3579_v62 = vpop.f32.mrf.mxu1  ;;  %v1203_v63 = vadd.f32 %v3345_v47, %v1041_v60  ;;  %v2507_v47 = vld [vmem:[#allocation2 + $0x10f] sm:$0xff] }
 0x2bb   : > { %2328 = vmatpush.msrb.mxu3 %v4095_v32  ;;  %v3590_v32 = vld [vmem:[#allocation2 + $0x1e9] sm:$0xff] }
 0x2bc   : > { %1019 = vmatmul.f32.gmra.mxu3 %v3571_v33  ;;  %v4102_v60 = vld [vmem:[#allocation54_spill] sm:$0xff] }
 0x2bd   : > { %1778 = vmatmul.f32.gmra.mxu1 %v2506_v6  ;;  %2329 = vmatpush.msrb.mxu3 %v4097_v38  ;;  %v881_v38 = vadd.f32 %v3500_v17, %v719_v28 }
 0x2be   : > { %1340 = vmatmul.f32.gmra.mxu2 %v4094_v2  ;;  %1658 = vmatmul.f32.gmra.mxu0 %v3121_v15  ;;  %v3588_v2 = vpop.f32.mrf.mxu0  ;;  %v4101_v15 = vld [vmem:[#allocation56_spill] sm:$0xff] }
 0x2bf   : > { %v972_v30 = vpop.f32.mrf.mxu3  ;;  %2330 = vmatpush.msrb.mxu3 %v4099_v0 }
 0x2c0   : > { %v1042_v6 = vadd.f32 %v972_v30, %v880_v25 }
 0x2c1   : > { %v1293_v12 = vpop.f32.mrf.mxu2  ;;  %2331 = vmatpush.msrb.mxu3 %v4100_v4  ;;  %v3605_v4 = vld [vmem:[#allocation2 + $0x207] sm:$0xff] }
 0x2c2   : > { %v3585_v51 = vadd.f32 %v1293_v12, %v1203_v63  ;;  %v1204_v63 = vadd.f32 %v3360_v35, %v1042_v6  ;;  %v3601_v25 = vpop.f32.mrf.mxu1  ;;  %v4107_v35 = vld [vmem:[#allocation57_spill] sm:$0xff] }
 0x2c3   : > { %2332 = vmatpush.msrb.mxu3 %v4102_v60  ;;  %v4106_v60 = vld [vmem:[#allocation50_spill] sm:$0xff] }
 0x2c4   : > { %4098 = vst [vmem:[#allocation61_spill] sm:$0xff] %v3585_v51  ;;  %1022 = vmatmul.f32.gmra.mxu3 %v3590_v32  ;;  %v720_v29 = vadd.f32 %v3198_v39, %v4106_v60 }
 0x2c5   : > { %1781 = vmatmul.f32.gmra.mxu1 %v2507_v47  ;;  %v3607_v47 = vld [vmem:[#allocation2 + $0x1f1] sm:$0xff] }
 0x2c6   : > { %1343 = vmatmul.f32.gmra.mxu2 %v4101_v15  ;;  %1661 = vmatmul.f32.gmra.mxu0 %v3146_v50  ;;  %4105 = vst [vmem:[#allocation13_spill] sm:$0xff] %v3607_v47  ;;  %v3611_v51 = vpop.f32.mrf.mxu0  ;;  %v2508_v50 = vld [vmem:[#allocation2 + $0x127] sm:$0xff]  ;;  %v882_v17 = vadd.f32 %v4107_v35, %v720_v29  ;;  %v2509_v29 = vld [vmem:[#allocation2 + $0x12f] sm:$0xff] }
 0x2c7   : > { %v975_v30 = vpop.f32.mrf.mxu3 }
 0x2c8   : > { %v1043_v15 = vadd.f32 %v975_v30, %v881_v38  ;;  %v3620_v38 = vld [vmem:[#allocation2 + $0x20f] sm:$0xff] }
 0x2c9   : > { %v1296_v12 = vpop.f32.mrf.mxu2 }
 0x2ca   : > { %v3603_v0 = vadd.f32 %v1296_v12, %v1204_v63  ;;  %v1205_v6 = vadd.f32 %v3378_v14, %v1043_v15  ;;  %v3622_v60 = vpop.f32.mrf.mxu1  ;;  %v4111_v14 = vld [vmem:[#allocation58_spill] sm:$0xff] }
 0x2cc   : > { %4104 = vst [vmem:[#allocation16_spill] sm:$0xff] %v3603_v0  ;;  %1025 = vmatmul.f32.gmra.mxu3 %v3607_v47  ;;  %v4109_v0 = vld [vmem:[#allocation55_spill] sm:$0xff] }
 0x2cd   : > { %1784 = vmatmul.f32.gmra.mxu1 %v2508_v50  ;;  %v721_v47 = vadd.f32 %v3198_v39, %v4109_v0  ;;  %v4110_v50 = vld [vmem:[#allocation59_spill] sm:$0xff]  ;;  %v4113_v0 = vld [vmem:[#allocation62_spill] sm:$0xff] }
 0x2ce   : > { %1346 = vmatmul.f32.gmra.mxu2 %v3605_v4  ;;  %1664 = vmatmul.f32.gmra.mxu0 %v3167_v40  ;;  %v3629_v15 = vpop.f32.mrf.mxu0 }
 0x2cf   : > { %v978_v28 = vpop.f32.mrf.mxu3  ;;  %v883_v40 = vadd.f32 %v4111_v14, %v721_v47 }
 0x2d0   : > { %v1044_v30 = vadd.f32 %v978_v28, %v882_v17 }
 0x2d1   : > { %v1299_v63 = vpop.f32.mrf.mxu2 }
 0x2d2   : > { %v3618_v12 = vadd.f32 %v1299_v63, %v1205_v6  ;;  %v1206_v35 = vadd.f32 %v3396_v19, %v1044_v30  ;;  %v3635_v39 = vpop.f32.mrf.mxu1  ;;  %v4115_v19 = vld [vmem:[#allocation60_spill] sm:$0xff] }
 0x2d4   : > { %4108 = vst [vmem:[#allocation18_spill] sm:$0xff] %v3618_v12  ;;  %1418 = vmatmul.f32.vlgmr.msra.gmra.mxu3 %v4110_v50  ;;  %v4114_v50 = vld [vmem:[#allocation64_spill] sm:$0xff] }
 0x2d5   : > { %1787 = vmatmul.f32.gmra.mxu1 %v2509_v29  ;;  %v2510_v29 = vld [vmem:[#allocation2 + $0x147] sm:$0xff] }
 0x2d6   : > { %1349 = vmatmul.f32.gmra.mxu2 %v3620_v38  ;;  %1667 = vmatmul.f32.gmra.mxu0 %v3181_v42 }
 0x2d7   : > { %v981_v17 = vpop.f32.mrf.mxu3 }
 0x2d8   : > { %v1045_v28 = vadd.f32 %v981_v17, %v883_v40  ;;  %v4117_v40 = vld [vmem:[#allocation66_spill] sm:$0xff] }
 0x2d9   : > { %v1302_v6 = vpop.f32.mrf.mxu2 }
 0x2da   : > { %v3633_v63 = vadd.f32 %v1302_v6, %v1206_v35  ;;  %v1207_v47 = vadd.f32 %v3417_v18, %v1045_v28  ;;  %v2511_v35 = vld [vmem:[#allocation2 + $0x14f] sm:$0xff]  ;;  %v3645_v17 = vpop.f32.mrf.mxu1 }
 0x2dc   : > { %4112 = vst [vmem:[#allocation14_spill] sm:$0xff] %v3633_v63  ;;  %1421 = vmatmul.f32.gmra.mxu3 %v4113_v0  ;;  %v4118_v63 = vld [vmem:[#allocation63_spill] sm:$0xff] }
 0x2dd   : > { %1790 = vmatmul.f32.gmra.mxu1 %v2510_v29 }
 0x2de   : > { %1904 = vmatmul.f32.vlgmr.msra.gmra.mxu2 %v4114_v50 }
 0x2df   : > { %v984_v14 = vpop.f32.mrf.mxu3 }
 0x2e0   : > { %v1046_v30 = vadd.f32 %v984_v14, %v4115_v19 }
 0x2e1   : > { %v1305_v12 = vpop.f32.mrf.mxu2 }
 0x2e2   : > { %v3641_v42 = vadd.f32 %v1305_v12, %v1207_v47  ;;  %v1208_v6 = vadd.f32 %v3436_v61, %v1046_v30  ;;  %v4120_v12 = vld [vmem:[#allocation68_spill] sm:$0xff]  ;;  %v2512_v47 = vld [vmem:[#allocation2 + $0x167] sm:$0xff] }
 0x2e4   : > { %4116 = vst [vmem:[#allocation20_spill] sm:$0xff] %v3641_v42  ;;  %1424 = vmatmul.f32.gmra.mxu3 %v4114_v50  ;;  %v4121_v42 = vld [vmem:[#allocation65_spill] sm:$0xff] }
 0x2e5   : > { %1793 = vmatmul.f32.gmra.mxu1 %v2511_v35  ;;  %v3654_v35 = vpop.f32.mrf.mxu1 }
 0x2e6   : > { %1907 = vmatmul.f32.gmra.mxu2 %v4117_v40 }
 0x2e7   : > { %v987_v0 = vpop.f32.mrf.mxu3 }
 0x2e8   : > { %v1047_v18 = vadd.f32 %v987_v0, %v4118_v63  ;;  %v4123_v63 = vld [vmem:[#allocation70_spill] sm:$0xff] }
 0x2e9   : > { %v1308_v29 = vpop.f32.mrf.mxu2 }
 0x2ea   : > { %v3649_v28 = vadd.f32 %v1308_v29, %v1208_v6  ;;  %v1209_v50 = vadd.f32 %v3454_v53, %v1047_v18  ;;  %v2513_v6 = vld [vmem:[#allocation2 + $0x16f] sm:$0xff] }
 0x2ec   : > { %4119 = vst [vmem:[#allocation15_spill] sm:$0xff] %v3649_v28  ;;  %1427 = vmatmul.f32.gmra.mxu3 %v4117_v40 }
 0x2ed   : > { %1796 = vmatmul.f32.gmra.mxu1 %v2512_v47  ;;  %v4124_v47 = vld [vmem:[#allocation67_spill] sm:$0xff]  ;;  %v3665_v28 = vpop.f32.mrf.mxu1 }
 0x2ee   : > { %1910 = vmatmul.f32.gmra.mxu2 %v4120_v12 }
 0x2ef   : > { %v990_v14 = vpop.f32.mrf.mxu3 }
 0x2f0   : > { %v1048_v61 = vadd.f32 %v990_v14, %v4121_v42  ;;  %v4125_v42 = vld [vmem:[#allocation72_spill] sm:$0xff] }
 0x2f1   : > { %v1311_v19 = vpop.f32.mrf.mxu2 }
 0x2f2   : > { %v3657_v30 = vadd.f32 %v1311_v19, %v1209_v50  ;;  %v1210_v40 = vadd.f32 %v3472_v55, %v1048_v61  ;;  %v2514_v50 = vld [vmem:[#allocation2 + $0x187] sm:$0xff] }
 0x2f4   : > { %4122 = vst [vmem:[#allocation22_spill] sm:$0xff] %v3657_v30  ;;  %1430 = vmatmul.f32.gmra.mxu3 %v4120_v12 }
 0x2f5   : > { %1799 = vmatmul.f32.gmra.mxu1 %v2513_v6  ;;  %v4126_v6 = vld [vmem:[#allocation69_spill] sm:$0xff]  ;;  %v3673_v30 = vpop.f32.mrf.mxu1 }
 0x2f6   : > { %1913 = vmatmul.f32.gmra.mxu2 %v4123_v63 }
 0x2f7   : > { %v993_v0 = vpop.f32.mrf.mxu3 }
 0x2f8   : > { %v1049_v53 = vadd.f32 %v993_v0, %v4124_v47  ;;  %v2515_v0 = vld [vmem:[#allocation2 + $0x18f] sm:$0xff] }
 0x2f9   : > { %v1314_v29 = vpop.f32.mrf.mxu2 }
 0x2fa   : > { %v3663_v18 = vadd.f32 %v1314_v29, %v1210_v40  ;;  %v1211_v12 = vadd.f32 %v3493_v26, %v1049_v53  ;;  %v4128_v40 = vld [vmem:[#allocation75_spill] sm:$0xff] }
 0x2fc   : > { %1433 = vmatmul.f32.gmra.mxu3 %v4123_v63 }
 0x2fd   : > { %1802 = vmatmul.f32.gmra.mxu1 %v2514_v50  ;;  %v4129_v50 = vld [vmem:[#allocation71_spill] sm:$0xff] }
 0x2fe   : > { %1916 = vmatmul.f32.gmra.mxu2 %v4125_v42 }
 0x2ff   : > { %v996_v14 = vpop.f32.mrf.mxu3 }
 0x300   : > { %v1050_v55 = vadd.f32 %v996_v14, %v4126_v6  ;;  %v2516_v14 = vld [vmem:[#allocation2 + $0x1a7] sm:$0xff] }
 0x301   : > { %v1317_v19 = vpop.f32.mrf.mxu2 }
 0x302   : > { %v3671_v61 = vadd.f32 %v1317_v19, %v1211_v12  ;;  %v1212_v63 = vadd.f32 %v3512_v36, %v1050_v55  ;;  %v4131_v12 = vld [vmem:[#allocation78_spill] sm:$0xff]  ;;  %v3683_v19 = vpop.f32.mrf.mxu1 }
 0x304   : > { %4127 = vst [vmem:[#allocation17_spill] sm:$0xff] %v3671_v61  ;;  %1436 = vmatmul.f32.gmra.mxu3 %v4125_v42  ;;  %v4132_v61 = vld [vmem:[#allocation74_spill] sm:$0xff] }
 0x305   : > { %1805 = vmatmul.f32.gmra.mxu1 %v2515_v0 }
 0x306   : > { %1919 = vmatmul.f32.gmra.mxu2 %v4128_v40 }
 0x307   : > { %v999_v29 = vpop.f32.mrf.mxu3 }
 0x308   : > { %v1051_v26 = vadd.f32 %v999_v29, %v4129_v50  ;;  %v2517_v29 = vld [vmem:[#allocation2 + $0x1af] sm:$0xff] }
 0x309   : > { %v1320_v47 = vpop.f32.mrf.mxu2 }
 0x30a   : > { %v3679_v53 = vadd.f32 %v1320_v47, %v1212_v63  ;;  %v1213_v42 = vadd.f32 %v3532_v21, %v1051_v26  ;;  %v4134_v63 = vld [vmem:[#allocation80_spill] sm:$0xff] }
 0x30c   : > { %4130 = vst [vmem:[#allocation25_spill] sm:$0xff] %v3679_v53  ;;  %1439 = vmatmul.f32.gmra.mxu3 %v4128_v40  ;;  %v4135_v53 = vld [vmem:[#allocation77_spill] sm:$0xff] }
 0x30d   : > { %1808 = vmatmul.f32.gmra.mxu1 %v2516_v14  ;;  %v3692_v14 = vpop.f32.mrf.mxu1 }
 0x30e   : > { %1922 = vmatmul.f32.gmra.mxu2 %v4131_v12 }
 0x30f   : > { %v1002_v6 = vpop.f32.mrf.mxu3 }
 0x310   : > { %v1052_v36 = vadd.f32 %v1002_v6, %v4132_v61  ;;  %v4136_v61 = vld [vmem:[#allocation83_spill] sm:$0xff] }
 0x311   : > { %v1323_v0 = vpop.f32.mrf.mxu2 }
 0x312   : > { %v3687_v55 = vadd.f32 %v1323_v0, %v1213_v42  ;;  %v1214_v40 = vadd.f32 %v3555_v7, %v1052_v36  ;;  %v2518_v42 = vld [vmem:[#allocation2 + $0x1c7] sm:$0xff] }
 0x314   : > { %4133 = vst [vmem:[#allocation19_spill] sm:$0xff] %v3687_v55  ;;  %1442 = vmatmul.f32.gmra.mxu3 %v4131_v12 }
 0x315   : > { %1811 = vmatmul.f32.gmra.mxu1 %v2517_v29  ;;  %v4137_v29 = vld [vmem:[#allocation79_spill] sm:$0xff]  ;;  %v3703_v55 = vpop.f32.mrf.mxu1 }
 0x316   : > { %1925 = vmatmul.f32.gmra.mxu2 %v4134_v63 }
 0x317   : > { %v1005_v47 = vpop.f32.mrf.mxu3 }
 0x318   : > { %v1053_v21 = vadd.f32 %v1005_v47, %v4135_v53  ;;  %v2519_v53 = vld [vmem:[#allocation2 + $0x1cf] sm:$0xff] }
 0x319   : > { %v1326_v50 = vpop.f32.mrf.mxu2 }
 0x31a   : > { %v3695_v26 = vadd.f32 %v1326_v50, %v1214_v40  ;;  %v1215_v12 = vadd.f32 %v3579_v62, %v1053_v21  ;;  %v4138_v50 = vld [vmem:[#allocation81_spill] sm:$0xff] }
 0x31c   : > { %1445 = vmatmul.f32.gmra.mxu3 %v4134_v63 }
 0x31d   : > { %1814 = vmatmul.f32.gmra.mxu1 %v2518_v42  ;;  %v3711_v42 = vpop.f32.mrf.mxu1 }
 0x31e   : > { %1928 = vmatmul.f32.gmra.mxu2 %v4136_v61 }
 0x31f   : > { %v1008_v6 = vpop.f32.mrf.mxu3 }
 0x320   : > { %v1054_v7 = vadd.f32 %v1008_v6, %v4137_v29  ;;  %v4139_v29 = vld [vmem:[#allocation84_spill] sm:$0xff] }
 0x321   : > { %v1329_v0 = vpop.f32.mrf.mxu2 }
 0x322   : > { %v3701_v36 = vadd.f32 %v1329_v0, %v1215_v12  ;;  %v1216_v63 = vadd.f32 %v3601_v25, %v1054_v7  ;;  %v2520_v12 = vld [vmem:[#allocation2 + $0x1e7] sm:$0xff] }
 0x324   : > { %1448 = vmatmul.f32.gmra.mxu3 %v4136_v61 }
 0x325   : > { %1817 = vmatmul.f32.gmra.mxu1 %v2519_v53  ;;  %v4141_v53 = vld [vmem:[#allocation87_spill] sm:$0xff] }
 0x326   : > { %1931 = vmatmul.f32.gmra.mxu2 %v3327_v48 }
 0x327   : > { %v1011_v40 = vpop.f32.mrf.mxu3 }
 0x328   : > { %v1055_v62 = vadd.f32 %v1011_v40, %v4138_v50  ;;  %v3721_v40 = vpop.f32.mrf.mxu1 }
 0x329   : > { %v1332_v47 = vpop.f32.mrf.mxu2 }
 0x32a   : > { %v3709_v21 = vadd.f32 %v1332_v47, %v1216_v63  ;;  %v1217_v61 = vadd.f32 %v3622_v60, %v1055_v62  ;;  %v2521_v63 = vld [vmem:[#allocation2 + $0x1ef] sm:$0xff] }
 0x32c   : > { %1451 = vmatmul.f32.gmra.mxu3 %v3327_v48 }
 0x32d   : > { %1820 = vmatmul.f32.gmra.mxu1 %v2520_v12  ;;  %v4142_v12 = vld [vmem:[#allocation85_spill] sm:$0xff] }
 0x32e   : > { %1934 = vmatmul.f32.gmra.mxu2 %v3340_v57 }
 0x32f   : > { %v1014_v6 = vpop.f32.mrf.mxu3 }
 0x330   : > { %v1056_v25 = vadd.f32 %v1014_v6, %v4139_v29  ;;  %v4144_v29 = vld [vmem:[#allocation86_spill] sm:$0xff] }
 0x331   : > { %v1335_v0 = vpop.f32.mrf.mxu2 }
 0x332   : > { %v3717_v7 = vadd.f32 %v1335_v0, %v1217_v61  ;;  %v1218_v48 = vadd.f32 %v3635_v39, %v1056_v25  ;;  %v4143_v61 = vld [vmem:[#allocation89_spill] sm:$0xff]  ;;  %v3734_v39 = vpop.f32.mrf.mxu1 }
 0x334   : > { %4140 = vst [vmem:[#allocation73_spill] sm:$0xff] %v3717_v7  ;;  %1454 = vmatmul.f32.gmra.mxu3 %v3340_v57 }
 0x335   : > { %1823 = vmatmul.f32.gmra.mxu1 %v2521_v63 }
 0x336   : > { %1937 = vmatmul.f32.gmra.mxu2 %v4141_v53 }
 0x337   : > { %v1017_v47 = vpop.f32.mrf.mxu3 }
 0x338   : > { %v1057_v60 = vadd.f32 %v1017_v47, %v4142_v12  ;;  %v534_v12 = vld [vmem:[#allocation2 + $0x227] sm:$0xff] }
 0x339   : > { %v1338_v50 = vpop.f32.mrf.mxu2 }
 0x33a   : > { %v3725_v62 = vadd.f32 %v1338_v50, %v1218_v48  ;;  %v1219_v57 = vadd.f32 %v3645_v17, %v1057_v60  ;;  %v4145_v48 = vld [vmem:[#allocation88_spill] sm:$0xff]  ;;  %v3743_v50 = vpop.f32.mrf.mxu1 }
 0x33c   : > { %1457 = vmatmul.f32.gmra.mxu3 %v4141_v53 }
 0x33d   : > { %1826 = vmatmul.f32.gmra.mxu1 %v3605_v4 }
 0x33e   : > { %1940 = vmatmul.f32.gmra.mxu2 %v4143_v61 }
 0x33f   : > { %v1020_v6 = vpop.f32.mrf.mxu3 }
 0x340   : > { %v1058_v63 = vadd.f32 %v1020_v6, %v4144_v29  ;;  %v535_v6 = vld [vmem:[#allocation2 + $0x22f] sm:$0xff] }
 0x341   : > { %v1341_v0 = vpop.f32.mrf.mxu2 }
 0x342   : > { %v3732_v7 = vadd.f32 %v1341_v0, %v1219_v57  ;;  %v1220_v25 = vadd.f32 %v3654_v35, %v1058_v63  ;;  %v3753_v0 = vpop.f32.mrf.mxu1 }
 0x344   : > { %1460 = vmatmul.f32.gmra.mxu3 %v4143_v61 }
 0x345   : > { %1829 = vmatmul.f32.gmra.mxu1 %v3620_v38 }
 0x346   : > { %1943 = vmatmul.f32.gmra.mxu2 %v3380_v1 }
 0x347   : > { %v1023_v53 = vpop.f32.mrf.mxu3 }
 0x348   : > { %v1059_v17 = vadd.f32 %v1023_v53, %v4145_v48  ;;  %v3759_v53 = vpop.f32.mrf.mxu0 }
 0x349   : > { %v1344_v4 = vpop.f32.mrf.mxu2 }
 0x34a   : > { %v3741_v47 = vadd.f32 %v1344_v4, %v1220_v25  ;;  %v1221_v60 = vadd.f32 %v3665_v28, %v1059_v17 }
 0x34c   : > { %1463 = vmatmul.f32.gmra.mxu3 %v3380_v1 }
 0x34d   : > { %1832 = vmatmul.f32.gmra.mxu1 %v534_v12 }
 0x34e   : > { %1946 = vmatmul.f32.gmra.mxu2 %v3394_v27 }
 0x34f   : > { %v1026_v61 = vpop.f32.mrf.mxu3 }
 0x350   : > { %v1060_v35 = vadd.f32 %v1026_v61, %v3376_v43 }
 0x351   : > { %v1347_v38 = vpop.f32.mrf.mxu2 }
 0x352   : > { %v3749_v57 = vadd.f32 %v1347_v38, %v1221_v60  ;;  %v1222_v1 = vadd.f32 %v3673_v30, %v1060_v35 }
 0x354   : > { %1466 = vmatmul.f32.gmra.mxu3 %v3394_v27 }
 0x355   : > { %1835 = vmatmul.f32.gmra.mxu1 %v535_v6 }
 0x356   : > { %1949 = vmatmul.f32.gmra.mxu2 %v3410_v11 }
 0x357   : > { %v1419_v63 = vpop.f32.mrf.mxu3 }
 0x358   : > { %v1515_v28 = vadd.f32 %v1419_v63, %v3392_v8  ;;  %v3769_v8 = vpop.f32.mrf.mxu0 }
 0x359   : > { %v1350_v29 = vpop.f32.mrf.mxu2 }
 0x35a   : > { %v3756_v25 = vadd.f32 %v1350_v29, %v1222_v1  ;;  %v1677_v43 = vadd.f32 %v3518_v20, %v1515_v28 }
 0x35c   : > { %1469 = vmatmul.f32.gmra.mxu3 %v3410_v11  ;;  %v1839_v30 = vadd.f32 %v3683_v19, %v1677_v43 }
 0x35e   : > { %1952 = vmatmul.f32.gmra.mxu2 %v3426_v3 }
 0x35f   : > { %v1422_v27 = vpop.f32.mrf.mxu3 }
 0x360   : > { %v1516_v48 = vadd.f32 %v1422_v27, %v3408_v59  ;;  %v3776_v28 = vpop.f32.mrf.mxu0  ;;  %v3780_v27 = vpop.f32.mrf.mxu1 }
 0x361   : > { %v1905_v4 = vpop.f32.mrf.mxu2 }
 0x362   : > { %v1678_v17 = vadd.f32 %v3543_v58, %v1516_v48  ;;  %v2001_v12 = vadd.f32 %v1905_v4, %v1839_v30 }
 0x364   : > { %1472 = vmatmul.f32.gmra.mxu3 %v3426_v3  ;;  %v2033_v20 = vmax.f32 %v2001_v12, 0.0  ;;  %v1840_v11 = vadd.f32 %v3692_v14, %v1678_v17 }
 0x366   : > { %1955 = vmatmul.f32.gmra.mxu2 %v3440_v34  ;;  %v2065_v59 = vmin.f32 %v2033_v20, 255.0 }
 0x367   : > { %v1425_v60 = vpop.f32.mrf.mxu3 }
 0x368   : > { %v1517_v38 = vadd.f32 %v1425_v60, %v3422_v46  ;;  %v2338_v3 = vcvt.f32.s32 %v2065_v59  ;;  %v3787_v20 = vpop.f32.mrf.mxu0  ;;  %v3789_v60 = vpop.f32.mrf.mxu1 }
 0x369   : > { %v1908_v61 = vpop.f32.mrf.mxu2 }
 0x36a   : > { %v2002_v35 = vadd.f32 %v1908_v61, %v1840_v11  ;;  %v1679_v19 = vadd.f32 %v3566_v5, %v1517_v38 }
 0x36c   : > { %v2034_v6 = vmax.f32 %v2002_v35, 0.0  ;;  %1475 = vmatmul.f32.gmra.mxu3 %v3440_v34  ;;  %v1841_v46 = vadd.f32 %v3703_v55, %v1679_v19 }
 0x36e   : > { %v2066_v58 = vmin.f32 %v2034_v6, 255.0  ;;  %1958 = vmatmul.f32.gmra.mxu2 %v3456_v23 }
 0x36f   : > { %v1428_v29 = vpop.f32.mrf.mxu3 }
 0x370   : > { %v2341_v1 = vcvt.f32.s32 %v2066_v58  ;;  %v1518_v43 = vadd.f32 %v1428_v29, %v3438_v24 }
 0x371   : > { %v1911_v63 = vpop.f32.mrf.mxu2 }
 0x372   : > { %v2129_v14 = vpack.c.b16 %v2341_v1, %v2338_v3  ;;  %v1680_v5 = vadd.f32 %v3588_v2, %v1518_v43  ;;  %v2003_v4 = vadd.f32 %v1911_v63, %v1841_v46 }
 0x374   : > { %1478 = vmatmul.f32.gmra.mxu3 %v3456_v23  ;;  %v2035_v34 = vmax.f32 %v2003_v4, 0.0  ;;  %v1842_v48 = vadd.f32 %v3711_v42, %v1680_v5 }
 0x376   : > { %1961 = vmatmul.f32.gmra.mxu2 %v3470_v49  ;;  %v2067_v55 = vmin.f32 %v2035_v34, 255.0 }
 0x377   : > { %v1431_v30 = vpop.f32.mrf.mxu3 }
 0x378   : > { %v1519_v12 = vadd.f32 %v1431_v30, %v3452_v31  ;;  %v2344_v61 = vcvt.f32.s32 %v2067_v55 }
 0x379   : > { %v1914_v17 = vpop.f32.mrf.mxu2 }
 0x37a   : > { %v2004_v24 = vadd.f32 %v1914_v17, %v1842_v48  ;;  %v1681_v2 = vadd.f32 %v3611_v51, %v1519_v12  ;;  %v3798_v51 = vpop.f32.mrf.mxu0 }
 0x37c   : > { %v2036_v11 = vmax.f32 %v2004_v24, 0.0  ;;  %1481 = vmatmul.f32.gmra.mxu3 %v3470_v49  ;;  %v1843_v6 = vadd.f32 %v3721_v40, %v1681_v2  ;;  %v3805_v49 = vpop.f32.mrf.mxu1 }
 0x37e   : > { %v2068_v23 = vmin.f32 %v2036_v11, 255.0  ;;  %1964 = vmatmul.f32.gmra.mxu2 %v3486_v13 }
 0x37f   : > { %v1434_v38 = vpop.f32.mrf.mxu3 }
 0x380   : > { %v2347_v42 = vcvt.f32.s32 %v2068_v23  ;;  %v1520_v59 = vadd.f32 %v1434_v38, %v3468_v56 }
 0x381   : > { %v1917_v35 = vpop.f32.mrf.mxu2 }
 0x382   : > { %v2130_v31 = vpack.c.b16 %v2347_v42, %v2344_v61  ;;  %v1682_v58 = vadd.f32 %v3629_v15, %v1520_v59  ;;  %v2005_v3 = vadd.f32 %v1917_v35, %v1843_v6 }
 0x384   : > { %v2131_v19 = vpack.c.b8 %v2130_v31, %v2129_v14  ;;  %1484 = vmatmul.f32.gmra.mxu3 %v3486_v13  ;;  %v2037_v1 = vmax.f32 %v2005_v3, 0.0  ;;  %v1844_v56 = vadd.f32 %v3734_v39, %v1682_v58  ;;  %v3812_v13 = vpop.f32.mrf.mxu0  ;;  %v3814_v30 = vpop.f32.mrf.mxu1 }
 0x386   : > { %2153 = vst [vmem:[%s3800_s5] sm:$0xff] %v2131_v19  ;;  %1967 = vmatmul.f32.gmra.mxu2 %v3502_v44  ;;  %v2069_v14 = vmin.f32 %v2037_v1, 255.0 }
 0x387   : > { %v1437_v40 = vpop.f32.mrf.mxu3 }
 0x388   : > { %v1521_v15 = vadd.f32 %v1437_v40, %v3484_v22  ;;  %v2350_v4 = vcvt.f32.s32 %v2069_v14 }
 0x389   : > { %v1920_v29 = vpop.f32.mrf.mxu2 }
 0x38a   : > { %v2006_v63 = vadd.f32 %v1920_v29, %v1844_v56  ;;  %v1683_v46 = vadd.f32 %v3759_v53, %v1521_v15 }
 0x38c   : > { %v2038_v43 = vmax.f32 %v2006_v63, 0.0  ;;  %1487 = vmatmul.f32.gmra.mxu3 %v3502_v44  ;;  %v1845_v12 = vadd.f32 %v3743_v50, %v1683_v46  ;;  %v1617_v23 = vpop.f32.mrf.mxu0  ;;  %v3823_v38 = vpop.f32.mrf.mxu1 }
 0x38e   : > { %v2070_v5 = vmin.f32 %v2038_v43, 255.0  ;;  %1970 = vmatmul.f32.gmra.mxu2 %v3516_v54 }
 0x38f   : > { %v1440_v48 = vpop.f32.mrf.mxu3 }
 0x390   : > { %v2353_v34 = vcvt.f32.s32 %v2070_v5  ;;  %v1522_v22 = vadd.f32 %v1440_v48, %v3498_v10 }
 0x391   : > { %v1923_v39 = vpop.f32.mrf.mxu2 }
 0x392   : > { %v2132_v17 = vpack.c.b16 %v2353_v34, %v2350_v4  ;;  %v1684_v53 = vadd.f32 %v3769_v8, %v1522_v22  ;;  %v2007_v24 = vadd.f32 %v1923_v39, %v1845_v12 }
 0x394   : > { %1490 = vmatmul.f32.gmra.mxu3 %v3516_v54  ;;  %v2039_v44 = vmax.f32 %v2007_v24, 0.0  ;;  %v1846_v55 = vadd.f32 %v3753_v0, %v1684_v53  ;;  %v1620_v58 = vpop.f32.mrf.mxu0  ;;  %v1782_v56 = vpop.f32.mrf.mxu1 }
 0x396   : > { %1973 = vmatmul.f32.gmra.mxu2 %v3535_v41  ;;  %v2071_v10 = vmin.f32 %v2039_v44, 255.0 }
 0x397   : > { %v1443_v11 = vpop.f32.mrf.mxu3 }
 0x398   : > { %v1523_v61 = vadd.f32 %v1443_v11, %v3514_v52  ;;  %v2356_v54 = vcvt.f32.s32 %v2071_v10  ;;  %v4147_v11 = vld [vmem:[#allocation61_spill] sm:$0xff] }
 0x399   : > { %v1926_v2 = vpop.f32.mrf.mxu2 }
 0x39a   : > { %v2008_v42 = vadd.f32 %v1926_v2, %v1846_v55  ;;  %v1685_v8 = vadd.f32 %v3776_v28, %v1523_v61 }
 0x39c   : > { %v2040_v50 = vmax.f32 %v2008_v42, 0.0  ;;  %1493 = vmatmul.f32.gmra.mxu3 %v3535_v41  ;;  %v1847_v19 = vadd.f32 %v3780_v27, %v1685_v8  ;;  %v1623_v43 = vpop.f32.mrf.mxu0 }
 0x39e   : > { %v2072_v35 = vmin.f32 %v2040_v50, 255.0  ;;  %1976 = vmatmul.f32.gmra.mxu2 %v3552_v16 }
 0x39f   : > { %v1446_v31 = vpop.f32.mrf.mxu3 }
 0x3a0   : > { %v2359_v0 = vcvt.f32.s32 %v2072_v35  ;;  %v1524_v52 = vadd.f32 %v1446_v31, %v3529_v45 }
 0x3a1   : > { %v1929_v59 = vpop.f32.mrf.mxu2 }
 0x3a2   : > { %v2133_v6 = vpack.c.b16 %v2359_v0, %v2356_v54  ;;  %v1686_v1 = vadd.f32 %v3787_v20, %v1524_v52  ;;  %v2009_v28 = vadd.f32 %v1929_v59, %v1847_v19  ;;  %v4148_v0 = vld [vmem:[#allocation16_spill] sm:$0xff] }
 0x3a4   : > { %v2134_v3 = vpack.c.b8 %v2133_v6, %v2132_v17  ;;  %1496 = vmatmul.f32.gmra.mxu3 %v3552_v16  ;;  %v2041_v41 = vmax.f32 %v2009_v28, 0.0  ;;  %v1848_v40 = vadd.f32 %v3789_v60, %v1686_v1  ;;  %v3839_v16 = vpop.f32.mrf.mxu1 }
 0x3a6   : > { %2154 = vst [vmem:[%s3800_s5 + $0x8] sm:$0xff] %v2134_v3  ;;  %1979 = vmatmul.f32.gmra.mxu2 %v3571_v33  ;;  %v2073_v27 = vmin.f32 %v2041_v41, 255.0 }
 0x3a7   : > { %v1449_v29 = vpop.f32.mrf.mxu3 }
 0x3a8   : > { %v1525_v45 = vadd.f32 %v1449_v29, %v3549_v37  ;;  %v2362_v5 = vcvt.f32.s32 %v2073_v27  ;;  %v4149_v29 = vld [vmem:[#allocation18_spill] sm:$0xff] }
 0x3a9   : > { %v1932_v15 = vpop.f32.mrf.mxu2 }
 0x3aa   : > { %v2010_v63 = vadd.f32 %v1932_v15, %v1848_v40  ;;  %v1687_v20 = vadd.f32 %v3798_v51, %v1525_v45  ;;  %v4146_v51 = vld [vmem:[#allocation13_spill] sm:$0xff] }
 0x3ac   : > { %v2042_v14 = vmax.f32 %v2010_v63, 0.0  ;;  %1499 = vmatmul.f32.gmra.mxu3 %v3571_v33  ;;  %v1849_v39 = vadd.f32 %v3805_v49, %v1687_v20  ;;  %v1626_v33 = vpop.f32.mrf.mxu0  ;;  %v1788_v55 = vpop.f32.mrf.mxu1  ;;  %v568_v49 = vld [vmem:[#allocation2 + $0x209] sm:$0xff] }
 0x3ad   : > { %v570_v20 = vld [vmem:[#allocation2 + $0x229] sm:$0xff] }
 0x3ae   : > { %v2074_v46 = vmin.f32 %v2042_v14, 255.0  ;;  %1982 = vmatmul.f32.gmra.mxu2 %v3590_v32 }
 0x3af   : > { %v1452_v60 = vpop.f32.mrf.mxu3 }
 0x3b0   : > { %v2365_v4 = vcvt.f32.s32 %v2074_v46  ;;  %v1526_v37 = vadd.f32 %v1452_v60, %v3568_v9 }
 0x3b1   : > { %v1935_v34 = vpop.f32.mrf.mxu2 }
 0x3b2   : > { %v2135_v48 = vpack.c.b16 %v2365_v4, %v2362_v5  ;;  %v1688_v17 = vadd.f32 %v3812_v13, %v1526_v37  ;;  %v2011_v22 = vadd.f32 %v1935_v34, %v1849_v39 }
 0x3b4   : > { %1502 = vmatmul.f32.gmra.mxu3 %v3590_v32  ;;  %v2043_v12 = vmax.f32 %v2011_v22, 0.0  ;;  %v1850_v53 = vadd.f32 %v3814_v30, %v1688_v17  ;;  %v1629_v30 = vpop.f32.mrf.mxu0  ;;  %v1791_v6 = vpop.f32.mrf.mxu1 }
 0x3b6   : > { %1985 = vmatmul.f32.gmra.mxu2 %v4146_v51  ;;  %v2075_v9 = vmin.f32 %v2043_v12, 255.0 }
 0x3b7   : > { %v1455_v24 = vpop.f32.mrf.mxu3 }
 0x3b8   : > { %v1527_v2 = vadd.f32 %v1455_v24, %v4147_v11  ;;  %v2368_v32 = vcvt.f32.s32 %v2075_v9 }
 0x3b9   : > { %v1938_v44 = vpop.f32.mrf.mxu2 }
 0x3ba   : > { %v2012_v61 = vadd.f32 %v1938_v44, %v1850_v53  ;;  %v1689_v10 = vadd.f32 %v1617_v23, %v1527_v2  ;;  %v569_v23 = vld [vmem:[#allocation2 + $0x211] sm:$0xff]  ;;  %v2522_v53 = vld [vmem:[#allocation2 + $0x228] sm:$0xff] }
 0x3bc   : > { %v2044_v42 = vmax.f32 %v2012_v61, 0.0  ;;  %1505 = vmatmul.f32.gmra.mxu3 %v4146_v51  ;;  %v1851_v59 = vadd.f32 %v3823_v38, %v1689_v10  ;;  %v1632_v63 = vpop.f32.mrf.mxu0  ;;  %v1794_v38 = vpop.f32.mrf.mxu1  ;;  %v571_v51 = vld [vmem:[#allocation2 + $0x231] sm:$0xff] }
 0x3bd   : > { %v4151_v61 = vld [vmem:[#allocation20_spill] sm:$0xff] }
 0x3be   : > { %v2076_v13 = vmin.f32 %v2044_v42, 255.0  ;;  %1988 = vmatmul.f32.gmra.mxu2 %v568_v49 }
 0x3bf   : > { %v1458_v8 = vpop.f32.mrf.mxu3 }
 0x3c0   : > { %v2371_v50 = vcvt.f32.s32 %v2076_v13  ;;  %v1528_v31 = vadd.f32 %v1458_v8, %v4148_v0 }
 0x3c1   : > { %v1941_v35 = vpop.f32.mrf.mxu2 }
 0x3c2   : > { %v2136_v54 = vpack.c.b16 %v2371_v50, %v2368_v32  ;;  %v1690_v19 = vadd.f32 %v1620_v58, %v1528_v31  ;;  %v2013_v3 = vadd.f32 %v1941_v35, %v1851_v59 }
 0x3c4   : > { %v2137_v52 = vpack.c.b8 %v2136_v54, %v2135_v48  ;;  %1508 = vmatmul.f32.gmra.mxu3 %v568_v49  ;;  %v2045_v1 = vmax.f32 %v2013_v3, 0.0  ;;  %v1852_v28 = vadd.f32 %v1782_v56, %v1690_v19  ;;  %v4150_v56 = vld [vmem:[#allocation14_spill] sm:$0xff]  ;;  %v1635_v12 = vpop.f32.mrf.mxu0 }
 0x3c6   : > { %2155 = vst [vmem:[%s3800_s5 + $0x10] sm:$0xff] %v2137_v52  ;;  %1991 = vmatmul.f32.gmra.mxu2 %v569_v23  ;;  %v2077_v27 = vmin.f32 %v2045_v1, 255.0 }
 0x3c7   : > { %v1461_v41 = vpop.f32.mrf.mxu3 }
 0x3c8   : > { %v1529_v15 = vadd.f32 %v1461_v41, %v4149_v29  ;;  %v2374_v58 = vcvt.f32.s32 %v2077_v27  ;;  %v4153_v29 = vld [vmem:[#allocation22_spill] sm:$0xff] }
 0x3c9   : > { %v1944_v40 = vpop.f32.mrf.mxu2 }
 0x3ca   : > { %v2014_v45 = vadd.f32 %v1944_v40, %v1852_v28  ;;  %v1691_v46 = vadd.f32 %v1623_v43, %v1529_v15  ;;  %v1797_v43 = vpop.f32.mrf.mxu1 }
 0x3cc   : > { %v2046_v14 = vmax.f32 %v2014_v45, 0.0  ;;  %1511 = vmatmul.f32.gmra.mxu3 %v569_v23  ;;  %v1853_v39 = vadd.f32 %v3839_v16, %v1691_v46  ;;  %v1638_v32 = vpop.f32.mrf.mxu0 }
 0x3ce   : > { %v2078_v5 = vmin.f32 %v2046_v14, 255.0  ;;  %1994 = vmatmul.f32.gmra.mxu2 %v570_v20 }
 0x3cf   : > { %v1464_v60 = vpop.f32.mrf.mxu3 }
 0x3d0   : > { %v2377_v4 = vcvt.f32.s32 %v2078_v5  ;;  %v1530_v37 = vadd.f32 %v1464_v60, %v4150_v56 }
 0x3d1   : > { %v1947_v34 = vpop.f32.mrf.mxu2 }
 0x3d2   : > { %v2138_v48 = vpack.c.b16 %v2377_v4, %v2374_v58  ;;  %v1692_v17 = vadd.f32 %v1626_v33, %v1530_v37  ;;  %v2015_v22 = vadd.f32 %v1947_v34, %v1853_v39  ;;  %v2523_v33 = vld [vmem:[#allocation2 + $0x230] sm:$0xff]  ;;  %v1800_v0 = vpop.f32.mrf.mxu1 }
 0x3d4   : > { %1670 = vmatmul.f32.vlgmr.msrb.gmra.mxu3 %v2522_v53  ;;  %v2047_v24 = vmax.f32 %v2015_v22, 0.0  ;;  %v1854_v44 = vadd.f32 %v1788_v55, %v1692_v17  ;;  %v4152_v55 = vld [vmem:[#allocation15_spill] sm:$0xff]  ;;  %v1641_v40 = vpop.f32.mrf.mxu0 }
 0x3d6   : > { %1997 = vmatmul.f32.gmra.mxu2 %v571_v51  ;;  %v2079_v49 = vmin.f32 %v2047_v24, 255.0  ;;  %v4154_v24 = vld [vmem:[#allocation17_spill] sm:$0xff] }
 0x3d7   : > { %v1467_v11 = vpop.f32.mrf.mxu3 }
 0x3d8   : > { %v1531_v9 = vadd.f32 %v1467_v11, %v4151_v61  ;;  %v2380_v50 = vcvt.f32.s32 %v2079_v49 }
 0x3d9   : > { %v1950_v2 = vpop.f32.mrf.mxu2 }
 0x3da   : > { %v2016_v42 = vadd.f32 %v1950_v2, %v1854_v44  ;;  %v1693_v13 = vadd.f32 %v1629_v30, %v1531_v9  ;;  %v1803_v27 = vpop.f32.mrf.mxu1 }
 0x3dc   : > { %v2048_v10 = vmax.f32 %v2016_v42, 0.0  ;;  %1673 = vmatmul.f32.gmra.mxu3 %v2523_v33  ;;  %v1855_v52 = vadd.f32 %v1791_v6, %v1693_v13  ;;  %v4155_v33 = vld [vmem:[#allocation25_spill] sm:$0xff] }
 0x3de   : > { %v2080_v16 = vmin.f32 %v2048_v10, 255.0 }
 0x3df   : > { %v1470_v35 = vpop.f32.mrf.mxu3 }
 0x3e0   : > { %v2383_v8 = vcvt.f32.s32 %v2080_v16  ;;  %v1532_v59 = vadd.f32 %v1470_v35, %v4152_v55 }
 0x3e1   : > { %v1953_v54 = vpop.f32.mrf.mxu2 }
 0x3e2   : > { %v2139_v31 = vpack.c.b16 %v2383_v8, %v2380_v50  ;;  %v1694_v3 = vadd.f32 %v1632_v63, %v1532_v59  ;;  %v2017_v23 = vadd.f32 %v1953_v54, %v1855_v52  ;;  %v1806_v39 = vpop.f32.mrf.mxu1 }
 0x3e4   : > { %v2140_v19 = vpack.c.b8 %v2139_v31, %v2138_v48  ;;  %v2049_v1 = vmax.f32 %v2017_v23, 0.0  ;;  %v1856_v30 = vadd.f32 %v1794_v38, %v1694_v3  ;;  %v1644_v38 = vpop.f32.mrf.mxu0  ;;  %v4156_v3 = vld [vmem:[#allocation19_spill] sm:$0xff] }
 0x3e6   : > { %2156 = vst [vmem:[%s3800_s5 + $0x18] sm:$0xff] %v2140_v19  ;;  %v2081_v14 = vmin.f32 %v2049_v1, 255.0 }
 0x3e7   : > { %v1473_v28 = vpop.f32.mrf.mxu3 }
 0x3e8   : > { %v1533_v15 = vadd.f32 %v1473_v28, %v4153_v29  ;;  %v2386_v58 = vcvt.f32.s32 %v2081_v14 }
 0x3e9   : > { %v1956_v41 = vpop.f32.mrf.mxu2 }
 0x3ea   : > { %v2018_v45 = vadd.f32 %v1956_v41, %v1856_v30  ;;  %v1695_v46 = vadd.f32 %v1635_v12, %v1533_v15  ;;  %v1809_v49 = vpop.f32.mrf.mxu1 }
 0x3ec   : > { %v2050_v20 = vmax.f32 %v2018_v45, 0.0  ;;  %v1857_v48 = vadd.f32 %v1797_v43, %v1695_v46  ;;  %v1647_v61 = vpop.f32.mrf.mxu0 }
 0x3ee   : > { %v2082_v5 = vmin.f32 %v2050_v20, 255.0 }
 0x3ef   : > { %v1476_v6 = vpop.f32.mrf.mxu3 }
 0x3f0   : > { %v2389_v4 = vcvt.f32.s32 %v2082_v5  ;;  %v1534_v34 = vadd.f32 %v1476_v6, %v3663_v18 }
 0x3f1   : > { %v1959_v60 = vpop.f32.mrf.mxu2 }
 0x3f2   : > { %v2141_v63 = vpack.c.b16 %v2389_v4, %v2386_v58  ;;  %v1696_v56 = vadd.f32 %v1638_v32, %v1534_v34  ;;  %v2019_v37 = vadd.f32 %v1959_v60, %v1857_v48  ;;  %v1812_v19 = vpop.f32.mrf.mxu1 }
 0x3f4   : > { %v2051_v17 = vmax.f32 %v2019_v37, 0.0  ;;  %v1858_v22 = vadd.f32 %v1800_v0, %v1696_v56  ;;  %v1650_v0 = vpop.f32.mrf.mxu0 }
 0x3f6   : > { %v2083_v11 = vmin.f32 %v2051_v17, 255.0 }
 0x3f7   : > { %v1479_v51 = vpop.f32.mrf.mxu3 }
 0x3f8   : > { %v1535_v44 = vadd.f32 %v1479_v51, %v4154_v24  ;;  %v2392_v18 = vcvt.f32.s32 %v2083_v11 }
 0x3f9   : > { %v1962_v53 = vpop.f32.mrf.mxu2 }
 0x3fa   : > { %v2020_v12 = vadd.f32 %v1962_v53, %v1858_v22  ;;  %v1697_v9 = vadd.f32 %v1641_v40, %v1535_v44  ;;  %v1815_v58 = vpop.f32.mrf.mxu1 }
 0x3fc   : > { %v2052_v2 = vmax.f32 %v2020_v12, 0.0  ;;  %v1859_v50 = vadd.f32 %v1803_v27, %v1697_v9  ;;  %v1653_v14 = vpop.f32.mrf.mxu0 }
 0x3fe   : > { %v2084_v42 = vmin.f32 %v2052_v2, 255.0 }
 0x3ff   : > { %v1482_v10 = vpop.f32.mrf.mxu3 }
 0x400   : > { %v2395_v43 = vcvt.f32.s32 %v2084_v42  ;;  %v1536_v32 = vadd.f32 %v1482_v10, %v4155_v33  ;;  %v4157_v33 = vld [vmem:[#allocation73_spill] sm:$0xff] }
 0x401   : > { %v1965_v13 = vpop.f32.mrf.mxu2 }
 0x402   : > { %v2142_v16 = vpack.c.b16 %v2395_v43, %v2392_v18  ;;  %v1698_v35 = vadd.f32 %v1644_v38, %v1536_v32  ;;  %v2021_v54 = vadd.f32 %v1965_v13, %v1859_v50  ;;  %v1818_v22 = vpop.f32.mrf.mxu1 }
 0x404   : > { %v2143_v8 = vpack.c.b8 %v2142_v16, %v2141_v63  ;;  %v2053_v31 = vmax.f32 %v2021_v54, 0.0  ;;  %v1860_v55 = vadd.f32 %v1806_v39, %v1698_v35  ;;  %v1656_v37 = vpop.f32.mrf.mxu0 }
 0x406   : > { %2157 = vst [vmem:[%s3800_s5 + $0x20] sm:$0xff] %v2143_v8  ;;  %v2085_v30 = vmin.f32 %v2053_v31, 255.0 }
 0x407   : > { %v1485_v59 = vpop.f32.mrf.mxu3 }
 0x408   : > { %v1537_v23 = vadd.f32 %v1485_v59, %v4156_v3  ;;  %v2398_v29 = vcvt.f32.s32 %v2085_v30 }
 0x409   : > { %v1968_v52 = vpop.f32.mrf.mxu2 }
 0x40a   : > { %v2022_v1 = vadd.f32 %v1968_v52, %v1860_v55  ;;  %v1699_v41 = vadd.f32 %v1647_v61, %v1537_v23  ;;  %v1821_v18 = vpop.f32.mrf.mxu1 }
 0x40c   : > { %v2054_v28 = vmax.f32 %v2022_v1, 0.0  ;;  %v1861_v5 = vadd.f32 %v1809_v49, %v1699_v41 }
 0x40e   : > { %v2086_v40 = vmin.f32 %v2054_v28, 255.0 }
 0x40f   : > { %v1488_v45 = vpop.f32.mrf.mxu3 }
 0x410   : > { %v2401_v15 = vcvt.f32.s32 %v2086_v40  ;;  %v1538_v46 = vadd.f32 %v1488_v45, %v3695_v26 }
 0x411   : > { %v1971_v27 = vpop.f32.mrf.mxu2 }
 0x412   : > { %v2144_v20 = vpack.c.b16 %v2401_v15, %v2398_v29  ;;  %v1700_v4 = vadd.f32 %v1650_v0, %v1538_v46  ;;  %v2023_v6 = vadd.f32 %v1971_v27, %v1861_v5  ;;  %v1824_v1 = vpop.f32.mrf.mxu1 }
 0x414   : > { %v2055_v60 = vmax.f32 %v2023_v6, 0.0  ;;  %v1862_v63 = vadd.f32 %v1812_v19, %v1700_v4 }
 0x416   : > { %v2087_v39 = vmin.f32 %v2055_v60, 255.0 }
 0x417   : > { %v1491_v34 = vpop.f32.mrf.mxu3 }
 0x418   : > { %v1539_v38 = vadd.f32 %v1491_v34, %v3701_v36  ;;  %v2404_v24 = vcvt.f32.s32 %v2087_v39  ;;  %v1659_v36 = vpop.f32.mrf.mxu0 }
 0x419   : > { %v1974_v48 = vpop.f32.mrf.mxu2 }
 0x41a   : > { %v2024_v56 = vadd.f32 %v1974_v48, %v1862_v63  ;;  %v1701_v51 = vadd.f32 %v1653_v14, %v1539_v38  ;;  %v1827_v5 = vpop.f32.mrf.mxu1 }
 0x41c   : > { %v2056_v17 = vmax.f32 %v2024_v56, 0.0  ;;  %v1863_v61 = vadd.f32 %v1815_v58, %v1701_v51 }
 0x41e   : > { %v2088_v53 = vmin.f32 %v2056_v17, 255.0 }
 0x41f   : > { %v1494_v44 = vpop.f32.mrf.mxu3 }
 0x420   : > { %v2407_v26 = vcvt.f32.s32 %v2088_v53  ;;  %v1540_v2 = vadd.f32 %v1494_v44, %v3709_v21  ;;  %v1662_v31 = vpop.f32.mrf.mxu0 }
 0x421   : > { %v1977_v12 = vpop.f32.mrf.mxu2 }
 0x422   : > { %v2145_v11 = vpack.c.b16 %v2407_v26, %v2404_v24  ;;  %v1702_v42 = vadd.f32 %v1656_v37, %v1540_v2  ;;  %v2025_v49 = vadd.f32 %v1977_v12, %v1863_v61 }
 0x424   : > { %v2146_v9 = vpack.c.b8 %v2145_v11, %v2144_v20  ;;  %v2057_v43 = vmax.f32 %v2025_v49, 0.0  ;;  %v1864_v10 = vadd.f32 %v1818_v22, %v1702_v42 }
 0x426   : > { %2158 = vst [vmem:[%s3800_s5 + $0x28] sm:$0xff] %v2146_v9  ;;  %v2089_v8 = vmin.f32 %v2057_v43, 255.0 }
 0x427   : > { %v1497_v13 = vpop.f32.mrf.mxu3 }
 0x428   : > { %v1541_v32 = vadd.f32 %v1497_v13, %v4157_v33  ;;  %v2410_v21 = vcvt.f32.s32 %v2089_v8  ;;  %v1665_v41 = vpop.f32.mrf.mxu0 }
 0x429   : > { %v1980_v16 = vpop.f32.mrf.mxu2 }
 0x42a   : > { %v2026_v50 = vadd.f32 %v1980_v16, %v1864_v10  ;;  %v1703_v54 = vadd.f32 %v1659_v36, %v1541_v32 }
 0x42c   : > { %v2058_v35 = vmax.f32 %v2026_v50, 0.0  ;;  %v1865_v23 = vadd.f32 %v1821_v18, %v1703_v54 }
 0x42e   : > { %v2090_v0 = vmin.f32 %v2058_v35, 255.0 }
 0x42f   : > { %v1500_v59 = vpop.f32.mrf.mxu3 }
 0x430   : > { %v2413_v55 = vcvt.f32.s32 %v2090_v0  ;;  %v1542_v3 = vadd.f32 %v1500_v59, %v3725_v62  ;;  %v1668_v56 = vpop.f32.mrf.mxu0 }
 0x431   : > { %v1983_v52 = vpop.f32.mrf.mxu2 }
 0x432   : > { %v2147_v19 = vpack.c.b16 %v2413_v55, %v2410_v21  ;;  %v1704_v30 = vadd.f32 %v1662_v31, %v1542_v3  ;;  %v2027_v28 = vadd.f32 %v1983_v52, %v1865_v23 }
 0x434   : > { %v2059_v40 = vmax.f32 %v2027_v28, 0.0  ;;  %v1866_v29 = vadd.f32 %v1824_v1, %v1704_v30 }
 0x436   : > { %v2091_v20 = vmin.f32 %v2059_v40, 255.0 }
 0x437   : > { %v1503_v15 = vpop.f32.mrf.mxu3 }
 0x438   : > { %v1543_v27 = vadd.f32 %v1503_v15, %v3732_v7  ;;  %v2416_v6 = vcvt.f32.s32 %v2091_v20  ;;  %v1830_v7 = vpop.f32.mrf.mxu1 }
 0x439   : > { %v1986_v45 = vpop.f32.mrf.mxu2 }
 0x43a   : > { %v2028_v14 = vadd.f32 %v1986_v45, %v1866_v29  ;;  %v1705_v58 = vadd.f32 %v1665_v41, %v1543_v27 }
 0x43c   : > { %v2060_v46 = vmax.f32 %v2028_v14, 0.0  ;;  %v1867_v38 = vadd.f32 %v1827_v5, %v1705_v58 }
 0x43e   : > { %v2092_v4 = vmin.f32 %v2060_v46, 255.0 }
 0x43f   : > { %v1506_v60 = vpop.f32.mrf.mxu3 }
 0x440   : > { %v2419_v62 = vcvt.f32.s32 %v2092_v4  ;;  %v1544_v48 = vadd.f32 %v1506_v60, %v3741_v47  ;;  %v1833_v49 = vpop.f32.mrf.mxu1 }
 0x441   : > { %v1989_v63 = vpop.f32.mrf.mxu2 }
 0x442   : > { %v2148_v34 = vpack.c.b16 %v2419_v62, %v2416_v6  ;;  %v1706_v39 = vadd.f32 %v1668_v56, %v1544_v48  ;;  %v2029_v17 = vadd.f32 %v1989_v63, %v1867_v38 }
 0x444   : > { %v2149_v37 = vpack.c.b8 %v2148_v34, %v2147_v19  ;;  %v2061_v22 = vmax.f32 %v2029_v17, 0.0  ;;  %v1868_v51 = vadd.f32 %v1830_v7, %v1706_v39 }
 0x446   : > { %2159 = vst [vmem:[%s3800_s5 + $0x30] sm:$0xff] %v2149_v37  ;;  %v2093_v44 = vmin.f32 %v2061_v22, 255.0 }
 0x447   : > { %v1509_v53 = vpop.f32.mrf.mxu3 }
 0x448   : > { %v2422_v2 = vcvt.f32.s32 %v2093_v44  ;;  %v1545_v47 = vadd.f32 %v1509_v53, %v3749_v57  ;;  %v1836_v50 = vpop.f32.mrf.mxu1 }
 0x449   : > { %v1992_v24 = vpop.f32.mrf.mxu2 }
 0x44a   : > { %v2030_v26 = vadd.f32 %v1992_v24, %v1868_v51 }
 0x44c   : > { %v2062_v12 = vmax.f32 %v2030_v26, 0.0 }
 0x44e   : > { %v2094_v11 = vmin.f32 %v2062_v12, 255.0 }
 0x44f   : > { %v1512_v9 = vpop.f32.mrf.mxu3 }
 0x450   : > { %v2425_v61 = vcvt.f32.s32 %v2094_v11  ;;  %v1546_v13 = vadd.f32 %v1512_v9, %v3756_v25 }
 0x451   : > { %v1995_v43 = vpop.f32.mrf.mxu2 }
 0x452   : > { %v2150_v42 = vpack.c.b16 %v2425_v61, %v2422_v2 }
 0x457   : > { %v1671_v36 = vpop.f32.mrf.mxu3 }
 0x458   : > { %v1707_v18 = vadd.f32 %v1671_v36, %v1545_v47 }
 0x459   : > { %v1998_v54 = vpop.f32.mrf.mxu2 }
 0x45a   : > { %v1869_v10 = vadd.f32 %v1833_v49, %v1707_v18 }
 0x45c   : > { %v2031_v16 = vadd.f32 %v1995_v43, %v1869_v10 }
 0x45e   : > { %v2063_v8 = vmax.f32 %v2031_v16, 0.0 }
 0x45f   : > { %v1674_v33 = vpop.f32.mrf.mxu3 }
 0x460   : > { %v1708_v32 = vadd.f32 %v1674_v33, %v1546_v13  ;;  %v2095_v57 = vmin.f32 %v2063_v8, 255.0 }
 0x462   : > { %v1870_v35 = vadd.f32 %v1836_v50, %v1708_v32  ;;  %v2428_v21 = vcvt.f32.s32 %v2095_v57 }
 0x464   : > { %v2032_v0 = vadd.f32 %v1998_v54, %v1870_v35 }
 0x466   : > { %v2064_v31 = vmax.f32 %v2032_v0, 0.0 }
 0x468   : > { %v2096_v25 = vmin.f32 %v2064_v31, 255.0 }
 0x46a   : > { %v2431_v55 = vcvt.f32.s32 %v2096_v25 }
 0x46c   : > { %v2151_v59 = vpack.c.b16 %v2431_v55, %v2428_v21 }
 0x46e   : > { %v2152_v52 = vpack.c.b8 %v2151_v59, %v2150_v42 }
 0x470   : > { %2160 = vst [vmem:[%s3800_s5 + $0x38] sm:$0xff] %v2152_v52 }
 0x471   : > { %2641 = shalt.err (!%p2638_p10)
}
 0x472   : > { %s2691_s6 = smov 128   ;;  %s2692_s26 = smov 8  }
 0x473   : > { %2442 = dma.vmem_to_hbm [thread:$0]  (%p2789_p0), %s2175_s27, 1024, %s2177_s28, %s2162_s24, %s2691_s6, %s2691_s6, %s2692_s26  }
 0x474 PF: > { %p2464_p11 = scmp.ge.s32.totalorder %s2684_s18, 2  ;;  %s2191_s25 = sand.u32 1, %s2672_s15  }
 0x475   : > { %s2192_s5 = scalar_lea.sflag [#allocation5], %s2191_s25 }
 0x476   : > { %p2456_p12 = pnand %p2464_p11, %p2753_p6 }
 0x478   : > { %p2457_p13 = pneg %p2456_p12 }
 0x47a   : > { %2667 = dma.done.wait (%p2457_p13), %s2192_s5, 1024  }
 0x47b   : > { %2669 = vsyncadd (%p2457_p13), %s2192_s5, 4294966272  ;;  %p18_p3 = scmp.ge.s32.totalorder %s2779_s10, 5   ;;  %s4158_s15 = smov %s2676_s16 }
 0x47c   : > { %s4159_s16 = smov %s2680_s17  ;;  %s4160_s17 = smov %s2795_s14 }
 0x47d   : > { %s4161_s18 = smov %s2779_s10  ;;  %20 = sbr.rel (!%p18_p3) target bundleno = 6 (0x6), region = 97 }
 0x482   :  { %2198 = vsyncpa [#allocation4], 1 }
 0x483   :  { %2200 = vsyncpa [#allocation4 + $0x1], 1 }
 0x484   :  { %2201 = vsyncpa [#allocation7], 1 }
 0x485   :  { %2202 = vsyncpa [#allocation5], 1 }
 0x486   :  { %2204 = vsyncpa [#allocation5 + $0x1], 1 }

</bundles_post_ra>
